<compile_context>
chip_gen: v7x
topology: tpu7x:2x2x1
jax: 0.10.0
libtpu: 0.0.40
codegen_flags: <defaults>
</compile_context>

<pallas_src>
import functools

import jax
import jax.numpy as jnp
import numpy as np
from jax.experimental import pallas as pl
from jax.experimental.pallas import tpu as pltpu


def _up_conv_kernel(block_h, x_ref, w_ref, off_ref, o_ref):
    """One (batch, row-tile) grid step.

    x_ref:   (1, H+2, W+2, Cin)          zero-padded ORIGINAL-resolution input (bf16)
    w_ref:   (2, 2, 3, Cin, 2*Cout)      fused upsample+conv weights, BN scale folded,
                                         axes = (row_parity, row_tap, col_shift,
                                                 Cin, col_parity*Cout)
    off_ref: (1, 2*Cout)                 folded BN offset (+ conv bias), tiled per parity
    o_ref:   (1, block_h, 2, W, 2*Cout)  output tile, axes = (n, oh, row_parity,
                                         ow, col_parity*Cout).  A contiguous
                                         (N, H, 2, W, 2*Cout) array has exactly the
                                         memory layout of NHWC (N, 2H, 2W, Cout).
    """
    w_out = o_ref.shape[3]
    c2 = o_ref.shape[4]
    row0 = pl.multiple_of(pl.program_id(1) * block_h, block_h)
    off = off_ref[0]
    dn = (((2,), (0,)), ((), ()))

    # Two parity accumulators; the row-offset(+1) input slab is shared by both.
    acc0 = jnp.zeros((block_h, w_out, c2), jnp.float32)   # output row parity 0
    acc1 = jnp.zeros((block_h, w_out, c2), jnp.float32)   # output row parity 1
    for m in range(3):                                     # column shift of input slab
        s0 = x_ref[0, pl.ds(row0, block_h), pl.ds(m, w_out), :]
        s1 = x_ref[0, pl.ds(row0 + 1, block_h), pl.ds(m, w_out), :]
        s2 = x_ref[0, pl.ds(row0 + 2, block_h), pl.ds(m, w_out), :]
        acc0 = acc0 + jax.lax.dot_general(
            s0, w_ref[0, 0, m], dimension_numbers=dn,
            preferred_element_type=jnp.float32)
        acc0 = acc0 + jax.lax.dot_general(
            s1, w_ref[0, 1, m], dimension_numbers=dn,
            preferred_element_type=jnp.float32)
        acc1 = acc1 + jax.lax.dot_general(
            s1, w_ref[1, 0, m], dimension_numbers=dn,
            preferred_element_type=jnp.float32)
        acc1 = acc1 + jax.lax.dot_general(
            s2, w_ref[1, 1, m], dimension_numbers=dn,
            preferred_element_type=jnp.float32)

    # Folded BN offset (+ conv bias), then ReLU.
    o_ref[0, :, 0, :, :] = jnp.maximum(acc0 + off, 0.0).astype(o_ref.dtype)
    o_ref[0, :, 1, :, :] = jnp.maximum(acc1 + off, 0.0).astype(o_ref.dtype)


def _round_up(v, m):
    return ((v + m - 1) // m) * m


def _vmem_footprint(H, W, Cin, Cout, bh, comp_bytes):
    """Approximate padded VMEM bytes used by the kernel's buffers for tile bh."""
    lane = 128
    sub_c = 8 * (4 // comp_bytes)     # sublane tile for the compute dtype
    # double-buffered padded input image (block index changes only with n)
    x_buf = (H + 2) * _round_up(W + 2, sub_c) * _round_up(Cin, lane) * comp_bytes
    # double-buffered fused weights + offsets
    w_buf = 12 * _round_up(Cin, sub_c) * _round_up(2 * Cout, lane) * comp_bytes
    off_buf = 8 * lane * 4
    # double-buffered f32 output tile + both f32 accumulators
    o_buf = bh * 2 * _round_up(W, 8) * _round_up(2 * Cout, lane) * 4
    acc = 2 * bh * _round_up(W, 8) * _round_up(2 * Cout, lane) * 4
    return 2 * x_buf + 2 * w_buf + 2 * off_buf + 2 * o_buf + acc


def _pick_block_h(H, W, Cin, Cout, comp_bytes, budget_bytes):
    """Largest divisor of H whose buffer footprint fits the VMEM budget."""
    best = 1
    for bh in range(1, H + 1):
        if H % bh:
            continue
        if _vmem_footprint(H, W, Cin, Cout, bh, comp_bytes) <= budget_bytes:
            best = bh
    return best


def up_conv_forward(x_nchw, w_oihw, bias, gamma, beta, run_mean, run_var,
                    eps=1e-5, compute_dtype=jnp.bfloat16,
                    vmem_budget_bytes=20 << 20):
    """Forward pass of up_conv.  x_nchw: (N, Cin, H, W) -> (N, Cout, 2H, 2W)."""
    N, Cin, H, W = x_nchw.shape
    Cout = w_oihw.shape[0]
    comp_bytes = jnp.dtype(compute_dtype).itemsize

    # Row-tile size: biggest divisor of H whose buffers fit the VMEM budget.
    bh = _pick_block_h(H, W, Cin, Cout, comp_bytes, vmem_budget_bytes)
    nh = H // bh

    # Scoped-VMEM request: footprint with headroom, capped below v7x's 64 MiB.
    est = _vmem_footprint(H, W, Cin, Cout, bh, comp_bytes)
    vmem_limit = int(min(max(2 * est, 32 << 20), 48 << 20))

    # --- glue (plain JAX, original resolution only): NCHW -> NHWC + zero pad 1 ---
    x_nhwc = jnp.transpose(x_nchw, (0, 2, 3, 1))
    x_pad = jnp.pad(x_nhwc, ((0, 0), (1, 1), (1, 1), (0, 0))).astype(compute_dtype)

    # --- fold BatchNorm (eval) ---
    scale = (gamma / jnp.sqrt(run_var + eps)).astype(jnp.float32)        # (Cout,)
    offset = ((bias - run_mean) * scale + beta).astype(jnp.float32)      # (Cout,)

    # conv weights OIHW -> HWIO with the BN scale folded in
    w_hwio = jnp.transpose(w_oihw, (2, 3, 1, 0)).astype(jnp.float32)     # (3,3,Cin,Cout)
    w_hwio = w_hwio * scale[None, None, None, :]

    # --- build fused upsample+conv weights ---------------------------------------
    # A nearest-2x upsample followed by a 3x3/pad1 conv equals, for each output
    # parity (pi, pj), a 2x2 conv over the zero-padded ORIGINAL input whose taps
    # are sums of the original 3x3 taps:
    #   rows:  pi=0 -> {dy0}, {dy1+dy2}          pi=1 -> {dy0+dy1}, {dy2}
    #   cols (per input column shift m):
    #          pj=0 -> m0:{dx0}, m1:{dx1+dx2}, m2:0
    #          pj=1 -> m0:0,     m1:{dx0+dx1}, m2:{dx2}
    # Both column parities are packed along the output channel axis (2*Cout).
    rw = jnp.stack([
        jnp.stack([w_hwio[0], w_hwio[1] + w_hwio[2]], axis=0),   # pi = 0
        jnp.stack([w_hwio[0] + w_hwio[1], w_hwio[2]], axis=0),   # pi = 1
    ], axis=0)                                   # (pi, r, dx, Cin, Cout)
    zeros = jnp.zeros_like(rw[:, :, 0])
    w_pj0 = jnp.stack([rw[:, :, 0], rw[:, :, 1] + rw[:, :, 2], zeros], axis=2)
    w_pj1 = jnp.stack([zeros, rw[:, :, 0] + rw[:, :, 1], rw[:, :, 2]], axis=2)
    wc = jnp.stack([w_pj0, w_pj1], axis=4)       # (pi, r, m, Cin, pj, Cout)
    wc = wc.reshape(2, 2, 3, Cin, 2 * Cout).astype(compute_dtype)

    off2 = jnp.tile(offset, 2).reshape(1, 2 * Cout)   # (pj, Cout) packed

    out5 = pl.pallas_call(
        functools.partial(_up_conv_kernel, bh),
        out_shape=jax.ShapeDtypeStruct((N, H, 2, W, 2 * Cout), jnp.float32),
        grid_spec=pltpu.PrefetchScalarGridSpec(
            num_scalar_prefetch=0,
            grid=(N, nh),
            in_specs=[
                # whole padded image per batch element; its block index is
                # constant along the row-tile axis so it is DMA'd once per image
                pl.BlockSpec((1, H + 2, W + 2, Cin), lambda n, h: (n, 0, 0, 0)),
                pl.BlockSpec((2, 2, 3, Cin, 2 * Cout),
                             lambda n, h: (0, 0, 0, 0, 0)),
                pl.BlockSpec((1, 2 * Cout), lambda n, h: (0, 0)),
            ],
            out_specs=pl.BlockSpec((1, bh, 2, W, 2 * Cout),
                                   lambda n, h: (n, h, 0, 0, 0)),
        ),
        compiler_params=pltpu.CompilerParams(
            dimension_semantics=("parallel", "parallel"),
            vmem_limit_bytes=vmem_limit),
    )(x_pad, wc, off2)

    # (N, H, 2, W, 2*Cout) and NHWC (N, 2H, 2W, Cout) share the same contiguous
    # memory layout -> this reshape is free.
    out_nhwc = out5.reshape(N, 2 * H, 2 * W, Cout)
    # NCHW to match the PyTorch module's output convention.
    # TODO(synk): if the consumer is JAX/NHWC, return out_nhwc and skip this pass.
    return jnp.transpose(out_nhwc, (0, 3, 1, 2))


def _reference(x_nchw, w_oihw, bias, gamma, beta, run_mean, run_var, eps=1e-5):
    """Pure-JAX f32 reference (PyTorch eval-mode semantics)."""
    x_up = jnp.repeat(jnp.repeat(x_nchw, 2, axis=2), 2, axis=3)
    y = jax.lax.conv_general_dilated(
        x_up.astype(jnp.float32), w_oihw.astype(jnp.float32),
        window_strides=(1, 1), padding=((1, 1), (1, 1)),
        dimension_numbers=("NCHW", "OIHW", "NCHW"))
    y = y + bias[None, :, None, None]
    y = (y - run_mean[None, :, None, None]) / jnp.sqrt(
        run_var[None, :, None, None] + eps)
    y = y * gamma[None, :, None, None] + beta[None, :, None, None]
    return jnp.maximum(y, 0.0)


if __name__ == "__main__":
    key = jax.random.PRNGKey(0)
    N, Cin, H, W = 2, 4, 16, 16
    Cout = 8

    k_x, k_w, k_b, k_g, k_be, k_m, k_v = jax.random.split(key, 7)
    x = jax.random.normal(k_x, (N, Cin, H, W), dtype=jnp.float32)

    # PyTorch Conv2d default init: U(-sqrt(k), sqrt(k)), k = 1/(Cin*3*3)
    bound = 1.0 / np.sqrt(Cin * 3 * 3)
    w = jax.random.uniform(k_w, (Cout, Cin, 3, 3), jnp.float32, -bound, bound)
    b = jax.random.uniform(k_b, (Cout,), jnp.float32, -bound, bound)

    # non-trivial BatchNorm (eval) parameters to exercise the scale/offset fold
    gamma = jax.random.uniform(k_g, (Cout,), jnp.float32, 0.8, 1.2)
    beta = 0.1 * jax.random.normal(k_be, (Cout,), jnp.float32)
    run_mean = 0.1 * jax.random.normal(k_m, (Cout,), jnp.float32)
    run_var = jax.random.uniform(k_v, (Cout,), jnp.float32, 0.8, 1.2)

    out = up_conv_forward(x, w, b, gamma, beta, run_mean, run_var)
    out = jax.block_until_ready(out)

    ref = jax.block_until_ready(_reference(x, w, b, gamma, beta, run_mean, run_var))
    assert out.shape == (N, Cout, 2 * H, 2 * W), out.shape
    # bf16 MXU inputs (f32 accumulation) vs. an f32 reference -> loose tolerance.
    np.testing.assert_allclose(np.asarray(out), np.asarray(ref), rtol=5e-2, atol=5e-2)

    print("KERNEL_OK")
</pallas_src>

<mosaic_0001>
module attributes {stable_mosaic.version = 11 : i64} {
  func.func @_up_conv_kernel(%arg0: i32, %arg1: i32, %arg2: memref<1x18x18x4xbf16, #tpu.memory_space<vmem>>, %arg3: memref<2x2x3x4x16xbf16, #tpu.memory_space<vmem>>, %arg4: memref<1x16xf32, #tpu.memory_space<vmem>>, %arg5: memref<1x16x2x16x16xf32, #tpu.memory_space<vmem>>) attributes {dimension_semantics = [#tpu.dimension_semantics<parallel>, #tpu.dimension_semantics<parallel>], iteration_bounds = array<i64: 2, 1>, scalar_prefetch = 0 : i64, scratch_operands = 0 : i64, tpu.core_type = #tpu.core_type<tc>, window_params = [{transform_indices = @transform_0, window_bounds = array<i64: 1, 18, 18, 4>}, {pipeline_mode = #tpu.pipeline_mode<synchronous>, transform_indices = @transform_1, window_bounds = array<i64: 2, 2, 3, 4, 16>}, {pipeline_mode = #tpu.pipeline_mode<synchronous>, transform_indices = @transform_2, window_bounds = array<i64: 1, 16>}, {transform_indices = @transform_3, window_bounds = array<i64: 1, 16, 2, 16, 16>}]} {
    %c16_i32 = arith.constant 16 : i32
    %0 = arith.muli %arg1, %c16_i32 : i32
    %1 = tpu.assume_multiple %0, 16 : i32
    %c0 = arith.constant 0 : index
    %c0_0 = arith.constant 0 : index
    %2 = vector.load %arg4[%c0, %c0_0] : memref<1x16xf32, #tpu.memory_space<vmem>>, vector<1x16xf32>
    %3 = vector.shape_cast %2 : vector<1x16xf32> to vector<16xf32>
    %cst = arith.constant 0.000000e+00 : f32
    %4 = vector.broadcast %cst : f32 to vector<16x16x16xf32>
    %cst_1 = arith.constant 0.000000e+00 : f32
    %5 = vector.broadcast %cst_1 : f32 to vector<16x16x16xf32>
    %c0_2 = arith.constant 0 : index
    %6 = arith.index_cast %1 : i32 to index
    %c0_3 = arith.constant 0 : index
    %c0_4 = arith.constant 0 : index
    %7 = vector.load %arg2[%c0_2, %6, %c0_3, %c0_4] : memref<1x18x18x4xbf16, #tpu.memory_space<vmem>>, vector<1x16x16x4xbf16>
    %8 = vector.shape_cast %7 : vector<1x16x16x4xbf16> to vector<16x16x4xbf16>
    %c1_i32 = arith.constant 1 : i32
    %9 = arith.addi %1, %c1_i32 : i32
    %c0_5 = arith.constant 0 : index
    %10 = arith.index_cast %9 : i32 to index
    %c0_6 = arith.constant 0 : index
    %c0_7 = arith.constant 0 : index
    %11 = vector.load %arg2[%c0_5, %10, %c0_6, %c0_7] : memref<1x18x18x4xbf16, #tpu.memory_space<vmem>>, vector<1x16x16x4xbf16>
    %12 = vector.shape_cast %11 : vector<1x16x16x4xbf16> to vector<16x16x4xbf16>
    %c2_i32 = arith.constant 2 : i32
    %13 = arith.addi %1, %c2_i32 : i32
    %c0_8 = arith.constant 0 : index
    %14 = arith.index_cast %13 : i32 to index
    %c0_9 = arith.constant 0 : index
    %c0_10 = arith.constant 0 : index
    %15 = vector.load %arg2[%c0_8, %14, %c0_9, %c0_10] : memref<1x18x18x4xbf16, #tpu.memory_space<vmem>>, vector<1x16x16x4xbf16>
    %16 = vector.shape_cast %15 : vector<1x16x16x4xbf16> to vector<16x16x4xbf16>
    %c0_11 = arith.constant 0 : index
    %c0_12 = arith.constant 0 : index
    %c0_13 = arith.constant 0 : index
    %c0_14 = arith.constant 0 : index
    %c0_15 = arith.constant 0 : index
    %17 = vector.load %arg3[%c0_11, %c0_12, %c0_13, %c0_14, %c0_15] : memref<2x2x3x4x16xbf16, #tpu.memory_space<vmem>>, vector<1x1x1x4x16xbf16>
    %18 = vector.shape_cast %17 : vector<1x1x1x4x16xbf16> to vector<4x16xbf16>
    %cst_16 = arith.constant dense<0.000000e+00> : vector<16x16x16xf32>
    %19 = tpu.matmul %8, %18, %cst_16 {dimension_numbers = #tpu.dot_dimension_numbers<[2], [0], [0, 1], [1], [0, 0, 0, 1, 1, 1], [], []>} : vector<16x16x4xbf16>, vector<4x16xbf16>, vector<16x16x16xf32> -> vector<16x16x16xf32>
    %20 = arith.addf %4, %19 : vector<16x16x16xf32>
    %c0_17 = arith.constant 0 : index
    %c1 = arith.constant 1 : index
    %c0_18 = arith.constant 0 : index
    %c0_19 = arith.constant 0 : index
    %c0_20 = arith.constant 0 : index
    %21 = vector.load %arg3[%c0_17, %c1, %c0_18, %c0_19, %c0_20] : memref<2x2x3x4x16xbf16, #tpu.memory_space<vmem>>, vector<1x1x1x4x16xbf16>
    %22 = vector.shape_cast %21 : vector<1x1x1x4x16xbf16> to vector<4x16xbf16>
    %cst_21 = arith.constant dense<0.000000e+00> : vector<16x16x16xf32>
    %23 = tpu.matmul %12, %22, %cst_21 {dimension_numbers = #tpu.dot_dimension_numbers<[2], [0], [0, 1], [1], [0, 0, 0, 1, 1, 1], [], []>} : vector<16x16x4xbf16>, vector<4x16xbf16>, vector<16x16x16xf32> -> vector<16x16x16xf32>
    %24 = arith.addf %20, %23 : vector<16x16x16xf32>
    %c1_22 = arith.constant 1 : index
    %c0_23 = arith.constant 0 : index
    %c0_24 = arith.constant 0 : index
    %c0_25 = arith.constant 0 : index
    %c0_26 = arith.constant 0 : index
    %25 = vector.load %arg3[%c1_22, %c0_23, %c0_24, %c0_25, %c0_26] : memref<2x2x3x4x16xbf16, #tpu.memory_space<vmem>>, vector<1x1x1x4x16xbf16>
    %26 = vector.shape_cast %25 : vector<1x1x1x4x16xbf16> to vector<4x16xbf16>
    %cst_27 = arith.constant dense<0.000000e+00> : vector<16x16x16xf32>
    %27 = tpu.matmul %12, %26, %cst_27 {dimension_numbers = #tpu.dot_dimension_numbers<[2], [0], [0, 1], [1], [0, 0, 0, 1, 1, 1], [], []>} : vector<16x16x4xbf16>, vector<4x16xbf16>, vector<16x16x16xf32> -> vector<16x16x16xf32>
    %28 = arith.addf %5, %27 : vector<16x16x16xf32>
    %c1_28 = arith.constant 1 : index
    %c1_29 = arith.constant 1 : index
    %c0_30 = arith.constant 0 : index
    %c0_31 = arith.constant 0 : index
    %c0_32 = arith.constant 0 : index
    %29 = vector.load %arg3[%c1_28, %c1_29, %c0_30, %c0_31, %c0_32] : memref<2x2x3x4x16xbf16, #tpu.memory_space<vmem>>, vector<1x1x1x4x16xbf16>
    %30 = vector.shape_cast %29 : vector<1x1x1x4x16xbf16> to vector<4x16xbf16>
    %cst_33 = arith.constant dense<0.000000e+00> : vector<16x16x16xf32>
    %31 = tpu.matmul %16, %30, %cst_33 {dimension_numbers = #tpu.dot_dimension_numbers<[2], [0], [0, 1], [1], [0, 0, 0, 1, 1, 1], [], []>} : vector<16x16x4xbf16>, vector<4x16xbf16>, vector<16x16x16xf32> -> vector<16x16x16xf32>
    %32 = arith.addf %28, %31 : vector<16x16x16xf32>
    %c0_34 = arith.constant 0 : index
    %33 = arith.index_cast %1 : i32 to index
    %c1_35 = arith.constant 1 : index
    %c0_36 = arith.constant 0 : index
    %34 = vector.load %arg2[%c0_34, %33, %c1_35, %c0_36] : memref<1x18x18x4xbf16, #tpu.memory_space<vmem>>, vector<1x16x16x4xbf16>
    %35 = vector.shape_cast %34 : vector<1x16x16x4xbf16> to vector<16x16x4xbf16>
    %c1_i32_37 = arith.constant 1 : i32
    %36 = arith.addi %1, %c1_i32_37 : i32
    %c0_38 = arith.constant 0 : index
    %37 = arith.index_cast %36 : i32 to index
    %c1_39 = arith.constant 1 : index
    %c0_40 = arith.constant 0 : index
    %38 = vector.load %arg2[%c0_38, %37, %c1_39, %c0_40] : memref<1x18x18x4xbf16, #tpu.memory_space<vmem>>, vector<1x16x16x4xbf16>
    %39 = vector.shape_cast %38 : vector<1x16x16x4xbf16> to vector<16x16x4xbf16>
    %c2_i32_41 = arith.constant 2 : i32
    %40 = arith.addi %1, %c2_i32_41 : i32
    %c0_42 = arith.constant 0 : index
    %41 = arith.index_cast %40 : i32 to index
    %c1_43 = arith.constant 1 : index
    %c0_44 = arith.constant 0 : index
    %42 = vector.load %arg2[%c0_42, %41, %c1_43, %c0_44] : memref<1x18x18x4xbf16, #tpu.memory_space<vmem>>, vector<1x16x16x4xbf16>
    %43 = vector.shape_cast %42 : vector<1x16x16x4xbf16> to vector<16x16x4xbf16>
    %c0_45 = arith.constant 0 : index
    %c0_46 = arith.constant 0 : index
    %c1_47 = arith.constant 1 : index
    %c0_48 = arith.constant 0 : index
    %c0_49 = arith.constant 0 : index
    %44 = vector.load %arg3[%c0_45, %c0_46, %c1_47, %c0_48, %c0_49] : memref<2x2x3x4x16xbf16, #tpu.memory_space<vmem>>, vector<1x1x1x4x16xbf16>
    %45 = vector.shape_cast %44 : vector<1x1x1x4x16xbf16> to vector<4x16xbf16>
    %cst_50 = arith.constant dense<0.000000e+00> : vector<16x16x16xf32>
    %46 = tpu.matmul %35, %45, %cst_50 {dimension_numbers = #tpu.dot_dimension_numbers<[2], [0], [0, 1], [1], [0, 0, 0, 1, 1, 1], [], []>} : vector<16x16x4xbf16>, vector<4x16xbf16>, vector<16x16x16xf32> -> vector<16x16x16xf32>
    %47 = arith.addf %24, %46 : vector<16x16x16xf32>
    %c0_51 = arith.constant 0 : index
    %c1_52 = arith.constant 1 : index
    %c1_53 = arith.constant 1 : index
    %c0_54 = arith.constant 0 : index
    %c0_55 = arith.constant 0 : index
    %48 = vector.load %arg3[%c0_51, %c1_52, %c1_53, %c0_54, %c0_55] : memref<2x2x3x4x16xbf16, #tpu.memory_space<vmem>>, vector<1x1x1x4x16xbf16>
    %49 = vector.shape_cast %48 : vector<1x1x1x4x16xbf16> to vector<4x16xbf16>
    %cst_56 = arith.constant dense<0.000000e+00> : vector<16x16x16xf32>
    %50 = tpu.matmul %39, %49, %cst_56 {dimension_numbers = #tpu.dot_dimension_numbers<[2], [0], [0, 1], [1], [0, 0, 0, 1, 1, 1], [], []>} : vector<16x16x4xbf16>, vector<4x16xbf16>, vector<16x16x16xf32> -> vector<16x16x16xf32>
    %51 = arith.addf %47, %50 : vector<16x16x16xf32>
    %c1_57 = arith.constant 1 : index
    %c0_58 = arith.constant 0 : index
    %c1_59 = arith.constant 1 : index
    %c0_60 = arith.constant 0 : index
    %c0_61 = arith.constant 0 : index
    %52 = vector.load %arg3[%c1_57, %c0_58, %c1_59, %c0_60, %c0_61] : memref<2x2x3x4x16xbf16, #tpu.memory_space<vmem>>, vector<1x1x1x4x16xbf16>
    %53 = vector.shape_cast %52 : vector<1x1x1x4x16xbf16> to vector<4x16xbf16>
    %cst_62 = arith.constant dense<0.000000e+00> : vector<16x16x16xf32>
    %54 = tpu.matmul %39, %53, %cst_62 {dimension_numbers = #tpu.dot_dimension_numbers<[2], [0], [0, 1], [1], [0, 0, 0, 1, 1, 1], [], []>} : vector<16x16x4xbf16>, vector<4x16xbf16>, vector<16x16x16xf32> -> vector<16x16x16xf32>
    %55 = arith.addf %32, %54 : vector<16x16x16xf32>
    %c1_63 = arith.constant 1 : index
    %c1_64 = arith.constant 1 : index
    %c1_65 = arith.constant 1 : index
    %c0_66 = arith.constant 0 : index
    %c0_67 = arith.constant 0 : index
    %56 = vector.load %arg3[%c1_63, %c1_64, %c1_65, %c0_66, %c0_67] : memref<2x2x3x4x16xbf16, #tpu.memory_space<vmem>>, vector<1x1x1x4x16xbf16>
    %57 = vector.shape_cast %56 : vector<1x1x1x4x16xbf16> to vector<4x16xbf16>
    %cst_68 = arith.constant dense<0.000000e+00> : vector<16x16x16xf32>
    %58 = tpu.matmul %43, %57, %cst_68 {dimension_numbers = #tpu.dot_dimension_numbers<[2], [0], [0, 1], [1], [0, 0, 0, 1, 1, 1], [], []>} : vector<16x16x4xbf16>, vector<4x16xbf16>, vector<16x16x16xf32> -> vector<16x16x16xf32>
    %59 = arith.addf %55, %58 : vector<16x16x16xf32>
    %c0_69 = arith.constant 0 : index
    %60 = arith.index_cast %1 : i32 to index
    %c2 = arith.constant 2 : index
    %c0_70 = arith.constant 0 : index
    %61 = vector.load %arg2[%c0_69, %60, %c2, %c0_70] : memref<1x18x18x4xbf16, #tpu.memory_space<vmem>>, vector<1x16x16x4xbf16>
    %62 = vector.shape_cast %61 : vector<1x16x16x4xbf16> to vector<16x16x4xbf16>
    %c1_i32_71 = arith.constant 1 : i32
    %63 = arith.addi %1, %c1_i32_71 : i32
    %c0_72 = arith.constant 0 : index
    %64 = arith.index_cast %63 : i32 to index
    %c2_73 = arith.constant 2 : index
    %c0_74 = arith.constant 0 : index
    %65 = vector.load %arg2[%c0_72, %64, %c2_73, %c0_74] : memref<1x18x18x4xbf16, #tpu.memory_space<vmem>>, vector<1x16x16x4xbf16>
    %66 = vector.shape_cast %65 : vector<1x16x16x4xbf16> to vector<16x16x4xbf16>
    %c2_i32_75 = arith.constant 2 : i32
    %67 = arith.addi %1, %c2_i32_75 : i32
    %c0_76 = arith.constant 0 : index
    %68 = arith.index_cast %67 : i32 to index
    %c2_77 = arith.constant 2 : index
    %c0_78 = arith.constant 0 : index
    %69 = vector.load %arg2[%c0_76, %68, %c2_77, %c0_78] : memref<1x18x18x4xbf16, #tpu.memory_space<vmem>>, vector<1x16x16x4xbf16>
    %70 = vector.shape_cast %69 : vector<1x16x16x4xbf16> to vector<16x16x4xbf16>
    %c0_79 = arith.constant 0 : index
    %c0_80 = arith.constant 0 : index
    %c2_81 = arith.constant 2 : index
    %c0_82 = arith.constant 0 : index
    %c0_83 = arith.constant 0 : index
    %71 = vector.load %arg3[%c0_79, %c0_80, %c2_81, %c0_82, %c0_83] : memref<2x2x3x4x16xbf16, #tpu.memory_space<vmem>>, vector<1x1x1x4x16xbf16>
    %72 = vector.shape_cast %71 : vector<1x1x1x4x16xbf16> to vector<4x16xbf16>
    %cst_84 = arith.constant dense<0.000000e+00> : vector<16x16x16xf32>
    %73 = tpu.matmul %62, %72, %cst_84 {dimension_numbers = #tpu.dot_dimension_numbers<[2], [0], [0, 1], [1], [0, 0, 0, 1, 1, 1], [], []>} : vector<16x16x4xbf16>, vector<4x16xbf16>, vector<16x16x16xf32> -> vector<16x16x16xf32>
    %74 = arith.addf %51, %73 : vector<16x16x16xf32>
    %c0_85 = arith.constant 0 : index
    %c1_86 = arith.constant 1 : index
    %c2_87 = arith.constant 2 : index
    %c0_88 = arith.constant 0 : index
    %c0_89 = arith.constant 0 : index
    %75 = vector.load %arg3[%c0_85, %c1_86, %c2_87, %c0_88, %c0_89] : memref<2x2x3x4x16xbf16, #tpu.memory_space<vmem>>, vector<1x1x1x4x16xbf16>
    %76 = vector.shape_cast %75 : vector<1x1x1x4x16xbf16> to vector<4x16xbf16>
    %cst_90 = arith.constant dense<0.000000e+00> : vector<16x16x16xf32>
    %77 = tpu.matmul %66, %76, %cst_90 {dimension_numbers = #tpu.dot_dimension_numbers<[2], [0], [0, 1], [1], [0, 0, 0, 1, 1, 1], [], []>} : vector<16x16x4xbf16>, vector<4x16xbf16>, vector<16x16x16xf32> -> vector<16x16x16xf32>
    %78 = arith.addf %74, %77 : vector<16x16x16xf32>
    %c1_91 = arith.constant 1 : index
    %c0_92 = arith.constant 0 : index
    %c2_93 = arith.constant 2 : index
    %c0_94 = arith.constant 0 : index
    %c0_95 = arith.constant 0 : index
    %79 = vector.load %arg3[%c1_91, %c0_92, %c2_93, %c0_94, %c0_95] : memref<2x2x3x4x16xbf16, #tpu.memory_space<vmem>>, vector<1x1x1x4x16xbf16>
    %80 = vector.shape_cast %79 : vector<1x1x1x4x16xbf16> to vector<4x16xbf16>
    %cst_96 = arith.constant dense<0.000000e+00> : vector<16x16x16xf32>
    %81 = tpu.matmul %66, %80, %cst_96 {dimension_numbers = #tpu.dot_dimension_numbers<[2], [0], [0, 1], [1], [0, 0, 0, 1, 1, 1], [], []>} : vector<16x16x4xbf16>, vector<4x16xbf16>, vector<16x16x16xf32> -> vector<16x16x16xf32>
    %82 = arith.addf %59, %81 : vector<16x16x16xf32>
    %c1_97 = arith.constant 1 : index
    %c1_98 = arith.constant 1 : index
    %c2_99 = arith.constant 2 : index
    %c0_100 = arith.constant 0 : index
    %c0_101 = arith.constant 0 : index
    %83 = vector.load %arg3[%c1_97, %c1_98, %c2_99, %c0_100, %c0_101] : memref<2x2x3x4x16xbf16, #tpu.memory_space<vmem>>, vector<1x1x1x4x16xbf16>
    %84 = vector.shape_cast %83 : vector<1x1x1x4x16xbf16> to vector<4x16xbf16>
    %cst_102 = arith.constant dense<0.000000e+00> : vector<16x16x16xf32>
    %85 = tpu.matmul %70, %84, %cst_102 {dimension_numbers = #tpu.dot_dimension_numbers<[2], [0], [0, 1], [1], [0, 0, 0, 1, 1, 1], [], []>} : vector<16x16x4xbf16>, vector<4x16xbf16>, vector<16x16x16xf32> -> vector<16x16x16xf32>
    %86 = arith.addf %82, %85 : vector<16x16x16xf32>
    %87 = vector.shape_cast %3 : vector<16xf32> to vector<1x1x16xf32>
    %88 = vector.broadcast %87 : vector<1x1x16xf32> to vector<16x16x16xf32>
    %89 = arith.addf %78, %88 : vector<16x16x16xf32>
    %cst_103 = arith.constant 0.000000e+00 : f32
    %90 = vector.broadcast %cst_103 : f32 to vector<16x16x16xf32>
    %91 = arith.maximumf %89, %90 : vector<16x16x16xf32>
    %c0_104 = arith.constant 0 : index
    %c0_105 = arith.constant 0 : index
    %c0_106 = arith.constant 0 : index
    %c0_107 = arith.constant 0 : index
    %c0_108 = arith.constant 0 : index
    %92 = vector.load %arg5[%c0_104, %c0_105, %c0_106, %c0_107, %c0_108] : memref<1x16x2x16x16xf32, #tpu.memory_space<vmem>>, vector<1x16x1x16x16xf32>
    %93 = vector.shape_cast %92 : vector<1x16x1x16x16xf32> to vector<16x16x16xf32>
    %94 = vector.shape_cast %91 : vector<16x16x16xf32> to vector<1x16x1x16x16xf32>
    tpu.vector_store %arg5[%c0_104, %c0_105, %c0_106, %c0_107, %c0_108], %94 {strides = array<i32>} : memref<1x16x2x16x16xf32, #tpu.memory_space<vmem>>, vector<1x16x1x16x16xf32>,
    %95 = vector.shape_cast %3 : vector<16xf32> to vector<1x1x16xf32>
    %96 = vector.broadcast %95 : vector<1x1x16xf32> to vector<16x16x16xf32>
    %97 = arith.addf %86, %96 : vector<16x16x16xf32>
    %cst_109 = arith.constant 0.000000e+00 : f32
    %98 = vector.broadcast %cst_109 : f32 to vector<16x16x16xf32>
    %99 = arith.maximumf %97, %98 : vector<16x16x16xf32>
    %c0_110 = arith.constant 0 : index
    %c0_111 = arith.constant 0 : index
    %c1_112 = arith.constant 1 : index
    %c0_113 = arith.constant 0 : index
    %c0_114 = arith.constant 0 : index
    %100 = vector.load %arg5[%c0_110, %c0_111, %c1_112, %c0_113, %c0_114] : memref<1x16x2x16x16xf32, #tpu.memory_space<vmem>>, vector<1x16x1x16x16xf32>
    %101 = vector.shape_cast %100 : vector<1x16x1x16x16xf32> to vector<16x16x16xf32>
    %102 = vector.shape_cast %99 : vector<16x16x16xf32> to vector<1x16x1x16x16xf32>
    tpu.vector_store %arg5[%c0_110, %c0_111, %c1_112, %c0_113, %c0_114], %102 {strides = array<i32>} : memref<1x16x2x16x16xf32, #tpu.memory_space<vmem>>, vector<1x16x1x16x16xf32>,
    return
  }
  func.func @transform_0(%arg0: i32, %arg1: i32) -> (i32, i32, i32, i32) {
    %c0_i32 = arith.constant 0 : i32
    %c0_i32_0 = arith.constant 0 : i32
    %c0_i32_1 = arith.constant 0 : i32
    %c0_i32_2 = arith.constant 0 : i32
    return %arg0, %c0_i32, %c0_i32_0, %c0_i32_1 : i32, i32, i32, i32
  }
  func.func @transform_1(%arg0: i32, %arg1: i32) -> (i32, i32, i32, i32, i32) {
    %c0_i32 = arith.constant 0 : i32
    %c0_i32_0 = arith.constant 0 : i32
    %c0_i32_1 = arith.constant 0 : i32
    %c0_i32_2 = arith.constant 0 : i32
    %c0_i32_3 = arith.constant 0 : i32
    %c0_i32_4 = arith.constant 0 : i32
    return %c0_i32, %c0_i32_0, %c0_i32_1, %c0_i32_2, %c0_i32_3 : i32, i32, i32, i32, i32
  }
  func.func @transform_2(%arg0: i32, %arg1: i32) -> (i32, i32) {
    %c0_i32 = arith.constant 0 : i32
    %c0_i32_0 = arith.constant 0 : i32
    %c0_i32_1 = arith.constant 0 : i32
    return %c0_i32, %c0_i32_0 : i32, i32
  }
  func.func @transform_3(%arg0: i32, %arg1: i32) -> (i32, i32, i32, i32, i32) {
    %c0_i32 = arith.constant 0 : i32
    %c0_i32_0 = arith.constant 0 : i32
    %c0_i32_1 = arith.constant 0 : i32
    %c0_i32_2 = arith.constant 0 : i32
    return %arg0, %arg1, %c0_i32, %c0_i32_0, %c0_i32_1 : i32, i32, i32, i32, i32
  }
}

</mosaic_0001>

<bundles_post_ra>
// kernel: tpu_custom_call.1
= control target key start
LH: loop header
LB: loop body
LE: loop exit
PB: predicated region body
PF: predicated region fallthrough
CT: control target
= control target key end

     0   :  { %8 = vsyncpa [#allocation3], 0  ;;  %s9103_s0 = inlined_call_operand.vmem [shape: bf16[2,18,18,4], index: 0, kind: input, shape index: {}]   ;;  %s9104_s1 = inlined_call_operand.vmem [shape: bf16[2,2,3,4,16], index: 1, kind: input, shape index: {}]   ;;  %s9105_s2 = inlined_call_operand.vmem [shape: f32[1,16], index: 2, kind: input, shape index: {}]   ;;  %s9106_s3 = inlined_call_operand.hbm [shape: f32[2,16,2,16,16], index: 3, kind: output, shape index: {}]  }
   0x1   :  { %10 = vsyncpa [#allocation3 + $0x1], 0  ;;  %s7508_s12 = smov 0   ;;  %s7510_s13 = smov 0  }
   0x2   :  { %s7512_s14 = smov 0   ;;  %s7514_s15 = smov 0  }
   0x3   :  { %s7516_s16 = smov 0   ;;  %s7518_s17 = smov 0  }
   0x4 LB: > { %s5633_s18 = sadd.s32 4294967295, %s7483_s17   ;;  %s5634_s19 = sadd.s32 4294967294, %s7483_s17   ;;  %s7483_s17 = sphi %s7518_s17, %s16_s17   ;;  %s7479_s16 = sphi %s7516_s16, %s9117_s16   ;;  %s7475_s15 = sphi %s7514_s15, %s9116_s15   ;;  %s7471_s14 = sphi %s7512_s14, %s9115_s14   ;;  %s7467_s13 = sphi %s7510_s13, %s9114_s13   ;;  %s7463_s12 = sphi %s7508_s12, %s9113_s12  }
   0x5   : > { %s28_s20 = sadd.s32 1, %s7479_s16  ;;  %s105_s21 = sadd.s32 1, %s7471_s14 }
   0x6   : > { %p30_p0 = scmp.ge.s32.totalorder %s28_s20, 2  ;;  %p115_p1 = scmp.ne.s32.totalorder %s7471_s14, %s7467_s13 }
   0x7   : > { %p116_p2 = scmp.eq.s32.totalorder %s5633_s18, 1  ;;  %p121_p3 = scmp.ne.s32.totalorder %s7467_s13, %s7463_s12 }
   0x8   : > { %s9119_s20 = smov (%p30_p0, %s28_s20), 0  ;;  %p122_p5 = scmp.eq.s32.totalorder %s5634_s19, 1 }
   0x9   : > { %p7548_p4 = por %p116_p2, %p115_p1  ;;  %s100_s23 = ssub.s32 %s7479_s16, %s9119_s20 }
   0xa   : > { %p5637_p6 = scmp.ge.s32.totalorder %s7483_s17, 1  ;;  %p103_p7 = scmp.eq.s32.totalorder %s100_s23, 0 }
   0xb   : > { %p7555_p8 = por %p122_p5, %p121_p3  ;;  %p154_p9 = scmp.lt.s32.totalorder %s7483_s17, 3 }
   0xc   : > { %s7561_s25 = scalar_select %p103_p7, %s7471_s14, %s105_s21  }
   0xd   : > { %p155_p10 = pnand %p5637_p6, %p154_p9 }
   0xe   : > { %v5704_v0 = vld [vmem:[%s9104_s1 + $0x6] sm:$0x3] (!%p155_p10)  ;;  %vm426_vm0 = vcmask (!%p155_p10), 1041408   ;;  %v5770_v1 = vld [vmem:[%s9104_s1 + $0x12] sm:$0x3] (!%p155_p10)  ;;  %p178_p11 = scmp.lt.s32.totalorder (!%p155_p10), %s7475_s15, 1 }
   0xf   : > { %158 = sbr.rel (%p155_p10) target bundleno = 643 (0x283), region = 32  ;;  %7198 = vmatprep.subr.msk.bf16.mxu0 (!%p155_p10), %vm426_vm0, %v5704_v0  ;;  %7200 = vmatprep.subr.msk.bf16.mxu1 (!%p155_p10), %vm426_vm0, %v5770_v1  ;;  %v428_v2 = vsel (!%p155_p10), %vm426_vm0, %v5704_v0, 0  ;;  %v1016_v3 = vsel (!%p155_p10), %vm426_vm0, %v5770_v1, 0  ;;  %v294_v4 = vld [vmem:[%s9104_s1] sm:$0x3] (!%p155_p10)  ;;  %vm377_vm1 = vcmask (!%p155_p10), 31744  }
  0x10   : > { %6471 = vmatpush3.bf16.msra.mxu0 (!%p155_p10), %v428_v2  ;;  %6539 = vmatpush3.bf16.msra.mxu1 (!%p155_p10), %v1016_v3  ;;  %v5769_v5 = vld [vmem:[%s9104_s1 + $0xc] sm:$0x3] (!%p155_p10)  ;;  %v720_v9 = vsel (!%p155_p10), %vm426_vm0, %v294_v4, 0  ;;  %v5915_v10 = vld [vmem:[%s9104_s1 + $0x2] sm:$0x3] (!%p155_p10)  ;;  %vm3820_vm5 = vcmask (!%p155_p10), 1042432  }
  0x11   : > { %7199 = vmatprep.subr.msk.bf16.mxu0 (!%p155_p10), %vm426_vm0, %v294_v4  ;;  %7201 = vmatprep.subr.msk.bf16.mxu1 (!%p155_p10), %vm426_vm0, %v5769_v5  ;;  %v1180_v12 = vsel (!%p155_p10), %vm426_vm0, %v5769_v5, 0  ;;  %v5981_v13 = vld [vmem:[%s9104_s1 + $0xe] sm:$0x3] (!%p155_p10)  ;;  %v7683_v35 = vsel (!%p155_p10), %vm426_vm0, %v5915_v10, 0  ;;  %vm1489_vm2 = vsmask.f32 (!%p155_p10), 3328 }
  0x12   : > { %v7687_v37 = vsel (!%p155_p10), %vm426_vm0, %v5981_v13, 0  ;;  %v7692_v38 = vld [vmem:[%s9104_s1 + $0x8] sm:$0x3] (!%p155_p10)  ;;  %v7699_v39 = vld [vmem:[%s9104_s1 + $0x14] sm:$0x3] (!%p155_p10)  ;;  %vm3821_vm6 = vcmask (!%p155_p10), 1046532  }
  0x13   : > { %vm1490_vm3 = vsmask.f32 (!%p155_p10), 7440  ;;  %v7710_v41 = vsel (!%p155_p10), %vm426_vm0, %v7692_v38, 0  ;;  %v7718_v44 = vsel (!%p155_p10), %vm426_vm0, %v7699_v39, 0  ;;  %vm8368_vm7 = vmor (!%p155_p10), %vm3820_vm5, %vm3821_vm6  ;;  %vm5403_vm8 = vcmask (!%p155_p10), 130048   ;;  %s6265_s26 = sshll.u32 (!%p155_p10), %s7475_s15, 13 }
  0x14   : > { %vm7737_vm4 = vmor (!%p155_p10), %vm1489_vm2, %vm1490_vm3  ;;  %s9045_s29 = scalar_lea.hbm (!%p155_p10), %s9106_s3, %s6265_s26 }
  0x16   : > { %s179_s5 = scalar_select %p178_p11, %s7475_s15, 1 }
  0x18   : > { %s7210_s8 = smul.u32 216, %s179_s5  ;;  %s7485_s5 = smov [#allocation2]  }
  0x19   : > { %s7409_s6 = sshll.u32 %s7485_s5, 4  ;;  %s7410_s6 = int_to_ptr.vmem [resolvable:$false] %s7409_s6 }
  0x1a   : > { %s7586_s11 = scalar_lea.vmem %s9103_s0, %s7210_s8  ;;  %s7411_s7 = scalar_lea.vmem %s7410_s6, 16384 }
  0x1b   : > { %v7589_v6 = vld [vmem:[%s7586_s11 + $0xc] sm:$0xff]   ;;  %v7269_v7 = vld [vmem:[%s7586_s11 + $0x18] sm:$0xff]   ;;  %v7271_v11 = vld [vmem:[%s7586_s11 + $0x24] sm:$0xff]  }
  0x1c   : > { %6472 = vmatprep.mubr.msk.bf16.mxu0 %vm377_vm1, %v7589_v6  ;;  %v7595_v8 = vld [vmem:[%s7586_s11 + $0x18] sm:$0xff]   ;;  %6540 = vmatprep.mubr.msk.bf16.mxu1 %vm377_vm1, %v7269_v7  ;;  %v7610_v14 = vld [vmem:[%s7586_s11 + $0x24] sm:$0xff]   ;;  %v7273_v15 = vld [vmem:[%s7586_s11 + $0x30] sm:$0xff]  }
  0x1d   : > { %6473 = vmatmul.mubr.msk.bf16.vlgmr.msra.gmra.mrb[0].mxu0 %vm377_vm1, %v7595_v8  ;;  %6541 = vmatmul.mubr.msk.bf16.vlgmr.msra.gmra.mrb[0].mxu1 %vm377_vm1, %v7271_v11  ;;  %v7618_v16 = vld [vmem:[%s7586_s11 + $0x30] sm:$0xff]   ;;  %v7275_v17 = vld [vmem:[%s7586_s11 + $0x3c] sm:$0xff]   ;;  %v7277_v19 = vld [vmem:[%s7586_s11 + $0x48] sm:$0xff]  }
  0x1e   : > { %6505 = vmatpush3.bf16.msra.mxu0 %v720_v9  ;;  %6573 = vmatpush3.bf16.msra.mxu1 %v1180_v12  ;;  %v7624_v18 = vld [vmem:[%s7586_s11 + $0x3c] sm:$0xff]   ;;  %v7634_v20 = vld [vmem:[%s7586_s11 + $0x48] sm:$0xff]   ;;  %v7279_v21 = vld [vmem:[%s7586_s11 + $0x54] sm:$0xff]  }
  0x1f   : > { %6476 = vmatprep.mubr.msk.bf16.mxu0 %vm377_vm1, %v7610_v14  ;;  %6544 = vmatprep.mubr.msk.bf16.mxu1 %vm377_vm1, %v7273_v15  ;;  %v7638_v22 = vld [vmem:[%s7586_s11 + $0x54] sm:$0xff]   ;;  %v7281_v23 = vld [vmem:[%s7586_s11 + $0x60] sm:$0xff]   ;;  %v7283_v25 = vld [vmem:[%s7586_s11 + $0x6c] sm:$0xff]  }
  0x20   : > { %7202 = vmatprep.subr.msk.bf16.mxu0 %vm426_vm0, %v5915_v10  ;;  %7204 = vmatprep.subr.msk.bf16.mxu1 %vm426_vm0, %v5981_v13  ;;  %v7648_v24 = vld [vmem:[%s7586_s11 + $0x60] sm:$0xff]   ;;  %v7652_v26 = vld [vmem:[%s7586_s11 + $0x6c] sm:$0xff]   ;;  %v7285_v27 = vld [vmem:[%s7586_s11 + $0x78] sm:$0xff]  }
  0x21   : > { %v7662_v28 = vld [vmem:[%s7586_s11 + $0x78] sm:$0xff]   ;;  %v7287_v29 = vld [vmem:[%s7586_s11 + $0x84] sm:$0xff]   ;;  %v7289_v31 = vld [vmem:[%s7586_s11 + $0x90] sm:$0xff]  }
  0x22   : > { %v7666_v30 = vld [vmem:[%s7586_s11 + $0x84] sm:$0xff]   ;;  %v7676_v32 = vld [vmem:[%s7586_s11 + $0x90] sm:$0xff]   ;;  %v7291_v33 = vld [vmem:[%s7586_s11 + $0x9c] sm:$0xff]  }
  0x23   : > { %v7680_v34 = vld [vmem:[%s7586_s11 + $0x9c] sm:$0xff]   ;;  %v7293_v36 = vld [vmem:[%s7586_s11 + $0xa8] sm:$0xff]   ;;  %v7295_v42 = vld [vmem:[%s7586_s11 + $0xb4] sm:$0xff]  }
  0x24   : > { %v7706_v40 = vld [vmem:[%s7586_s11 + $0xa8] sm:$0xff]   ;;  %v7714_v43 = vld [vmem:[%s7586_s11 + $0xb4] sm:$0xff]   ;;  %v7297_v45 = vld [vmem:[%s7586_s11 + $0xc0] sm:$0xff]  }
  0x25   : > { %6477 = vmatmul.mubr.msk.bf16.gmra.mrb[4].mxu0 %vm377_vm1, %v7618_v16  ;;  %6545 = vmatmul.mubr.msk.bf16.gmra.mrb[4].mxu1 %vm377_vm1, %v7275_v17  ;;  %v1343_v46 = vld [vmem:[%s7586_s11] sm:$0xf]  ;;  %v1344_v47 = vld [vmem:[%s7586_s11 + $0x4] sm:$0xf]  ;;  %v1345_v48 = vld [vmem:[%s7586_s11 + $0x8] sm:$0x1] }
  0x26   : > { %6480 = vmatprep.mubr.msk.bf16.mxu0 %vm377_vm1, %v7624_v18  ;;  %6548 = vmatprep.mubr.msk.bf16.mxu1 %vm377_vm1, %v7277_v19  ;;  %v1493_v49 = vshrl.u32 %v1343_v46, 16  ;;  %v1496_v50 = vshll.u32 %v1343_v46, 16  ;;  %v1502_v51 = vshll.u32 %v1344_v47, 16  ;;  %v1506_v52 = vshrl.u32 %v1344_v47, 16  ;;  %v5819_v53 = vld [vmem:[%s7586_s11 + $0xc] sm:$0xf] }
  0x27   : > { %v1512_v54 = vshll.u32 %v1345_v48, 16  ;;  %v5820_v55 = vld [vmem:[%s7586_s11 + $0x10] sm:$0xf]  ;;  %v5821_v56 = vld [vmem:[%s7586_s11 + $0x14] sm:$0x1]  ;;  %v2171_v57 = vshrl.u32 %v5819_v53, 16 }
  0x28   : > { %v1495_v58 = vrot.slane %v1493_v49, 4  ;;  %v1498_v59 = vrot.slane %v1496_v50, 5  ;;  %v1504_v60 = vrot.slane %v1502_v51, 5  ;;  %v1508_v61 = vrot.slane %v1506_v52, 4  ;;  %v1346_v62 = vld [vmem:[%s7586_s11 + $0xc] sm:$0xf] }
  0x29   : > { %v1514_v63 = vrot.slane %v1512_v54, 5  ;;  %v2173_v0 = vrot.slane %v2171_v57, 4  ;;  %v2174_v1 = vshll.u32 %v5819_v53, 16  ;;  %v2180_v2 = vshll.u32 %v5820_v55, 16  ;;  %v1347_v9 = vld [vmem:[%s7586_s11 + $0x10] sm:$0xf] }
  0x2a   : > { %v1499_v3 = vor.u32 %v1498_v59, %v1495_v58  ;;  %v1509_v4 = vor.u32 %v1508_v61, %v1504_v60  ;;  %v2184_v5 = vshrl.u32 %v5820_v55, 16  ;;  %v2190_v7 = vshll.u32 %v5821_v56, 16  ;;  %v7300_v46 = vld [vmem:[%s7586_s11] sm:$0xff]   ;;  %v5823_v51 = vld [vmem:[%s7586_s11 + $0x1c] sm:$0xf] }
  0x2b   : > { %v2176_v11 = vrot.slane %v2174_v1, 5  ;;  %v2182_v12 = vrot.slane %v2180_v2, 5  ;;  %v1517_v13 = vshrl.u32 %v1346_v62, 16  ;;  %v1520_v15 = vshll.u32 %v1346_v62, 16  ;;  %v5824_v59 = vld [vmem:[%s7586_s11 + $0x20] sm:$0x1] }
  0x2c   : > { %v1500_v17 = vrot.slane %v1499_v3, 4  ;;  %v1510_v19 = vrot.slane %v1509_v4, 4  ;;  %v1530_v50 = vshrl.u32 %v1347_v9, 16  ;;  %v1349_v1 = vld [vmem:[%s7586_s11 + $0x18] sm:$0xf] }
  0x2d   : > { %6481 = vmatmul.mubr.msk.bf16.gmra.mrb[8].mxu0 %vm377_vm1, %v7634_v20  ;;  %6549 = vmatmul.mubr.msk.bf16.gmra.mrb[8].mxu1 %vm377_vm1, %v7279_v21  ;;  %v2186_v21 = vrot.slane %v2184_v5, 4 }
  0x2e   : > { %6484 = vmatprep.mubr.msk.bf16.mxu0 %vm377_vm1, %v7638_v22  ;;  %6552 = vmatprep.mubr.msk.bf16.mxu1 %vm377_vm1, %v7281_v23  ;;  %v2192_v23 = vrot.slane %v2190_v7, 5  ;;  %v1505_v47 = vsel %vm7737_vm4, %v1500_v17, %v1504_v60  ;;  %v1515_v48 = vsel %vm7737_vm4, %v1510_v19, %v1514_v63  ;;  %v1532_v57 = vrot.slane %v1530_v50, 4  ;;  %v1350_v7 = vld [vmem:[%s7586_s11 + $0x1c] sm:$0xf] }
  0x2f   : > { %v2187_v49 = vor.u32 %v2186_v21, %v2182_v12  ;;  %v7753_v52 = vcombine.low %v1505_v47, %v1515_v48  ;;  %v2208_v17 = vshrl.u32 %v5823_v51, 16  ;;  %v2214_v19 = vshll.u32 %v5824_v59, 16  ;;  %v1351_v21 = vld [vmem:[%s7586_s11 + $0x20] sm:$0x1]  ;;  %v5826_v48 = vld [vmem:[%s7586_s11 + $0x28] sm:$0xf] }
  0x31   : > { %v2188_v56 = vrot.slane %v2187_v49, 4  ;;  %v7302_v49 = vld [vmem:[%s7586_s11 + $0x18] sm:$0xff]  }
  0x33   : > { %v2193_v2 = vsel %vm7737_vm4, %v2188_v56, %v2192_v23  ;;  %v1541_v23 = vshrl.u32 %v1349_v1, 16 }
  0x35   : > { %6485 = vmatmul.mubr.msk.bf16.gmra.mrb[12].mxu0 %vm377_vm1, %v7648_v24  ;;  %6553 = vmatmul.mubr.msk.bf16.gmra.mrb[12].mxu1 %vm377_vm1, %v7283_v25  ;;  %v1348_v25 = vld [vmem:[%s7586_s11 + $0x14] sm:$0x1]  ;;  %v1543_v47 = vrot.slane %v1541_v23, 4 }
  0x36   : > { %6488 = vmatprep.mubr.msk.bf16.mxu0 %vm377_vm1, %v7652_v26  ;;  %6556 = vmatprep.mubr.msk.bf16.mxu1 %vm377_vm1, %v7285_v27  ;;  %v7743_v27 = vld [vmem:[%s7586_s11 + $0xc0] sm:$0xff]   ;;  %v1536_v58 = vshll.u32 %v1348_v25, 16  ;;  %v7301_v25 = vld [vmem:[%s7586_s11 + $0xc] sm:$0xff]  }
  0x38   : > { %v1538_v4 = vrot.slane %v1536_v58, 5 }
  0x3d   : > { %6489 = vmatmul.mubr.msk.bf16.gmra.mrb[16].mxu0 %vm377_vm1, %v7662_v28  ;;  %6557 = vmatmul.mubr.msk.bf16.gmra.mrb[16].mxu1 %vm377_vm1, %v7287_v29  ;;  %v2177_v29 = vor.u32 %v2176_v11, %v2173_v0  ;;  %v2204_v0 = vshll.u32 %v5823_v51, 16 }
  0x3e   : > { %6492 = vmatprep.mubr.msk.bf16.mxu0 %vm377_vm1, %v7666_v30  ;;  %6560 = vmatprep.mubr.msk.bf16.mxu1 %vm377_vm1, %v7289_v31  ;;  %v1519_v31 = vrot.slane %v1517_v13, 4 }
  0x3f   : > { %v2178_v53 = vrot.slane %v2177_v29, 4  ;;  %v2206_v13 = vrot.slane %v2204_v0, 5  ;;  %v1352_v0 = vld [vmem:[%s7586_s11 + $0x24] sm:$0xf] }
  0x41   : > { %v2183_v60 = vsel %vm7737_vm4, %v2178_v53, %v2182_v12 }
  0x45   : > { %6493 = vmatmul.mubr.msk.bf16.gmra.mrb[20].mxu0 %vm377_vm1, %v7676_v32  ;;  %6561 = vmatmul.mubr.msk.bf16.gmra.mrb[20].mxu1 %vm377_vm1, %v7291_v33  ;;  %v1522_v33 = vrot.slane %v1520_v15, 5 }
  0x46   : > { %6496 = vmatprep.mubr.msk.bf16.mxu0 %vm377_vm1, %v7680_v34  ;;  %6564 = vmatprep.mubr.msk.bf16.mxu1 %vm377_vm1, %v7293_v36  ;;  %v1526_v36 = vshll.u32 %v1347_v9, 16  ;;  %v7768_v9 = vcombine.low %v2183_v60, %v2193_v2  ;;  %v5827_v60 = vld [vmem:[%s7586_s11 + $0x2c] sm:$0x1] }
  0x47   : > { %v1523_v54 = vor.u32 %v1522_v33, %v1519_v31  ;;  %v1544_v31 = vshll.u32 %v1349_v1, 16  ;;  %v1550_v33 = vshll.u32 %v1350_v7, 16 }
  0x48   : > { %v1528_v55 = vrot.slane %v1526_v36, 5  ;;  %v1554_v36 = vshrl.u32 %v1350_v7, 16 }
  0x49   : > { %v1524_v62 = vrot.slane %v1523_v54, 4  ;;  %v1546_v53 = vrot.slane %v1544_v31, 5  ;;  %v1552_v54 = vrot.slane %v1550_v33, 5 }
  0x4a   : > { %v1533_v3 = vor.u32 %v1532_v57, %v1528_v55  ;;  %v1556_v56 = vrot.slane %v1554_v36, 4  ;;  %v1560_v57 = vshll.u32 %v1351_v21, 16 }
  0x4b   : > { %v1529_v11 = vsel %vm7737_vm4, %v1524_v62, %v1528_v55 }
  0x4c   : > { %v1534_v15 = vrot.slane %v1533_v3, 4  ;;  %v1557_v2 = vor.u32 %v1556_v56, %v1552_v54  ;;  %v1562_v3 = vrot.slane %v1560_v57, 5  ;;  %v5830_v57 = vld [vmem:[%s7586_s11 + $0x38] sm:$0x1] }
  0x4d   : > { %6497 = vmatmul.mubr.msk.bf16.gmra.mrb[24].mxu0 %vm377_vm1, %v7706_v40  ;;  %6565 = vmatmul.mubr.msk.bf16.gmra.mrb[24].mxu1 %vm377_vm1, %v7295_v42  ;;  %v5822_v42 = vld [vmem:[%s7586_s11 + $0x18] sm:$0xf] }
  0x4e   : > { %6500 = vmatprep.mubr.msk.bf16.mxu0 %vm377_vm1, %v7714_v43  ;;  %6568 = vmatprep.mubr.msk.bf16.mxu1 %vm377_vm1, %v7297_v45  ;;  %v7299_v45 = vld [vmem:[%s7586_s11 + $0xcc] sm:$0xff]   ;;  %v2195_v61 = vshrl.u32 %v5822_v42, 16  ;;  %v2198_v63 = vshll.u32 %v5822_v42, 16  ;;  %v1539_v42 = vsel %vm7737_vm4, %v1534_v15, %v1538_v4  ;;  %v1565_v15 = vshrl.u32 %v1352_v0, 16 }
  0x4f   : > { %v7779_v50 = vcombine.low %v1529_v11, %v1539_v42 }
  0x50   : > { %v2197_v5 = vrot.slane %v2195_v61, 4  ;;  %v2200_v12 = vrot.slane %v2198_v63, 5  ;;  %v1547_v61 = vor.u32 %v1546_v53, %v1543_v47  ;;  %v2228_v63 = vshll.u32 %v5826_v48, 16 }
  0x51   : > { %v1567_v36 = vrot.slane %v1565_v15, 4  ;;  %v7306_v15 = vld [vmem:[%s7586_s11 + $0x48] sm:$0xff]  }
  0x52   : > { %v2201_v29 = vor.u32 %v2200_v12, %v2197_v5  ;;  %v1548_v5 = vrot.slane %v1547_v61, 4  ;;  %v2230_v11 = vrot.slane %v2228_v63, 5  ;;  %v2232_v12 = vshrl.u32 %v5826_v48, 16  ;;  %v1355_v63 = vld [vmem:[%s7586_s11 + $0x30] sm:$0xf] }
  0x54   : > { %v2202_v51 = vrot.slane %v2201_v29, 4  ;;  %v1553_v21 = vsel %vm7737_vm4, %v1548_v5, %v1552_v54  ;;  %v2234_v23 = vrot.slane %v2232_v12, 4  ;;  %v7304_v29 = vld [vmem:[%s7586_s11 + $0x30] sm:$0xff]   ;;  %v7305_v12 = vld [vmem:[%s7586_s11 + $0x3c] sm:$0xff]  }
  0x55   : > { %6501 = vmatmul.mubr.msk.bf16.gmra.mrb[28].mxu0 %vm377_vm1, %v7743_v27  ;;  %6569 = vmatmul.mubr.msk.bf16.gmra.mrb[28].mxu1 %vm377_vm1, %v7299_v45  ;;  %v2210_v45 = vrot.slane %v2208_v17, 4  ;;  %v7303_v17 = vld [vmem:[%s7586_s11 + $0x24] sm:$0xff]  }
  0x56   : > { %6506 = vmatprep.mubr.msk.bf16.mxu0 %vm377_vm1, %v7300_v46  ;;  %6574 = vmatprep.mubr.msk.bf16.mxu1 %vm377_vm1, %v7589_v6  ;;  %v5825_v6 = vld [vmem:[%s7586_s11 + $0x24] sm:$0xf]  ;;  %v2216_v46 = vrot.slane %v2214_v19, 5  ;;  %v2207_v59 = vsel %vm7737_vm4, %v2202_v51, %v2206_v13  ;;  %v5829_v51 = vld [vmem:[%s7586_s11 + $0x34] sm:$0xf] }
  0x57   : > { %v2211_v55 = vor.u32 %v2210_v45, %v2206_v13  ;;  %v2219_v58 = vshrl.u32 %v5825_v6, 16  ;;  %v2222_v62 = vshll.u32 %v5825_v6, 16  ;;  %v1353_v13 = vld [vmem:[%s7586_s11 + $0x28] sm:$0xf]  ;;  %v1568_v6 = vshll.u32 %v1352_v0, 16 }
  0x58   : > { %v2235_v45 = vor.u32 %v2234_v23, %v2230_v11  ;;  %v1578_v48 = vshrl.u32 %v1353_v13, 16  ;;  %v1592_v23 = vshll.u32 %v1355_v63, 16 }
  0x59   : > { %v2212_v1 = vrot.slane %v2211_v55, 4  ;;  %v2221_v4 = vrot.slane %v2219_v58, 4  ;;  %v2224_v7 = vrot.slane %v2222_v62, 5  ;;  %v1570_v47 = vrot.slane %v1568_v6, 5 }
  0x5a   : > { %v2236_v55 = vrot.slane %v2235_v45, 4  ;;  %v1580_v61 = vrot.slane %v1578_v48, 4  ;;  %v1594_v6 = vrot.slane %v1592_v23, 5 }
  0x5d   : > { %6507 = vmatmul.mubr.msk.bf16.vlgmr.msra.gmra.mrb[0].mxu0 %vm377_vm1, %v7301_v25  ;;  %6575 = vmatmul.mubr.msk.bf16.vlgmr.msra.gmra.mrb[0].mxu1 %vm377_vm1, %v7595_v8  ;;  %v2217_v8 = vsel %vm7737_vm4, %v2212_v1, %v2216_v46  ;;  %v5828_v25 = vld [vmem:[%s7586_s11 + $0x30] sm:$0xf]  ;;  %v1574_v46 = vshll.u32 %v1353_v13, 16  ;;  %v1357_v13 = vld [vmem:[%s7586_s11 + $0x38] sm:$0x1] }
  0x5e   : > { %6607 = vmatpush3.bf16.msra.mxu0 %v7683_v35  ;;  %6675 = vmatpush3.bf16.msra.mxu1 %v7687_v37  ;;  %v1558_v35 = vrot.slane %v1557_v2, 4  ;;  %v2238_v37 = vshll.u32 %v5827_v60, 16  ;;  %v7801_v19 = vcombine.low %v2207_v59, %v2217_v8  ;;  %v2243_v53 = vshrl.u32 %v5828_v25, 16 }
  0x5f   : > { %6510 = vmatprep.mubr.msk.bf16.mxu0 %vm377_vm1, %v7302_v49  ;;  %6578 = vmatprep.mubr.msk.bf16.mxu1 %vm377_vm1, %v7610_v14  ;;  %v2225_v14 = vor.u32 %v2224_v7, %v2221_v4  ;;  %v1576_v56 = vrot.slane %v1574_v46, 5  ;;  %v2246_v58 = vshll.u32 %v5828_v25, 16  ;;  %v1571_v59 = vor.u32 %v1570_v47, %v1567_v36  ;;  %v5832_v46 = vld [vmem:[%s7586_s11 + $0x40] sm:$0xf] }
  0x60   : > { %7203 = vmatprep.subr.msk.bf16.mxu0 %vm426_vm0, %v7692_v38  ;;  %7205 = vmatprep.subr.msk.bf16.mxu1 %vm426_vm0, %v7699_v39  ;;  %v1354_v38 = vld [vmem:[%s7586_s11 + $0x2c] sm:$0x1]  ;;  %v1563_v31 = vsel %vm7737_vm4, %v1558_v35, %v1562_v3  ;;  %v2240_v33 = vrot.slane %v2238_v37, 5  ;;  %v2245_v62 = vrot.slane %v2243_v53, 4  ;;  %v2252_v2 = vshll.u32 %v5829_v51, 16 }
  0x61   : > { %v7810_v42 = vcombine.low %v1553_v21, %v1563_v31  ;;  %v2226_v39 = vrot.slane %v2225_v14, 4  ;;  %v1584_v49 = vshll.u32 %v1354_v38, 16  ;;  %v2248_v1 = vrot.slane %v2246_v58, 5 }
  0x62   : > { %v2241_v0 = vsel %vm7737_vm4, %v2236_v55, %v2240_v33  ;;  %v1572_v4 = vrot.slane %v1571_v59, 4  ;;  %v1581_v5 = vor.u32 %v1580_v61, %v1576_v56  ;;  %v2262_v7 = vshll.u32 %v5830_v57, 16  ;;  %v5831_v33 = vld [vmem:[%s7586_s11 + $0x3c] sm:$0xf] }
  0x63   : > { %v2231_v54 = vsel %vm7737_vm4, %v2226_v39, %v2230_v11  ;;  %v1586_v60 = vrot.slane %v1584_v49, 5  ;;  %v1356_v11 = vld [vmem:[%s7586_s11 + $0x34] sm:$0xf]  ;;  %v2249_v8 = vor.u32 %v2248_v1, %v2245_v62  ;;  %v2254_v35 = vrot.slane %v2252_v2, 5  ;;  %v1359_v2 = vld [vmem:[%s7586_s11 + $0x40] sm:$0xf] }
  0x64   : > { %v7825_v3 = vcombine.low %v2231_v54, %v2241_v0  ;;  %v1582_v21 = vrot.slane %v1581_v5, 4  ;;  %v2264_v14 = vrot.slane %v2262_v7, 5  ;;  %v1598_v31 = vshll.u32 %v1356_v11, 16 }
  0x65   : > { %6511 = vmatmul.mubr.msk.bf16.gmra.mrb[4].mxu0 %vm377_vm1, %v7303_v17  ;;  %6579 = vmatmul.mubr.msk.bf16.gmra.mrb[4].mxu1 %vm377_vm1, %v7618_v16  ;;  %v2256_v16 = vshrl.u32 %v5829_v51, 16  ;;  %v1577_v17 = vsel %vm7737_vm4, %v1572_v4, %v1576_v56  ;;  %v2250_v38 = vrot.slane %v2249_v8, 4  ;;  %v1602_v39 = vshrl.u32 %v1356_v11, 16  ;;  %v5833_v56 = vld [vmem:[%s7586_s11 + $0x44] sm:$0x1] }
  0x66   : > { %6514 = vmatprep.mubr.msk.bf16.mxu0 %vm377_vm1, %v7304_v29  ;;  %6582 = vmatprep.mubr.msk.bf16.mxu1 %vm377_vm1, %v7624_v18  ;;  %v1589_v18 = vshrl.u32 %v1355_v63, 16  ;;  %v1587_v36 = vsel %vm7737_vm4, %v1582_v21, %v1586_v60  ;;  %v1608_v45 = vshll.u32 %v1357_v13, 16  ;;  %v1600_v51 = vrot.slane %v1598_v31, 5  ;;  %v7308_v11 = vld [vmem:[%s7586_s11 + $0x60] sm:$0xff]   ;;  %v5835_v31 = vld [vmem:[%s7586_s11 + $0x4c] sm:$0xf] }
  0x67   : > { %v2258_v37 = vrot.slane %v2256_v16, 4  ;;  %v7838_v47 = vcombine.low %v1577_v17, %v1587_v36  ;;  %v2255_v48 = vsel %vm7737_vm4, %v2250_v38, %v2254_v35  ;;  %v1604_v54 = vrot.slane %v1602_v39, 4  ;;  %v7307_v16 = vld [vmem:[%s7586_s11 + $0x54] sm:$0xff]   ;;  %v1360_v17 = vld [vmem:[%s7586_s11 + $0x44] sm:$0x1] }
  0x68   : > { %v1591_v29 = vrot.slane %v1589_v18, 4  ;;  %v1610_v55 = vrot.slane %v1608_v45, 5  ;;  %v2267_v57 = vshrl.u32 %v5831_v33, 16  ;;  %v2270_v59 = vshll.u32 %v5831_v33, 16 }
  0x69   : > { %v2259_v25 = vor.u32 %v2258_v37, %v2254_v35  ;;  %v2276_v61 = vshll.u32 %v5832_v46, 16  ;;  %v2280_v60 = vshrl.u32 %v5832_v46, 16  ;;  %v1605_v0 = vor.u32 %v1604_v54, %v1600_v51  ;;  %v5836_v54 = vld [vmem:[%s7586_s11 + $0x50] sm:$0x1] }
  0x6a   : > { %v1595_v53 = vor.u32 %v1594_v6, %v1591_v29  ;;  %v2269_v1 = vrot.slane %v2267_v57, 4  ;;  %v2272_v4 = vrot.slane %v2270_v59, 5  ;;  %v2286_v7 = vshll.u32 %v5833_v56, 16  ;;  %v1361_v56 = vld [vmem:[%s7586_s11 + $0x48] sm:$0xf] }
  0x6b   : > { %v2260_v49 = vrot.slane %v2259_v25, 4  ;;  %v2278_v5 = vrot.slane %v2276_v61, 5  ;;  %v1606_v8 = vrot.slane %v1605_v0, 4  ;;  %v1622_v21 = vshll.u32 %v1359_v2, 16 }
  0x6c   : > { %v1596_v63 = vrot.slane %v1595_v53, 4  ;;  %v2273_v13 = vor.u32 %v2272_v4, %v2269_v1  ;;  %v1626_v29 = vshrl.u32 %v1359_v2, 16  ;;  %v2304_v1 = vshrl.u32 %v5835_v31, 16  ;;  %v7310_v2 = vld [vmem:[%s7586_s11 + $0x78] sm:$0xff]  }
  0x6d   : > { %6515 = vmatmul.mubr.msk.bf16.gmra.mrb[8].mxu0 %vm377_vm1, %v7305_v12  ;;  %6583 = vmatmul.mubr.msk.bf16.gmra.mrb[8].mxu1 %vm377_vm1, %v7634_v20  ;;  %v2265_v58 = vsel %vm7737_vm4, %v2260_v49, %v2264_v14  ;;  %v1358_v20 = vld [vmem:[%s7586_s11 + $0x3c] sm:$0xf]  ;;  %v5834_v14 = vld [vmem:[%s7586_s11 + $0x48] sm:$0xf]  ;;  %v1611_v23 = vsel %vm7737_vm4, %v1606_v8, %v1610_v55  ;;  %v1624_v39 = vrot.slane %v1622_v21, 5  ;;  %v2300_v55 = vshll.u32 %v5835_v31, 16 }
  0x6e   : > { %6518 = vmatprep.mubr.msk.bf16.mxu0 %vm377_vm1, %v7306_v15  ;;  %6586 = vmatprep.mubr.msk.bf16.mxu1 %vm377_vm1, %v7638_v22  ;;  %v7851_v62 = vcombine.low %v2255_v48, %v2265_v58  ;;  %v2282_v22 = vrot.slane %v2280_v60, 4  ;;  %v1601_v12 = vsel %vm7737_vm4, %v1596_v63, %v1600_v51  ;;  %v1613_v35 = vshrl.u32 %v1358_v20, 16  ;;  %v1362_v60 = vld [vmem:[%s7586_s11 + $0x4c] sm:$0xf] }
  0x6f   : > { %v1616_v37 = vshll.u32 %v1358_v20, 16  ;;  %v2288_v15 = vrot.slane %v2286_v7, 5  ;;  %v7864_v33 = vcombine.low %v1601_v12, %v1611_v23  ;;  %v2274_v36 = vrot.slane %v2273_v13, 4 }
  0x70   : > { %v2283_v18 = vor.u32 %v2282_v22, %v2278_v5  ;;  %v1615_v38 = vrot.slane %v1613_v35, 4  ;;  %v1628_v46 = vrot.slane %v1626_v29, 4  ;;  %v1632_v48 = vshll.u32 %v1360_v17, 16  ;;  %v1363_v22 = vld [vmem:[%s7586_s11 + $0x50] sm:$0x1] }
  0x71   : > { %v1618_v25 = vrot.slane %v1616_v37, 5  ;;  %v2291_v49 = vshrl.u32 %v5834_v14, 16  ;;  %v2279_v51 = vsel %vm7737_vm4, %v2274_v36, %v2278_v5  ;;  %v2302_v0 = vrot.slane %v2300_v55, 5  ;;  %v5837_v37 = vld [vmem:[%s7586_s11 + $0x54] sm:$0xf]  ;;  %v7311_v55 = vld [vmem:[%s7586_s11 + $0x84] sm:$0xff]  }
  0x72   : > { %v2284_v6 = vrot.slane %v2283_v18, 4  ;;  %v1629_v59 = vor.u32 %v1628_v46, %v1624_v39  ;;  %v1634_v61 = vrot.slane %v1632_v48, 5  ;;  %v2310_v5 = vshll.u32 %v5836_v54, 16  ;;  %v5839_v48 = vld [vmem:[%s7586_s11 + $0x5c] sm:$0x1] }
  0x73   : > { %v1619_v45 = vor.u32 %v1618_v25, %v1615_v38  ;;  %v2293_v20 = vrot.slane %v2291_v49, 4  ;;  %v1637_v7 = vshrl.u32 %v1361_v56, 16  ;;  %v2306_v12 = vrot.slane %v2304_v1, 4  ;;  %v5838_v25 = vld [vmem:[%s7586_s11 + $0x58] sm:$0xf] }
  0x74   : > { %v2289_v53 = vsel %vm7737_vm4, %v2284_v6, %v2288_v15  ;;  %v1630_v4 = vrot.slane %v1629_v59, 4  ;;  %v1640_v8 = vshll.u32 %v1361_v56, 16  ;;  %v1646_v35 = vshll.u32 %v1362_v60, 16 }
  0x75   : > { %6519 = vmatmul.mubr.msk.bf16.gmra.mrb[12].mxu0 %vm377_vm1, %v7307_v16  ;;  %6587 = vmatmul.mubr.msk.bf16.gmra.mrb[12].mxu1 %vm377_vm1, %v7648_v24  ;;  %v2294_v24 = vshll.u32 %v5834_v14, 16  ;;  %v7877_v57 = vcombine.low %v2279_v51, %v2289_v53  ;;  %v1620_v58 = vrot.slane %v1619_v45, 4  ;;  %v2312_v18 = vrot.slane %v2310_v5, 5 }
  0x76   : > { %6522 = vmatprep.mubr.msk.bf16.mxu0 %vm377_vm1, %v7308_v11  ;;  %6590 = vmatprep.mubr.msk.bf16.mxu1 %vm377_vm1, %v7652_v26  ;;  %v7309_v26 = vld [vmem:[%s7586_s11 + $0x6c] sm:$0xff]   ;;  %v1635_v13 = vsel %vm7737_vm4, %v1630_v4, %v1634_v61  ;;  %v1639_v15 = vrot.slane %v1637_v7, 4  ;;  %v1650_v17 = vshrl.u32 %v1362_v60, 16  ;;  %v2307_v23 = vor.u32 %v2306_v12, %v2302_v0  ;;  %v1365_v61 = vld [vmem:[%s7586_s11 + $0x58] sm:$0xf] }
  0x77   : > { %v2296_v63 = vrot.slane %v2294_v24, 5  ;;  %v1625_v16 = vsel %vm7737_vm4, %v1620_v58, %v1624_v39  ;;  %v1642_v38 = vrot.slane %v1640_v8, 5  ;;  %v1648_v29 = vrot.slane %v1646_v35, 5  ;;  %v1364_v24 = vld [vmem:[%s7586_s11 + $0x54] sm:$0xf] }
  0x78   : > { %v7889_v21 = vcombine.low %v1625_v16, %v1635_v13  ;;  %v1652_v31 = vrot.slane %v1650_v17, 4  ;;  %v1656_v36 = vshll.u32 %v1363_v22, 16  ;;  %v2315_v6 = vshrl.u32 %v5837_v37, 16  ;;  %v7312_v60 = vld [vmem:[%s7586_s11 + $0x90] sm:$0xff]   ;;  %v1366_v4 = vld [vmem:[%s7586_s11 + $0x5c] sm:$0x1] }
  0x79   : > { %v2297_v11 = vor.u32 %v2296_v63, %v2293_v20  ;;  %v2308_v45 = vrot.slane %v2307_v23, 4  ;;  %v1643_v46 = vor.u32 %v1642_v38, %v1639_v15  ;;  %v2324_v54 = vshll.u32 %v5838_v25, 16  ;;  %v5840_v8 = vld [vmem:[%s7586_s11 + $0x60] sm:$0xf]  ;;  %v5841_v15 = vld [vmem:[%s7586_s11 + $0x64] sm:$0xf] }
  0x7a   : > { %v1653_v49 = vor.u32 %v1652_v31, %v1648_v29  ;;  %v1658_v51 = vrot.slane %v1656_v36, 5  ;;  %v2317_v53 = vrot.slane %v2315_v6, 4  ;;  %v2328_v59 = vshrl.u32 %v5838_v25, 16  ;;  %v5842_v31 = vld [vmem:[%s7586_s11 + $0x68] sm:$0x1] }
  0x7b   : > { %v2298_v14 = vrot.slane %v2297_v11, 4  ;;  %v2313_v56 = vsel %vm7737_vm4, %v2308_v45, %v2312_v18  ;;  %v2326_v63 = vrot.slane %v2324_v54, 5  ;;  %v1661_v5 = vshrl.u32 %v1364_v24, 16  ;;  %v1368_v54 = vld [vmem:[%s7586_s11 + $0x64] sm:$0xf] }
  0x7c   : > { %v1654_v20 = vrot.slane %v1653_v49, 4  ;;  %v2330_v16 = vrot.slane %v2328_v59, 4  ;;  %v1664_v11 = vshll.u32 %v1364_v24, 16  ;;  %v1670_v12 = vshll.u32 %v1365_v61, 16  ;;  %v7314_v24 = vld [vmem:[%s7586_s11 + $0xa8] sm:$0xff]  }
  0x7d   : > { %6523 = vmatmul.mubr.msk.bf16.gmra.mrb[16].mxu0 %vm377_vm1, %v7309_v26  ;;  %6591 = vmatmul.mubr.msk.bf16.gmra.mrb[16].mxu1 %vm377_vm1, %v7662_v28  ;;  %v2303_v39 = vsel %vm7737_vm4, %v2298_v14, %v2302_v0  ;;  %v2318_v28 = vshll.u32 %v5837_v37, 16  ;;  %v2334_v0 = vshll.u32 %v5839_v48, 16  ;;  %v1663_v18 = vrot.slane %v1661_v5, 4  ;;  %v1367_v48 = vld [vmem:[%s7586_s11 + $0x60] sm:$0xf] }
  0x7e   : > { %6526 = vmatprep.mubr.msk.bf16.mxu0 %vm377_vm1, %v7310_v2  ;;  %6594 = vmatprep.mubr.msk.bf16.mxu1 %vm377_vm1, %v7666_v30  ;;  %v1644_v30 = vrot.slane %v1643_v46, 4  ;;  %v7906_v26 = vcombine.low %v2303_v39, %v2313_v56  ;;  %v1659_v22 = vsel %vm7737_vm4, %v1654_v20, %v1658_v51  ;;  %v2331_v13 = vor.u32 %v2330_v16, %v2326_v63 }
  0x7f   : > { %v2320_v58 = vrot.slane %v2318_v28, 5  ;;  %v2336_v7 = vrot.slane %v2334_v0, 5  ;;  %v1666_v17 = vrot.slane %v1664_v11, 5  ;;  %v1672_v14 = vrot.slane %v1670_v12, 5  ;;  %v7313_v28 = vld [vmem:[%s7586_s11 + $0x9c] sm:$0xff]  }
  0x80   : > { %v1649_v1 = vsel %vm7737_vm4, %v1644_v30, %v1648_v29  ;;  %v1674_v23 = vshrl.u32 %v1365_v61, 16  ;;  %v1680_v38 = vshll.u32 %v1366_v4, 16  ;;  %v2332_v29 = vrot.slane %v2331_v13, 4  ;;  %v5843_v11 = vld [vmem:[%s7586_s11 + $0x6c] sm:$0xf] }
  0x81   : > { %v2321_v2 = vor.u32 %v2320_v58, %v2317_v53  ;;  %v7915_v35 = vcombine.low %v1649_v1, %v1659_v22  ;;  %v2339_v36 = vshrl.u32 %v5840_v8, 16  ;;  %v1667_v6 = vor.u32 %v1666_v17, %v1663_v18  ;;  %v1369_v1 = vld [vmem:[%s7586_s11 + $0x68] sm:$0x1]  ;;  %v5844_v18 = vld [vmem:[%s7586_s11 + $0x70] sm:$0xf] }
  0x82   : > { %v1676_v39 = vrot.slane %v1674_v23, 4  ;;  %v1682_v45 = vrot.slane %v1680_v38, 5  ;;  %v2348_v46 = vshll.u32 %v5841_v15, 16  ;;  %v2337_v49 = vsel %vm7737_vm4, %v2332_v29, %v2336_v7 }
  0x83   : > { %v2322_v37 = vrot.slane %v2321_v2, 4  ;;  %v2352_v53 = vshrl.u32 %v5841_v15, 16  ;;  %v1668_v56 = vrot.slane %v1667_v6, 4  ;;  %v1685_v20 = vshrl.u32 %v1367_v48, 16 }
  0x84   : > { %v1677_v30 = vor.u32 %v1676_v39, %v1672_v14  ;;  %v2350_v58 = vrot.slane %v2348_v46, 5  ;;  %v1688_v2 = vshll.u32 %v1367_v48, 16  ;;  %v1694_v16 = vshll.u32 %v1368_v54, 16 }
  0x85   : > { %6527 = vmatmul.mubr.msk.bf16.gmra.mrb[20].mxu0 %vm377_vm1, %v7311_v55  ;;  %6595 = vmatmul.mubr.msk.bf16.gmra.mrb[20].mxu1 %vm377_vm1, %v7676_v32  ;;  %v2327_v25 = vsel %vm7737_vm4, %v2322_v37, %v2326_v63  ;;  %v2342_v32 = vshll.u32 %v5840_v8, 16  ;;  %v2354_v61 = vrot.slane %v2352_v53, 4  ;;  %v1673_v63 = vsel %vm7737_vm4, %v1668_v56, %v1672_v14 }
  0x86   : > { %6530 = vmatprep.mubr.msk.bf16.mxu0 %vm377_vm1, %v7312_v60  ;;  %6598 = vmatprep.mubr.msk.bf16.mxu1 %vm377_vm1, %v7680_v34  ;;  %v2341_v34 = vrot.slane %v2339_v36, 4  ;;  %v7932_v55 = vcombine.low %v2327_v25, %v2337_v49  ;;  %v2358_v60 = vshll.u32 %v5842_v31, 16  ;;  %v1678_v0 = vrot.slane %v1677_v30, 4  ;;  %v5845_v25 = vld [vmem:[%s7586_s11 + $0x74] sm:$0x1] }
  0x87   : > { %v2344_v51 = vrot.slane %v2342_v32, 5  ;;  %v2355_v5 = vor.u32 %v2354_v61, %v2350_v58  ;;  %v1687_v7 = vrot.slane %v1685_v20, 4  ;;  %v1690_v8 = vrot.slane %v1688_v2, 5  ;;  %v7315_v36 = vld [vmem:[%s7586_s11 + $0xb4] sm:$0xff]  }
  0x88   : > { %v2360_v22 = vrot.slane %v2358_v60, 5  ;;  %v1683_v12 = vsel %vm7737_vm4, %v1678_v0, %v1682_v45  ;;  %v1696_v37 = vrot.slane %v1694_v16, 5  ;;  %v1698_v13 = vshrl.u32 %v1368_v54, 16  ;;  %v1370_v45 = vld [vmem:[%s7586_s11 + $0x6c] sm:$0xf] }
  0x89   : > { %v2345_v59 = vor.u32 %v2344_v51, %v2341_v34  ;;  %v7947_v15 = vcombine.low %v1673_v63, %v1683_v12  ;;  %v1704_v14 = vshll.u32 %v1369_v1, 16  ;;  %v1691_v23 = vor.u32 %v1690_v8, %v1687_v7  ;;  %v1371_v34 = vld [vmem:[%s7586_s11 + $0x70] sm:$0xf]  ;;  %v1372_v63 = vld [vmem:[%s7586_s11 + $0x74] sm:$0x1] }
  0x8a   : > { %v1700_v38 = vrot.slane %v1698_v13, 4  ;;  %v2363_v29 = vshrl.u32 %v5843_v11, 16  ;;  %v2366_v31 = vshll.u32 %v5843_v11, 16  ;;  %v2372_v39 = vshll.u32 %v5844_v18, 16  ;;  %v5846_v1 = vld [vmem:[%s7586_s11 + $0x78] sm:$0xf] }
  0x8b   : > { %v2346_v4 = vrot.slane %v2345_v59, 4  ;;  %v1706_v6 = vrot.slane %v1704_v14, 5  ;;  %v1692_v48 = vrot.slane %v1691_v23, 4  ;;  %v1712_v59 = vshll.u32 %v1370_v45, 16 }
  0x8c   : > { %v2365_v49 = vrot.slane %v2363_v29, 4  ;;  %v2368_v51 = vrot.slane %v2366_v31, 5  ;;  %v2374_v53 = vrot.slane %v2372_v39, 5  ;;  %v1718_v0 = vshll.u32 %v1371_v34, 16 }
  0x8d   : > { %6531 = vmatmul.mubr.msk.bf16.gmra.mrb[24].mxu0 %vm377_vm1, %v7313_v28  ;;  %6599 = vmatmul.mubr.msk.bf16.gmra.mrb[24].mxu1 %vm377_vm1, %v7706_v40  ;;  %v2351_v17 = vsel %vm7737_vm4, %v2346_v4, %v2350_v58  ;;  %v2356_v40 = vrot.slane %v2355_v5, 4  ;;  %v1701_v28 = vor.u32 %v1700_v38, %v1696_v37  ;;  %v1697_v56 = vsel %vm7737_vm4, %v1692_v48, %v1696_v37  ;;  %v1373_v38 = vld [vmem:[%s7586_s11 + $0x78] sm:$0xf]  ;;  %v1375_v48 = vld [vmem:[%s7586_s11 + $0x80] sm:$0x1] }
  0x8e   : > { %6534 = vmatprep.mubr.msk.bf16.mxu0 %vm377_vm1, %v7314_v24  ;;  %6602 = vmatprep.mubr.msk.bf16.mxu1 %vm377_vm1, %v7714_v43  ;;  %v2376_v43 = vshrl.u32 %v5844_v18, 16  ;;  %v2382_v24 = vshll.u32 %v5845_v25, 16  ;;  %v1709_v58 = vshrl.u32 %v1370_v45, 16  ;;  %v2369_v61 = vor.u32 %v2368_v51, %v2365_v49 }
  0x8f   : > { %v2361_v32 = vsel %vm7737_vm4, %v2356_v40, %v2360_v22  ;;  %v1702_v30 = vrot.slane %v1701_v28, 4  ;;  %v1714_v4 = vrot.slane %v1712_v59, 5  ;;  %v1722_v5 = vshrl.u32 %v1371_v34, 16  ;;  %v5847_v22 = vld [vmem:[%s7586_s11 + $0x7c] sm:$0xf] }
  0x90   : > { %v7956_v46 = vcombine.low %v2351_v17, %v2361_v32  ;;  %v2378_v54 = vrot.slane %v2376_v43, 4  ;;  %v2384_v20 = vrot.slane %v2382_v24, 5  ;;  %v1711_v16 = vrot.slane %v1709_v58, 4  ;;  %v5848_v40 = vld [vmem:[%s7586_s11 + $0x80] sm:$0x1] }
  0x91   : > { %v1707_v2 = vsel %vm7737_vm4, %v1702_v30, %v1706_v6  ;;  %v2370_v11 = vrot.slane %v2369_v61, 4  ;;  %v1728_v37 = vshll.u32 %v1372_v63, 16  ;;  %v2387_v13 = vshrl.u32 %v5846_v1, 16  ;;  %v1374_v32 = vld [vmem:[%s7586_s11 + $0x7c] sm:$0xf] }
  0x92   : > { %v2379_v60 = vor.u32 %v2378_v54, %v2374_v53  ;;  %v7973_v7 = vcombine.low %v1697_v56, %v1707_v2  ;;  %v1715_v8 = vor.u32 %v1714_v4, %v1711_v16  ;;  %v2390_v14 = vshll.u32 %v5846_v1, 16  ;;  %v7993_v58 = vld [vmem:[%s9104_s1 + $0x4] sm:$0x3]  ;;  %v5850_v2 = vld [vmem:[%s7586_s11 + $0x88] sm:$0xf] }
  0x93   : > { %v2375_v18 = vsel %vm7737_vm4, %v2370_v11, %v2374_v53  ;;  %v2396_v23 = vshll.u32 %v5847_v22, 16  ;;  %v2389_v6 = vrot.slane %v2387_v13, 4  ;;  %v2400_v45 = vshrl.u32 %v5847_v22, 16  ;;  %v5849_v53 = vld [vmem:[%s7586_s11 + $0x84] sm:$0xf] }
  0x94   : > { %v2380_v12 = vrot.slane %v2379_v60, 4  ;;  %v1716_v29 = vrot.slane %v1715_v8, 4  ;;  %v2392_v39 = vrot.slane %v2390_v14, 5  ;;  %v2406_v34 = vshll.u32 %v5848_v40, 16 }
  0x95   : > { %6535 = vmatmul.mubr.msk.bf16.gmra.mrb[28].mxu0 %vm377_vm1, %v7315_v36  ;;  %6603 = vmatmul.mubr.msk.bf16.gmra.mrb[28].mxu1 %vm377_vm1, %v7743_v27  ;;  %v1720_v27 = vrot.slane %v1718_v0, 5  ;;  %v1730_v36 = vrot.slane %v1728_v37, 5  ;;  %v2398_v43 = vrot.slane %v2396_v23, 5  ;;  %v1733_v51 = vshrl.u32 %v1373_v38, 16 }
  0x96   : > { %6608 = vmatprep.mubr.msk.bf16.mxu0 %vm377_vm1, %v7753_v52  ;;  %6676 = vmatprep.mubr.msk.bf16.mxu1 %vm377_vm1, %v7768_v9  ;;  %v1724_v52 = vrot.slane %v1722_v5, 4  ;;  %v2385_v17 = vsel %vm7737_vm4, %v2380_v12, %v2384_v20  ;;  %v2393_v54 = vor.u32 %v2392_v39, %v2389_v6  ;;  %v2402_v24 = vrot.slane %v2400_v45, 4  ;;  %v8003_v20 = vld [vmem:[%s9104_s1 + $0x10] sm:$0x3]  ;;  %v5851_v12 = vld [vmem:[%s7586_s11 + $0x8c] sm:$0x1] }
  0x97   : > { %v7981_v25 = vcombine.low %v2375_v18, %v2385_v17  ;;  %v1721_v28 = vsel %vm7737_vm4, %v1716_v29, %v1720_v27  ;;  %v1736_v56 = vshll.u32 %v1373_v38, 16  ;;  %v1742_v30 = vshll.u32 %v1374_v32, 16  ;;  %v1376_v18 = vld [vmem:[%s7586_s11 + $0x84] sm:$0xf]  ;;  %v1377_v38 = vld [vmem:[%s7586_s11 + $0x88] sm:$0xf] }
  0x98   : > { %v1725_v31 = vor.u32 %v1724_v52, %v1720_v27  ;;  %v2408_v61 = vrot.slane %v2406_v34, 5  ;;  %v1746_v60 = vshrl.u32 %v1374_v32, 16  ;;  %v2394_v63 = vrot.slane %v2393_v54, 4  ;;  %v1378_v45 = vld [vmem:[%s7586_s11 + $0x8c] sm:$0x1] }
  0x99   : > { %v2403_v0 = vor.u32 %v2402_v24, %v2398_v43  ;;  %v1738_v1 = vrot.slane %v1736_v56, 5  ;;  %v1744_v16 = vrot.slane %v1742_v30, 5  ;;  %v1752_v5 = vshll.u32 %v1375_v48, 16  ;;  %v5853_v30 = vld [vmem:[%s7586_s11 + $0x94] sm:$0xf] }
  0x9a   : > { %v1726_v49 = vrot.slane %v1725_v31, 4  ;;  %v1748_v4 = vrot.slane %v1746_v60, 4  ;;  %v2411_v22 = vshrl.u32 %v5849_v53, 16  ;;  %v2414_v27 = vshll.u32 %v5849_v53, 16 }
  0x9b   : > { %v1754_v52 = vrot.slane %v1752_v5, 5  ;;  %v2420_v13 = vshll.u32 %v5850_v2, 16  ;;  %v2424_v23 = vshrl.u32 %v5850_v2, 16  ;;  %v2430_v32 = vshll.u32 %v5851_v12, 16 }
  0x9c   : > { %v1731_v59 = vsel %vm7737_vm4, %v1726_v49, %v1730_v36  ;;  %v1749_v8 = vor.u32 %v1748_v4, %v1744_v16  ;;  %v2413_v37 = vrot.slane %v2411_v22, 4  ;;  %v2416_v14 = vrot.slane %v2414_v27, 5 }
  0x9d   : > { %6609 = vmatmul.mubr.msk.bf16.vlgmr.msra.gmra.mrb[0].mxu0 %vm377_vm1, %v7779_v50  ;;  %6677 = vmatmul.mubr.msk.bf16.vlgmr.msra.gmra.mrb[0].mxu1 %vm377_vm1, %v7801_v19  ;;  %v1735_v50 = vrot.slane %v1733_v51, 4  ;;  %v2422_v36 = vrot.slane %v2420_v13, 5  ;;  %v1757_v48 = vshrl.u32 %v1376_v18, 16  ;;  %v2432_v49 = vrot.slane %v2430_v32, 5  ;;  %v5852_v51 = vld [vmem:[%s7586_s11 + $0x90] sm:$0xf] }
  0x9e   : > { %6641 = vmatpush3.bf16.msra.mxu0 %v7710_v41  ;;  %6709 = vmatpush3.bf16.msra.mxu1 %v7718_v44  ;;  %v8008_v41 = vcombine.low %v1721_v28, %v1731_v59  ;;  %v2399_v44 = vsel %vm7737_vm4, %v2394_v63, %v2398_v43  ;;  %v1750_v31 = vrot.slane %v1749_v8, 4  ;;  %v2417_v39 = vor.u32 %v2416_v14, %v2413_v37  ;;  %v1380_v8 = vld [vmem:[%s7586_s11 + $0x94] sm:$0xf] }
  0x9f   : > { %6612 = vmatprep.mubr.msk.bf16.mxu0 %vm377_vm1, %v7810_v42  ;;  %6680 = vmatprep.mubr.msk.bf16.mxu1 %vm377_vm1, %v7825_v3  ;;  %v2404_v42 = vrot.slane %v2403_v0, 4  ;;  %v1739_v11 = vor.u32 %v1738_v1, %v1735_v50  ;;  %v2426_v43 = vrot.slane %v2424_v23, 4  ;;  %v1766_v34 = vshll.u32 %v1377_v38, 16  ;;  %v5854_v0 = vld [vmem:[%s7586_s11 + $0x98] sm:$0x1] }
  0xa0   : > { %7206 = vmatprep.subr.msk.bf16.mxu0 %vm426_vm0, %v7993_v58  ;;  %7208 = vmatprep.subr.msk.bf16.mxu1 %vm426_vm0, %v8003_v20  ;;  %v1755_v28 = vsel %vm7737_vm4, %v1750_v31, %v1754_v52  ;;  %v2418_v54 = vrot.slane %v2417_v39, 4  ;;  %v1759_v56 = vrot.slane %v1757_v48, 4  ;;  %v1776_v50 = vshll.u32 %v1378_v45, 16  ;;  %v5855_v48 = vld [vmem:[%s7586_s11 + $0x9c] sm:$0xf] }
  0xa1   : > { %v2409_v17 = vsel %vm7737_vm4, %v2404_v42, %v2408_v61  ;;  %v1740_v40 = vrot.slane %v1739_v11, 4  ;;  %v2427_v24 = vor.u32 %v2426_v43, %v2422_v36  ;;  %v1770_v61 = vshrl.u32 %v1377_v38, 16 }
  0xa2   : > { %v8024_v29 = vcombine.low %v2399_v44, %v2409_v17  ;;  %v2423_v60 = vsel %vm7737_vm4, %v2418_v54, %v2422_v36  ;;  %v2435_v1 = vshrl.u32 %v5852_v51, 16  ;;  %v2438_v2 = vshll.u32 %v5852_v51, 16  ;;  %v1379_v44 = vld [vmem:[%s7586_s11 + $0x90] sm:$0xf]  ;;  %v1381_v36 = vld [vmem:[%s7586_s11 + $0x98] sm:$0x1] }
  0xa3   : > { %v1745_v6 = vsel %vm7737_vm4, %v1740_v40, %v1744_v16  ;;  %v2428_v63 = vrot.slane %v2427_v24, 4  ;;  %v1772_v4 = vrot.slane %v1770_v61, 4  ;;  %v1778_v5 = vrot.slane %v1776_v50, 5 }
  0xa4   : > { %v8040_v53 = vcombine.low %v1745_v6, %v1755_v28  ;;  %v2444_v22 = vshll.u32 %v5853_v30, 16  ;;  %v2437_v11 = vrot.slane %v2435_v1, 4  ;;  %v2440_v12 = vrot.slane %v2438_v2, 5  ;;  %v1382_v2 = vld [vmem:[%s7586_s11 + $0x9c] sm:$0xf] }
  0xa5   : > { %6613 = vmatmul.mubr.msk.bf16.gmra.mrb[4].mxu0 %vm377_vm1, %v7838_v47  ;;  %6681 = vmatmul.mubr.msk.bf16.gmra.mrb[4].mxu1 %vm377_vm1, %v7851_v62  ;;  %v1760_v47 = vshll.u32 %v1376_v18, 16  ;;  %v2433_v42 = vsel %vm7737_vm4, %v2428_v63, %v2432_v49  ;;  %v2448_v27 = vshrl.u32 %v5853_v30, 16  ;;  %v2454_v14 = vshll.u32 %v5854_v0, 16 }
  0xa6   : > { %6616 = vmatprep.mubr.msk.bf16.mxu0 %vm377_vm1, %v7864_v33  ;;  %6684 = vmatprep.mubr.msk.bf16.mxu1 %vm377_vm1, %v7877_v57  ;;  %v1768_v33 = vrot.slane %v1766_v34, 5  ;;  %v8050_v52 = vcombine.low %v2423_v60, %v2433_v42  ;;  %v2446_v18 = vrot.slane %v2444_v22, 5  ;;  %v2441_v17 = vor.u32 %v2440_v12, %v2437_v11  ;;  %v5856_v34 = vld [vmem:[%s7586_s11 + $0xa0] sm:$0xf] }
  0xa7   : > { %v1762_v59 = vrot.slane %v1760_v47, 5  ;;  %v2450_v40 = vrot.slane %v2448_v27, 4  ;;  %v1781_v23 = vshrl.u32 %v1379_v44, 16  ;;  %v1784_v32 = vshll.u32 %v1379_v44, 16  ;;  %v1383_v44 = vld [vmem:[%s7586_s11 + $0xa0] sm:$0xf] }
  0xa8   : > { %v1773_v13 = vor.u32 %v1772_v4, %v1768_v33  ;;  %v1790_v6 = vshll.u32 %v1380_v8, 16  ;;  %v2456_v43 = vrot.slane %v2454_v14, 5  ;;  %v1794_v47 = vshrl.u32 %v1380_v8, 16  ;;  %v1384_v14 = vld [vmem:[%s7586_s11 + $0xa4] sm:$0x1] }
  0xa9   : > { %v1763_v16 = vor.u32 %v1762_v59, %v1759_v56  ;;  %v2451_v39 = vor.u32 %v2450_v40, %v2446_v18  ;;  %v1783_v45 = vrot.slane %v1781_v23, 4  ;;  %v1786_v28 = vrot.slane %v1784_v32, 5 }
  0xaa   : > { %v1774_v31 = vrot.slane %v1773_v13, 4  ;;  %v1792_v49 = vrot.slane %v1790_v6, 5  ;;  %v1800_v56 = vshll.u32 %v1381_v36, 16  ;;  %v1796_v59 = vrot.slane %v1794_v47, 4  ;;  %v5859_v6 = vld [vmem:[%s7586_s11 + $0xac] sm:$0xf] }
  0xab   : > { %v1764_v37 = vrot.slane %v1763_v16, 4  ;;  %v2452_v24 = vrot.slane %v2451_v39, 4  ;;  %v1787_v30 = vor.u32 %v1786_v28, %v1783_v45  ;;  %v2459_v61 = vshrl.u32 %v5855_v48, 16 }
  0xac   : > { %v2462_v50 = vshll.u32 %v5855_v48, 16  ;;  %v1802_v63 = vrot.slane %v1800_v56, 5  ;;  %v2468_v0 = vshll.u32 %v5856_v34, 16  ;;  %v2472_v1 = vshrl.u32 %v5856_v34, 16 }
  0xad   : > { %6617 = vmatmul.mubr.msk.bf16.gmra.mrb[8].mxu0 %vm377_vm1, %v7889_v21  ;;  %6685 = vmatmul.mubr.msk.bf16.gmra.mrb[8].mxu1 %vm377_vm1, %v7906_v26  ;;  %v1769_v38 = vsel %vm7737_vm4, %v1764_v37, %v1768_v33  ;;  %v2442_v21 = vrot.slane %v2441_v17, 4  ;;  %v5857_v33 = vld [vmem:[%s7586_s11 + $0xa4] sm:$0x1]  ;;  %v2457_v60 = vsel %vm7737_vm4, %v2452_v24, %v2456_v43  ;;  %v1788_v4 = vrot.slane %v1787_v30, 4  ;;  %v1385_v30 = vld [vmem:[%s7586_s11 + $0xa8] sm:$0xf] }
  0xae   : > { %6620 = vmatprep.mubr.msk.bf16.mxu0 %vm377_vm1, %v7915_v35  ;;  %6688 = vmatprep.mubr.msk.bf16.mxu1 %vm377_vm1, %v7932_v55  ;;  %v1779_v35 = vsel %vm7737_vm4, %v1774_v31, %v1778_v5  ;;  %v1797_v5 = vor.u32 %v1796_v59, %v1792_v49  ;;  %v2461_v22 = vrot.slane %v2459_v61, 4  ;;  %v2464_v42 = vrot.slane %v2462_v50, 5 }
  0xaf   : > { %v8067_v51 = vcombine.low %v1769_v38, %v1779_v35  ;;  %v2447_v54 = vsel %vm7737_vm4, %v2442_v21, %v2446_v18  ;;  %v2470_v11 = vrot.slane %v2468_v0, 5  ;;  %v2474_v12 = vrot.slane %v2472_v1, 4  ;;  %v5858_v38 = vld [vmem:[%s7586_s11 + $0xa8] sm:$0xf] }
  0xb0   : > { %v8075_v16 = vcombine.low %v2447_v54, %v2457_v60  ;;  %v2478_v27 = vshll.u32 %v5857_v33, 16  ;;  %v1793_v8 = vsel %vm7737_vm4, %v1788_v4, %v1792_v49  ;;  %v1798_v37 = vrot.slane %v1797_v5, 4  ;;  %v5860_v54 = vld [vmem:[%s7586_s11 + $0xb0] sm:$0x1]  ;;  %v1386_v60 = vld [vmem:[%s7586_s11 + $0xac] sm:$0xf] }
  0xb1   : > { %v1805_v13 = vshrl.u32 %v1382_v2, 16  ;;  %v1808_v18 = vshll.u32 %v1382_v2, 16  ;;  %v2475_v17 = vor.u32 %v2474_v12, %v2470_v11  ;;  %v1814_v23 = vshll.u32 %v1383_v44, 16 }
  0xb2   : > { %v2480_v40 = vrot.slane %v2478_v27, 5  ;;  %v1818_v32 = vshrl.u32 %v1383_v44, 16  ;;  %v1824_v28 = vshll.u32 %v1384_v14, 16  ;;  %v2483_v49 = vshrl.u32 %v5858_v38, 16  ;;  %v1387_v44 = vld [vmem:[%s7586_s11 + $0xb0] sm:$0x1] }
  0xb3   : > { %v1807_v31 = vrot.slane %v1805_v13, 4  ;;  %v1810_v36 = vrot.slane %v1808_v18, 5  ;;  %v2476_v43 = vrot.slane %v2475_v17, 4  ;;  %v1816_v45 = vrot.slane %v1814_v23, 5  ;;  %v5862_v23 = vld [vmem:[%s7586_s11 + $0xb8] sm:$0xf] }
  0xb4   : > { %v1820_v35 = vrot.slane %v1818_v32, 4  ;;  %v2486_v24 = vshll.u32 %v5858_v38, 16  ;;  %v2492_v56 = vshll.u32 %v5859_v6, 16  ;;  %v1826_v50 = vrot.slane %v1824_v28, 5 }
  0xb5   : > { %6621 = vmatmul.mubr.msk.bf16.gmra.mrb[12].mxu0 %vm377_vm1, %v7947_v15  ;;  %6689 = vmatmul.mubr.msk.bf16.gmra.mrb[12].mxu1 %vm377_vm1, %v7956_v46  ;;  %v2465_v15 = vor.u32 %v2464_v42, %v2461_v22  ;;  %v1811_v48 = vor.u32 %v1810_v36, %v1807_v31  ;;  %v2481_v34 = vsel %vm7737_vm4, %v2476_v43, %v2480_v40  ;;  %v2496_v2 = vshrl.u32 %v5859_v6, 16  ;;  %v5863_v43 = vld [vmem:[%s7586_s11 + $0xbc] sm:$0x1] }
  0xb6   : > { %6624 = vmatprep.mubr.msk.bf16.mxu0 %vm377_vm1, %v7973_v7  ;;  %6692 = vmatprep.mubr.msk.bf16.mxu1 %vm377_vm1, %v7981_v25  ;;  %v1803_v7 = vsel %vm7737_vm4, %v1798_v37, %v1802_v63  ;;  %v1821_v61 = vor.u32 %v1820_v35, %v1816_v45  ;;  %v2485_v63 = vrot.slane %v2483_v49, 4  ;;  %v2488_v0 = vrot.slane %v2486_v24, 5 }
  0xb7   : > { %v8093_v21 = vcombine.low %v1793_v8, %v1803_v7  ;;  %v2466_v39 = vrot.slane %v2465_v15, 4  ;;  %v1812_v33 = vrot.slane %v1811_v48, 4  ;;  %v2494_v1 = vrot.slane %v2492_v56, 5  ;;  %v5861_v8 = vld [vmem:[%s7586_s11 + $0xb4] sm:$0xf] }
  0xb8   : > { %v1822_v5 = vrot.slane %v1821_v61, 4  ;;  %v2502_v22 = vshll.u32 %v5860_v54, 16  ;;  %v1829_v42 = vshrl.u32 %v1385_v30, 16  ;;  %v1832_v12 = vshll.u32 %v1385_v30, 16  ;;  %v1389_v30 = vld [vmem:[%s7586_s11 + $0xb8] sm:$0xf] }
  0xb9   : > { %v2471_v47 = vsel %vm7737_vm4, %v2466_v39, %v2470_v11  ;;  %v1817_v4 = vsel %vm7737_vm4, %v1812_v33, %v1816_v45  ;;  %v2498_v11 = vrot.slane %v2496_v2, 4  ;;  %v1838_v27 = vshll.u32 %v1386_v60, 16 }
  0xba   : > { %v8101_v59 = vcombine.low %v2471_v47, %v2481_v34  ;;  %v1827_v37 = vsel %vm7737_vm4, %v1822_v5, %v1826_v50  ;;  %v1831_v13 = vrot.slane %v1829_v42, 4  ;;  %v1842_v18 = vshrl.u32 %v1386_v60, 16  ;;  %v1388_v47 = vld [vmem:[%s7586_s11 + $0xb4] sm:$0xf] }
  0xbb   : > { %v5929_v15 = vcombine.low %v1817_v4, %v1827_v37  ;;  %v2499_v40 = vor.u32 %v2498_v11, %v2494_v1  ;;  %v1834_v14 = vrot.slane %v1832_v12, 5  ;;  %v1840_v38 = vrot.slane %v1838_v27, 5  ;;  %v5865_v27 = vld [vmem:[%s7586_s11 + $0xc4] sm:$0xf] }
  0xbc   : > { %v1844_v7 = vrot.slane %v1842_v18, 4  ;;  %v1848_v31 = vshll.u32 %v1387_v44, 16  ;;  %v2507_v36 = vshrl.u32 %v5861_v8, 16  ;;  %v2510_v45 = vshll.u32 %v5861_v8, 16  ;;  %v5864_v44 = vld [vmem:[%s7586_s11 + $0xc0] sm:$0xf] }
  0xbd   : > { %6625 = vmatmul.mubr.msk.bf16.gmra.mrb[16].mxu0 %vm377_vm1, %v8008_v41  ;;  %6693 = vmatmul.mubr.msk.bf16.gmra.mrb[16].mxu1 %vm377_vm1, %v8024_v29  ;;  %v2489_v41 = vor.u32 %v2488_v0, %v2485_v63  ;;  %v2500_v6 = vrot.slane %v2499_v40, 4  ;;  %v1835_v39 = vor.u32 %v1834_v14, %v1831_v13  ;;  %v2516_v49 = vshll.u32 %v5862_v23, 16  ;;  %v5866_v40 = vld [vmem:[%s7586_s11 + $0xc8] sm:$0x1] }
  0xbe   : > { %6628 = vmatprep.mubr.msk.bf16.mxu0 %vm377_vm1, %v8040_v53  ;;  %6696 = vmatprep.mubr.msk.bf16.mxu1 %vm377_vm1, %v8050_v52  ;;  %v2504_v53 = vrot.slane %v2502_v22, 5  ;;  %v1845_v48 = vor.u32 %v1844_v7, %v1840_v38  ;;  %v1850_v35 = vrot.slane %v1848_v31, 5  ;;  %v2509_v28 = vrot.slane %v2507_v36, 4 }
  0xbf   : > { %v2490_v17 = vrot.slane %v2489_v41, 4  ;;  %v1836_v54 = vrot.slane %v1835_v39, 4  ;;  %v2512_v24 = vrot.slane %v2510_v45, 5  ;;  %v2520_v56 = vshrl.u32 %v5862_v23, 16 }
  0xc0   : > { %v2505_v34 = vsel %vm7737_vm4, %v2500_v6, %v2504_v53  ;;  %v1846_v61 = vrot.slane %v1845_v48, 4  ;;  %v2518_v50 = vrot.slane %v2516_v49, 5  ;;  %v1853_v2 = vshrl.u32 %v1388_v47, 16  ;;  %v5868_v48 = vld [vmem:[%s7586_s11 + $0x1c] sm:$0xf] }
  0xc1   : > { %v2495_v32 = vsel %vm7737_vm4, %v2490_v17, %v2494_v1  ;;  %v1841_v60 = vsel %vm7737_vm4, %v1836_v54, %v1840_v38  ;;  %v2513_v63 = vor.u32 %v2512_v24, %v2509_v28  ;;  %v2522_v0 = vrot.slane %v2520_v56, 4  ;;  %v1390_v1 = vld [vmem:[%s7586_s11 + $0xbc] sm:$0x1] }
  0xc2   : > { %v8132_v33 = vcombine.low %v2495_v32, %v2505_v34  ;;  %v1851_v4 = vsel %vm7737_vm4, %v1846_v61, %v1850_v35  ;;  %v1856_v5 = vshll.u32 %v1388_v47, 16  ;;  %v1862_v22 = vshll.u32 %v1389_v30, 16  ;;  %v5867_v32 = vld [vmem:[%s7586_s11 + $0x18] sm:$0xf]  ;;  %v5869_v61 = vld [vmem:[%s7586_s11 + $0x20] sm:$0x1] }
  0xc3   : > { %v5930_v42 = vcombine.low %v1841_v60, %v1851_v4  ;;  %v2514_v41 = vrot.slane %v2513_v63, 4  ;;  %v2523_v11 = vor.u32 %v2522_v0, %v2518_v50  ;;  %v1855_v12 = vrot.slane %v1853_v2, 4  ;;  %v5870_v2 = vld [vmem:[%s7586_s11 + $0x24] sm:$0xf] }
  0xc4   : > { %v1858_v8 = vrot.slane %v1856_v5, 5  ;;  %v1864_v37 = vrot.slane %v1862_v22, 5  ;;  %v1866_v53 = vshrl.u32 %v1389_v30, 16  ;;  %v1872_v13 = vshll.u32 %v1390_v1, 16 }
  0xc5   : > { %6629 = vmatmul.mubr.msk.bf16.gmra.mrb[20].mxu0 %vm377_vm1, %v8067_v51  ;;  %6697 = vmatmul.mubr.msk.bf16.gmra.mrb[20].mxu1 %vm377_vm1, %v8075_v16  ;;  %v2526_v51 = vshll.u32 %v5863_v43, 16  ;;  %v2519_v18 = vsel %vm7737_vm4, %v2514_v41, %v2518_v50  ;;  %v2524_v17 = vrot.slane %v2523_v11, 4  ;;  %v2531_v14 = vshrl.u32 %v5864_v44, 16 }
  0xc6   : > { %6632 = vmatprep.mubr.msk.bf16.mxu0 %vm377_vm1, %v8093_v21  ;;  %6700 = vmatprep.mubr.msk.bf16.mxu1 %vm377_vm1, %v8101_v59  ;;  %v2534_v23 = vshll.u32 %v5864_v44, 16  ;;  %v1859_v38 = vor.u32 %v1858_v8, %v1855_v12  ;;  %v1868_v7 = vrot.slane %v1866_v53, 4  ;;  %v1874_v31 = vrot.slane %v1872_v13, 5  ;;  %v5871_v44 = vld [vmem:[%s7586_s11 + $0x28] sm:$0xf] }
  0xc7   : > { %v2528_v21 = vrot.slane %v2526_v51, 5  ;;  %v2540_v36 = vshll.u32 %v5865_v27, 16  ;;  %v2533_v39 = vrot.slane %v2531_v14, 4  ;;  %v2544_v45 = vshrl.u32 %v5865_v27, 16 }
  0xc8   : > { %v2536_v43 = vrot.slane %v2534_v23, 5  ;;  %v1860_v28 = vrot.slane %v1859_v38, 4  ;;  %v1869_v49 = vor.u32 %v1868_v7, %v1864_v37  ;;  %v2550_v54 = vshll.u32 %v5866_v40, 16 }
  0xc9   : > { %v2529_v6 = vsel %vm7737_vm4, %v2524_v17, %v2528_v21  ;;  %v2542_v47 = vrot.slane %v2540_v36, 5  ;;  %v2546_v34 = vrot.slane %v2544_v45, 4  ;;  %v3047_v24 = vshrl.u32 %v5867_v32, 16  ;;  %v5873_v36 = vld [vmem:[%s7586_s11 + $0x30] sm:$0xf] }
  0xca   : > { %v8154_v35 = vcombine.low %v2519_v18, %v2529_v6  ;;  %v1865_v56 = vsel %vm7737_vm4, %v1860_v28, %v1864_v37  ;;  %v1870_v30 = vrot.slane %v1869_v49, 4  ;;  %v3050_v50 = vshll.u32 %v5867_v32, 16  ;;  %v5872_v37 = vld [vmem:[%s7586_s11 + $0x2c] sm:$0x1]  ;;  %v5874_v45 = vld [vmem:[%s7586_s11 + $0x34] sm:$0xf] }
  0xcb   : > { %v3056_v51 = vshll.u32 %v5868_v48, 16  ;;  %v2547_v63 = vor.u32 %v2546_v34, %v2542_v47  ;;  %v2552_v0 = vrot.slane %v2550_v54, 5  ;;  %v3049_v1 = vrot.slane %v3047_v24, 4  ;;  %v5875_v54 = vld [vmem:[%s7586_s11 + $0x38] sm:$0x1] }
  0xcc   : > { %v1875_v4 = vsel %vm7737_vm4, %v1870_v30, %v1874_v31  ;;  %v3052_v21 = vrot.slane %v3050_v50, 5  ;;  %v3060_v22 = vshrl.u32 %v5868_v48, 16  ;;  %v3066_v12 = vshll.u32 %v5869_v61, 16 }
  0xcd   : > { %6633 = vmatmul.mubr.msk.bf16.gmra.mrb[24].mxu0 %vm377_vm1, %v5929_v15  ;;  %6701 = vmatmul.mubr.msk.bf16.gmra.mrb[24].mxu1 %vm377_vm1, %v8132_v33  ;;  %v2537_v15 = vor.u32 %v2536_v43, %v2533_v39  ;;  %v3058_v5 = vrot.slane %v3056_v51, 5  ;;  %v2548_v11 = vrot.slane %v2547_v63, 4  ;;  %v3071_v53 = vshrl.u32 %v5870_v2, 16  ;;  %v5876_v51 = vld [vmem:[%s7586_s11 + $0x3c] sm:$0xf] }
  0xce   : > { %6636 = vmatprep.mubr.msk.bf16.mxu0 %vm377_vm1, %v5930_v42  ;;  %6704 = vmatprep.mubr.msk.bf16.mxu1 %vm377_vm1, %v8154_v35  ;;  %v5931_v42 = vcombine.low %v1865_v56, %v1875_v4  ;;  %v3053_v27 = vor.u32 %v3052_v21, %v3049_v1  ;;  %v3062_v8 = vrot.slane %v3060_v22, 4  ;;  %v3074_v13 = vshll.u32 %v5870_v2, 16  ;;  %v5877_v1 = vld [vmem:[%s7586_s11 + $0x40] sm:$0xf] }
  0xcf   : > { %v2538_v60 = vrot.slane %v2537_v15, 4  ;;  %v2553_v18 = vsel %vm7737_vm4, %v2548_v11, %v2552_v0  ;;  %v3068_v17 = vrot.slane %v3066_v12, 5  ;;  %v3080_v40 = vshll.u32 %v5871_v44, 16  ;;  %v5879_v12 = vld [vmem:[%s7586_s11 + $0x48] sm:$0xf] }
  0xd0   : > { %v3084_v14 = vshrl.u32 %v5871_v44, 16  ;;  %v3054_v38 = vrot.slane %v3053_v27, 4  ;;  %v3063_v7 = vor.u32 %v3062_v8, %v3058_v5  ;;  %v3073_v31 = vrot.slane %v3071_v53, 4 }
  0xd1   : > { %v2543_v41 = vsel %vm7737_vm4, %v2538_v60, %v2542_v47  ;;  %v3076_v32 = vrot.slane %v3074_v13, 5  ;;  %v3082_v6 = vrot.slane %v3080_v40, 5  ;;  %v3090_v43 = vshll.u32 %v5872_v37, 16  ;;  %v5880_v40 = vld [vmem:[%s7586_s11 + $0x4c] sm:$0xf] }
  0xd2   : > { %v8171_v23 = vcombine.low %v2543_v41, %v2553_v18  ;;  %v3086_v39 = vrot.slane %v3084_v14, 4  ;;  %v3059_v48 = vsel %vm7737_vm4, %v3054_v38, %v3058_v5  ;;  %v3064_v28 = vrot.slane %v3063_v7, 4  ;;  %v8193_v5 = vld [vmem:[%s9104_s1 + $0xa] sm:$0x3]  ;;  %v8212_v14 = vld [vmem:[%s9104_s1 + $0x16] sm:$0x3] }
  0xd3   : > { %v4684_v49 = vsel %vm426_vm0, %v8003_v20, 0  ;;  %v3077_v47 = vor.u32 %v3076_v32, %v3073_v31  ;;  %v3092_v34 = vrot.slane %v3090_v43, 5  ;;  %v3095_v24 = vshrl.u32 %v5873_v36, 16  ;;  %v5881_v31 = vld [vmem:[%s7586_s11 + $0x50] sm:$0x1] }
  0xd4   : > { %v3087_v15 = vor.u32 %v3086_v39, %v3082_v6  ;;  %v3069_v56 = vsel %vm7737_vm4, %v3064_v28, %v3068_v17  ;;  %v3098_v30 = vshll.u32 %v5873_v36, 16  ;;  %v3104_v61 = vshll.u32 %v5874_v45, 16 }
  0xd5   : > { %6637 = vmatmul.mubr.msk.bf16.gmra.mrb[28].mxu0 %vm377_vm1, %v5931_v42  ;;  %6705 = vmatmul.mubr.msk.bf16.gmra.mrb[28].mxu1 %vm377_vm1, %v8171_v23  ;;  %v3108_v50 = vshrl.u32 %v5874_v45, 16  ;;  %v5999_v60 = vcombine.low %v3059_v48, %v3069_v56  ;;  %v3078_v63 = vrot.slane %v3077_v47, 4  ;;  %v3097_v0 = vrot.slane %v3095_v24, 4  ;;  %v5878_v42 = vld [vmem:[%s7586_s11 + $0x44] sm:$0x1] }
  0xd6   : > { %6642 = vmatprep.mubr.msk.bf16.mxu0 %vm377_vm1, %v7768_v9  ;;  %v4032_v9 = vsel %vm426_vm0, %v7993_v58, 0  ;;  %v3088_v58 = vrot.slane %v3087_v15, 4  ;;  %v3100_v20 = vrot.slane %v3098_v30, 5  ;;  %v3106_v2 = vrot.slane %v3104_v61, 5  ;;  %v5882_v45 = vld [vmem:[%s7586_s11 + $0x54] sm:$0xf] }
  0xd7   : > { %v3110_v4 = vrot.slane %v3108_v50, 4  ;;  %v3114_v21 = vshll.u32 %v5875_v54, 16  ;;  %6710 = vmatprep.mubr.msk.bf16.mxu1 %vm377_vm1, %v5999_v60  ;;  %v3083_v22 = vsel %vm7737_vm4, %v3078_v63, %v3082_v6  ;;  %v3119_v41 = vshrl.u32 %v5876_v51, 16  ;;  %v5883_v61 = vld [vmem:[%s7586_s11 + $0x58] sm:$0xf] }
  0xd8   : > { %v3093_v44 = vsel %vm7737_vm4, %v3088_v58, %v3092_v34  ;;  %v3122_v11 = vshll.u32 %v5876_v51, 16  ;;  %v3101_v8 = vor.u32 %v3100_v20, %v3097_v0  ;;  %v3128_v18 = vshll.u32 %v5877_v1, 16  ;;  %v5884_v58 = vld [vmem:[%s7586_s11 + $0x5c] sm:$0x1] }
  0xd9   : > { %v6000_v27 = vcombine.low %v3083_v22, %v3093_v44  ;;  %v3111_v37 = vor.u32 %v3110_v4, %v3106_v2  ;;  %v3121_v53 = vrot.slane %v3119_v41, 4  ;;  %v3132_v17 = vshrl.u32 %v5877_v1, 16 }
  0xda   : > { %v3124_v13 = vrot.slane %v3122_v11, 5  ;;  %v3138_v7 = vshll.u32 %v5878_v42, 16  ;;  %v3143_v36 = vshrl.u32 %v5879_v12, 16  ;;  %v3130_v6 = vrot.slane %v3128_v18, 5 }
  0xdb   : > { %v3112_v38 = vrot.slane %v3111_v37, 4  ;;  %v3134_v39 = vrot.slane %v3132_v17, 4  ;;  %v3146_v43 = vshll.u32 %v5879_v12, 16  ;;  %v3152_v24 = vshll.u32 %v5880_v40, 16 }
  0xdc   : > { %v3125_v32 = vor.u32 %v3124_v13, %v3121_v53  ;;  %v3145_v47 = vrot.slane %v3143_v36, 4  ;;  %v3156_v56 = vshrl.u32 %v5880_v40, 16  ;;  %v3162_v30 = vshll.u32 %v5881_v31, 16  ;;  %v5887_v53 = vld [vmem:[%s7586_s11 + $0x68] sm:$0x1] }
  0xdd   : > { %6643 = vmatmul.mubr.msk.bf16.vlgmr.msra.gmra.mrb[0].mxu0 %vm377_vm1, %v7801_v19  ;;  %v3116_v19 = vrot.slane %v3114_v21, 5  ;;  %6711 = vmatmul.mubr.msk.bf16.vlgmr.msra.gmra.mrb[0].mxu1 %vm377_vm1, %v6000_v27  ;;  %v3135_v34 = vor.u32 %v3134_v39, %v3130_v6  ;;  %v3148_v54 = vrot.slane %v3146_v43, 5  ;;  %v3167_v50 = vshrl.u32 %v5882_v45, 16  ;;  %v5885_v21 = vld [vmem:[%s7586_s11 + $0x60] sm:$0xf] }
  0xde   : > { %6743 = vmatpush3.bf16.msra.mxu0 %v4032_v9  ;;  %6646 = vmatprep.mubr.msk.bf16.mxu0 %vm377_vm1, %v7825_v3  ;;  %v3102_v3 = vrot.slane %v3101_v8, 4  ;;  %v3140_v9 = vrot.slane %v3138_v7, 5  ;;  %v3170_v0 = vshll.u32 %v5882_v45, 16  ;;  %v3154_v1 = vrot.slane %v3152_v24, 5  ;;  %v5886_v8 = vld [vmem:[%s7586_s11 + $0x64] sm:$0xf] }
  0xdf   : > { %7207 = vmatprep.subr.msk.bf16.mxu0 %vm426_vm0, %v8193_v5  ;;  %6811 = vmatpush3.bf16.msra.mxu1 %v4684_v49  ;;  %v3117_v28 = vsel %vm7737_vm4, %v3112_v38, %v3116_v19  ;;  %v3126_v49 = vrot.slane %v3125_v32, 4  ;;  %v3136_v60 = vrot.slane %v3135_v34, 4  ;;  %v3149_v63 = vor.u32 %v3148_v54, %v3145_v47  ;;  %v5888_v32 = vld [vmem:[%s7586_s11 + $0x6c] sm:$0xf] }
  0xe0   : > { %v3107_v48 = vsel %vm7737_vm4, %v3102_v3, %v3106_v2  ;;  %7209 = vmatprep.subr.msk.bf16.mxu1 %vm426_vm0, %v8212_v14  ;;  %v3158_v20 = vrot.slane %v3156_v56, 4  ;;  %v3164_v2 = vrot.slane %v3162_v30, 5  ;;  %v3169_v4 = vrot.slane %v3167_v50, 4 }
  0xe1   : > { %v6001_v15 = vcombine.low %v3107_v48, %v3117_v28  ;;  %v3131_v51 = vsel %vm7737_vm4, %v3126_v49, %v3130_v6  ;;  %v3150_v22 = vrot.slane %v3149_v63, 4  ;;  %v3172_v44 = vrot.slane %v3170_v0, 5  ;;  %v5889_v48 = vld [vmem:[%s7586_s11 + $0x70] sm:$0xf]  ;;  %v5890_v49 = vld [vmem:[%s7586_s11 + $0x74] sm:$0x1] }
  0xe2   : > { %v3176_v42 = vshll.u32 %v5883_v61, 16  ;;  %v3159_v11 = vor.u32 %v3158_v20, %v3154_v1  ;;  %v3180_v12 = vshrl.u32 %v5883_v61, 16  ;;  %v3186_v27 = vshll.u32 %v5884_v58, 16 }
  0xe3   : > { %6714 = vmatprep.mubr.msk.bf16.mxu1 %vm377_vm1, %v6001_v15  ;;  %v3173_v37 = vor.u32 %v3172_v44, %v3169_v4  ;;  %v3191_v13 = vshrl.u32 %v5885_v21, 16  ;;  %v3194_v3 = vshll.u32 %v5885_v21, 16  ;;  %v3200_v31 = vshll.u32 %v5886_v8, 16  ;;  %v5893_v44 = vld [vmem:[%s7586_s11 + $0x80] sm:$0x1] }
  0xe4   : > { %v3178_v19 = vrot.slane %v3176_v42, 5  ;;  %v3160_v18 = vrot.slane %v3159_v11, 4  ;;  %v3182_v17 = vrot.slane %v3180_v12, 4  ;;  %v3188_v40 = vrot.slane %v3186_v27, 5 }
  0xe5   : > { %6647 = vmatmul.mubr.msk.bf16.gmra.mrb[4].mxu0 %vm377_vm1, %v7851_v62  ;;  %v3141_v62 = vsel %vm7737_vm4, %v3136_v60, %v3140_v9  ;;  %v3174_v38 = vrot.slane %v3173_v37, 4  ;;  %v3193_v7 = vrot.slane %v3191_v13, 4  ;;  %v3204_v36 = vshrl.u32 %v5886_v8, 16  ;;  %v5894_v8 = vld [vmem:[%s7586_s11 + $0x84] sm:$0xf] }
  0xe6   : > { %6650 = vmatprep.mubr.msk.bf16.mxu0 %vm377_vm1, %v7877_v57  ;;  %v6002_v41 = vcombine.low %v3131_v51, %v3141_v62  ;;  %v3155_v57 = vsel %vm7737_vm4, %v3150_v22, %v3154_v1  ;;  %v3165_v6 = vsel %vm7737_vm4, %v3160_v18, %v3164_v2  ;;  %v3183_v39 = vor.u32 %v3182_v17, %v3178_v19  ;;  %v5891_v51 = vld [vmem:[%s7586_s11 + $0x78] sm:$0xf]  ;;  %v5892_v1 = vld [vmem:[%s7586_s11 + $0x7c] sm:$0xf]  ;;  %v5895_v13 = vld [vmem:[%s7586_s11 + $0x88] sm:$0xf] }
  0xe7   : > { %v3196_v43 = vrot.slane %v3194_v3, 5  ;;  %v3210_v45 = vshll.u32 %v5887_v53, 16  ;;  %v6003_v28 = vcombine.low %v3155_v57, %v3165_v6  ;;  %v3179_v9 = vsel %vm7737_vm4, %v3174_v38, %v3178_v19 }
  0xe8   : > { %6715 = vmatmul.mubr.msk.bf16.gmra.mrb[4].mxu1 %vm377_vm1, %v6002_v41  ;;  %v3202_v47 = vrot.slane %v3200_v31, 5  ;;  %v3206_v15 = vrot.slane %v3204_v36, 4  ;;  %v3184_v34 = vrot.slane %v3183_v39, 4  ;;  %v3215_v56 = vshrl.u32 %v5888_v32, 16  ;;  %v5896_v39 = vld [vmem:[%s7586_s11 + $0x8c] sm:$0x1] }
  0xe9   : > { %v3197_v54 = vor.u32 %v3196_v43, %v3193_v7  ;;  %v3212_v24 = vrot.slane %v3210_v45, 5  ;;  %6718 = vmatprep.mubr.msk.bf16.mxu1 %vm377_vm1, %v6003_v28  ;;  %v3218_v61 = vshll.u32 %v5888_v32, 16  ;;  %v3228_v50 = vshrl.u32 %v5889_v48, 16  ;;  %v5897_v45 = vld [vmem:[%s7586_s11 + $0x90] sm:$0xf] }
  0xea   : > { %v3207_v30 = vor.u32 %v3206_v15, %v3202_v47  ;;  %v3189_v60 = vsel %vm7737_vm4, %v3184_v34, %v3188_v40  ;;  %v3217_v58 = vrot.slane %v3215_v56, 4  ;;  %v3234_v0 = vshll.u32 %v5890_v49, 16 }
  0xeb   : > { %v3198_v63 = vrot.slane %v3197_v54, 4  ;;  %v3220_v2 = vrot.slane %v3218_v61, 5  ;;  %v3230_v62 = vrot.slane %v3228_v50, 4  ;;  %v3239_v42 = vshrl.u32 %v5891_v51, 16  ;;  %v5899_v61 = vld [vmem:[%s7586_s11 + $0x98] sm:$0x1] }
  0xec   : > { %v3208_v20 = vrot.slane %v3207_v30, 4  ;;  %v3236_v22 = vrot.slane %v3234_v0, 5  ;;  %v3242_v12 = vshll.u32 %v5891_v51, 16  ;;  %v3248_v27 = vshll.u32 %v5892_v1, 16 }
  0xed   : > { %6651 = vmatmul.mubr.msk.bf16.gmra.mrb[8].mxu0 %vm377_vm1, %v7906_v26  ;;  %v3224_v26 = vshll.u32 %v5889_v48, 16  ;;  %v3203_v21 = vsel %vm7737_vm4, %v3198_v63, %v3202_v47  ;;  %v3221_v11 = vor.u32 %v3220_v2, %v3217_v58  ;;  %v3241_v19 = vrot.slane %v3239_v42, 4  ;;  %v5900_v58 = vld [vmem:[%s7586_s11 + $0x9c] sm:$0xf]  ;;  %v5901_v2 = vld [vmem:[%s7586_s11 + $0xa0] sm:$0xf] }
  0xee   : > { %6654 = vmatprep.mubr.msk.bf16.mxu0 %vm377_vm1, %v7932_v55  ;;  %v6004_v55 = vcombine.low %v3179_v9, %v3189_v60  ;;  %v3213_v41 = vsel %vm7737_vm4, %v3208_v20, %v3212_v24  ;;  %v3252_v53 = vshrl.u32 %v5892_v1, 16  ;;  %v3244_v17 = vrot.slane %v3242_v12, 5 }
  0xef   : > { %v3226_v4 = vrot.slane %v3224_v26, 5  ;;  %v6005_v57 = vcombine.low %v3203_v21, %v3213_v41  ;;  %v3222_v18 = vrot.slane %v3221_v11, 4  ;;  %v3250_v40 = vrot.slane %v3248_v27, 5 }
  0xf0   : > { %6719 = vmatmul.mubr.msk.bf16.gmra.mrb[8].mxu1 %vm377_vm1, %v6004_v55  ;;  %v3258_v3 = vshll.u32 %v5893_v44, 16  ;;  %v3254_v7 = vrot.slane %v3252_v53, 4  ;;  %v3263_v31 = vshrl.u32 %v5894_v8, 16  ;;  %v3266_v36 = vshll.u32 %v5894_v8, 16  ;;  %v5902_v8 = vld [vmem:[%s7586_s11 + $0xa4] sm:$0x1] }
  0xf1   : > { %v3231_v37 = vor.u32 %v3230_v62, %v3226_v4  ;;  %6722 = vmatprep.mubr.msk.bf16.mxu1 %vm377_vm1, %v6005_v57  ;;  %v3227_v32 = vsel %vm7737_vm4, %v3222_v18, %v3226_v4  ;;  %v3245_v6 = vor.u32 %v3244_v17, %v3241_v19  ;;  %v3272_v43 = vshll.u32 %v5895_v13, 16  ;;  %v5903_v18 = vld [vmem:[%s7586_s11 + $0xa8] sm:$0xf] }
  0xf2   : > { %v3255_v28 = vor.u32 %v3254_v7, %v3250_v40  ;;  %v3265_v9 = vrot.slane %v3263_v31, 4  ;;  %v3268_v47 = vrot.slane %v3266_v36, 5  ;;  %v3276_v54 = vshrl.u32 %v5895_v13, 16 }
  0xf3   : > { %v3232_v38 = vrot.slane %v3231_v37, 4  ;;  %v3246_v49 = vrot.slane %v3245_v6, 4  ;;  %v3274_v34 = vrot.slane %v3272_v43, 5  ;;  %v3282_v30 = vshll.u32 %v5896_v39, 16  ;;  %v5905_v39 = vld [vmem:[%s7586_s11 + $0xb0] sm:$0x1] }
  0xf4   : > { %v3256_v24 = vrot.slane %v3255_v28, 4  ;;  %v3269_v56 = vor.u32 %v3268_v47, %v3265_v9  ;;  %v3287_v26 = vshrl.u32 %v5897_v45, 16  ;;  %v3278_v51 = vrot.slane %v3276_v54, 4  ;;  %v5906_v54 = vld [vmem:[%s7586_s11 + $0xb4] sm:$0xf] }
  0xf5   : > { %6655 = vmatmul.mubr.msk.bf16.gmra.mrb[12].mxu0 %vm377_vm1, %v7956_v46  ;;  %v3260_v46 = vrot.slane %v3258_v3, 5  ;;  %v3237_v48 = vsel %vm7737_vm4, %v3232_v38, %v3236_v22  ;;  %v3251_v50 = vsel %vm7737_vm4, %v3246_v49, %v3250_v40  ;;  %v3290_v60 = vshll.u32 %v5897_v45, 16  ;;  %v8296_v38 = vld [vmem:[%s7586_s11 + $0xac] sm:$0xf] }
  0xf6   : > { %6658 = vmatprep.mubr.msk.bf16.mxu0 %vm377_vm1, %v7981_v25  ;;  %v5898_v25 = vld [vmem:[%s7586_s11 + $0x94] sm:$0xf]  ;;  %v6006_v15 = vcombine.low %v3227_v32, %v3237_v48  ;;  %v3270_v1 = vrot.slane %v3269_v56, 4  ;;  %v3284_v55 = vrot.slane %v3282_v30, 5  ;;  %v3289_v20 = vrot.slane %v3287_v26, 4 }
  0xf7   : > { %v3296_v63 = vshll.u32 %v5898_v25, 16  ;;  %v3261_v0 = vsel %vm7737_vm4, %v3256_v24, %v3260_v46  ;;  %v3279_v21 = vor.u32 %v3278_v51, %v3274_v34  ;;  %v3292_v62 = vrot.slane %v3290_v60, 5  ;;  %v8312_v26 = vld [vmem:[%s7586_s11 + $0xb8] sm:$0xf] }
  0xf8   : > { %6723 = vmatmul.mubr.msk.bf16.gmra.mrb[12].mxu1 %vm377_vm1, %v6006_v15  ;;  %v6007_v4 = vcombine.low %v3251_v50, %v3261_v0  ;;  %v3275_v44 = vsel %vm7737_vm4, %v3270_v1, %v3274_v34  ;;  %v3300_v42 = vshrl.u32 %v5898_v25, 16  ;;  %v3306_v41 = vshll.u32 %v5899_v61, 16 }
  0xf9   : > { %v3298_v22 = vrot.slane %v3296_v63, 5  ;;  %v3311_v11 = vshrl.u32 %v5900_v58, 16  ;;  %v3280_v12 = vrot.slane %v3279_v21, 4  ;;  %v3293_v27 = vor.u32 %v3292_v62, %v3289_v20  ;;  %v8317_v63 = vld [vmem:[%s7586_s11 + $0xbc] sm:$0x1] }
  0xfa   : > { %6726 = vmatprep.mubr.msk.bf16.mxu1 %vm377_vm1, %v6007_v4  ;;  %v3320_v57 = vshll.u32 %v5901_v2, 16  ;;  %v3302_v37 = vrot.slane %v3300_v42, 4  ;;  %v3308_v19 = vrot.slane %v3306_v41, 5  ;;  %v3324_v13 = vshrl.u32 %v5901_v2, 16  ;;  %v8327_v41 = vld [vmem:[%s7586_s11 + $0xc4] sm:$0xf] }
  0xfb   : > { %v3313_v53 = vrot.slane %v3311_v11, 4  ;;  %v3294_v17 = vrot.slane %v3293_v27, 4  ;;  %v3330_v32 = vshll.u32 %v5902_v8, 16  ;;  %v3335_v43 = vshrl.u32 %v5903_v18, 16  ;;  %v8332_v8 = vld [vmem:[%s7586_s11 + $0xc8] sm:$0x1] }
  0xfc   : > { %v3322_v3 = vrot.slane %v3320_v57, 5  ;;  %v3303_v31 = vor.u32 %v3302_v37, %v3298_v22  ;;  %v3326_v36 = vrot.slane %v3324_v13, 4  ;;  %v3338_v45 = vshll.u32 %v5903_v18, 16  ;;  %v5912_v13 = vld [vmem:[%s7586_s11 + $0xcc] sm:$0xf] }
  0xfd   : > { %6659 = vmatmul.mubr.msk.bf16.gmra.mrb[16].mxu0 %vm377_vm1, %v8024_v29  ;;  %v3314_v29 = vshll.u32 %v5900_v58, 16  ;;  %v3299_v6 = vsel %vm7737_vm4, %v3294_v17, %v3298_v22  ;;  %v3332_v9 = vrot.slane %v3330_v32, 5  ;;  %v3344_v47 = vshll.u32 %v8296_v38, 16  ;;  %v8345_v32 = vld [vmem:[%s7586_s11 + $0xd0] sm:$0xf] }
  0xfe   : > { %6662 = vmatprep.mubr.msk.bf16.mxu0 %vm377_vm1, %v8050_v52  ;;  %v3285_v52 = vsel %vm7737_vm4, %v3280_v12, %v3284_v55  ;;  %v3304_v48 = vrot.slane %v3303_v31, 4  ;;  %v3327_v28 = vor.u32 %v3326_v36, %v3322_v3  ;;  %v3337_v15 = vrot.slane %v3335_v43, 4  ;;  %v5909_v55 = vld [vmem:[%s7586_s11 + $0xc0] sm:$0xf] }
  0xff   : > { %v3316_v40 = vrot.slane %v3314_v29, 5  ;;  %v6008_v7 = vcombine.low %v3275_v44, %v3285_v52  ;;  %v3340_v49 = vrot.slane %v3338_v45, 5  ;;  %v3348_v34 = vshrl.u32 %v8296_v38, 16 }
 0x100   : > { %v3309_v24 = vsel %vm7737_vm4, %v3304_v48, %v3308_v19  ;;  %v3328_v56 = vrot.slane %v3327_v28, 4  ;;  %v3346_v30 = vrot.slane %v3344_v47, 5  ;;  %v3354_v61 = vshll.u32 %v5905_v39, 16  ;;  %v8352_v28 = vld [vmem:[%s7586_s11 + $0xd4] sm:$0x1] }
 0x101   : > { %v3317_v46 = vor.u32 %v3316_v40, %v3313_v53  ;;  %6727 = vmatmul.mubr.msk.bf16.gmra.mrb[16].mxu1 %vm377_vm1, %v6008_v7  ;;  %v3341_v51 = vor.u32 %v3340_v49, %v3337_v15  ;;  %v3350_v60 = vrot.slane %v3348_v34, 4  ;;  %v3359_v1 = vshrl.u32 %v5906_v54, 16 }
 0x102   : > { %v3333_v58 = vsel %vm7737_vm4, %v3328_v56, %v3332_v9  ;;  %v3356_v0 = vrot.slane %v3354_v61, 5  ;;  %v3368_v21 = vshll.u32 %v8312_v26, 16  ;;  %v3372_v44 = vshrl.u32 %v8312_v26, 16  ;;  %v3722_v56 = vld [vmem:[%s7586_s11] sm:$0xe] }
 0x103   : > { %v3318_v25 = vrot.slane %v3317_v46, 4  ;;  %v3342_v2 = vrot.slane %v3341_v51, 4  ;;  %v3351_v4 = vor.u32 %v3350_v60, %v3346_v30  ;;  %v3361_v62 = vrot.slane %v3359_v1, 4 }
 0x104   : > { %v3378_v42 = vshll.u32 %v8317_v63, 16  ;;  %v3370_v27 = vrot.slane %v3368_v21, 5  ;;  %v3383_v29 = vshrl.u32 %v5909_v55, 16  ;;  %v3374_v37 = vrot.slane %v3372_v44, 4  ;;  %v3723_v44 = vld [vmem:[%s7586_s11 + $0xc] sm:$0xe] }
 0x105   : > { %6663 = vmatmul.mubr.msk.bf16.gmra.mrb[20].mxu0 %vm377_vm1, %v8075_v16  ;;  %v6009_v16 = vcombine.low %v3299_v6, %v3309_v24  ;;  %v3323_v50 = vsel %vm7737_vm4, %v3318_v25, %v3322_v3  ;;  %v3347_v11 = vsel %vm7737_vm4, %v3342_v2, %v3346_v30  ;;  %v3352_v12 = vrot.slane %v3351_v4, 4 }
 0x106   : > { %6666 = vmatprep.mubr.msk.bf16.mxu0 %vm377_vm1, %v8101_v59  ;;  %v3362_v59 = vshll.u32 %v5906_v54, 16  ;;  %v6010_v20 = vcombine.low %v3323_v50, %v3333_v58  ;;  %v3380_v19 = vrot.slane %v3378_v42, 5  ;;  %v3386_v53 = vshll.u32 %v5909_v55, 16  ;;  %v7317_v42 = vld [vmem:[%s7586_s11 + $0x8] sm:$0x1] }
 0x107   : > { %6730 = vmatprep.mubr.msk.bf16.mxu1 %vm377_vm1, %v6009_v16  ;;  %v3357_v18 = vsel %vm7737_vm4, %v3352_v12, %v3356_v0  ;;  %v3385_v52 = vrot.slane %v3383_v29, 4  ;;  %v3392_v17 = vshll.u32 %v8327_v41, 16  ;;  %v3396_v40 = vshrl.u32 %v8327_v41, 16  ;;  %v6031_v0 = vld [vmem:[%s7586_s11 + $0xc] sm:$0xe] }
 0x108   : > { %v3364_v22 = vrot.slane %v3362_v59, 5  ;;  %v6011_v3 = vcombine.low %v3347_v11, %v3357_v18  ;;  %v3375_v31 = vor.u32 %v3374_v37, %v3370_v27  ;;  %v3388_v36 = vrot.slane %v3386_v53, 5  ;;  %v7319_v29 = vld [vmem:[%s7586_s11 + $0x14] sm:$0x1] }
 0x109   : > { %6731 = vmatmul.mubr.msk.bf16.gmra.mrb[20].mxu1 %vm377_vm1, %v6010_v20  ;;  %v3394_v6 = vrot.slane %v3392_v17, 5  ;;  %v3398_v46 = vrot.slane %v3396_v40, 4  ;;  %v3402_v39 = vshll.u32 %v8332_v8, 16  ;;  %v3410_v9 = vshll.u32 %v5912_v13, 16  ;;  %v7320_v40 = vld [vmem:[%s7586_s11 + $0x10] sm:$0xf] }
 0x10a   : > { %v3365_v57 = vor.u32 %v3364_v22, %v3361_v62  ;;  %6734 = vmatprep.mubr.msk.bf16.mxu1 %vm377_vm1, %v6011_v3  ;;  %v3376_v45 = vrot.slane %v3375_v31, 4  ;;  %v3389_v48 = vor.u32 %v3388_v36, %v3385_v52  ;;  %v3416_v15 = vshll.u32 %v8345_v32, 16  ;;  %v7316_v62 = vld [vmem:[%s7586_s11 + $0x4] sm:$0xf] }
 0x10b   : > { %v3404_v47 = vrot.slane %v3402_v39, 5  ;;  %v3412_v54 = vrot.slane %v3410_v9, 5  ;;  %v3420_v24 = vshrl.u32 %v8345_v32, 16  ;;  %v3426_v50 = vshll.u32 %v8352_v28, 16 }
 0x10c   : > { %v3366_v7 = vrot.slane %v3365_v57, 4  ;;  %v3381_v49 = vsel %vm7737_vm4, %v3376_v45, %v3380_v19  ;;  %v3390_v34 = vrot.slane %v3389_v48, 4  ;;  %v3418_v16 = vrot.slane %v3416_v15, 5 }
 0x10d   : > { %6667 = vmatmul.mubr.msk.bf16.gmra.mrb[24].mxu0 %vm377_vm1, %v8132_v33  ;;  %v3407_v33 = vshrl.u32 %v5912_v13, 16  ;;  %v3422_v58 = vrot.slane %v3420_v24, 4  ;;  %v3428_v59 = vrot.slane %v3426_v50, 5  ;;  %v6064_v55 = vrot.slane %v3722_v56, 9  ;;  %v7324_v56 = vld [vmem:[%s7586_s11 + $0x1c] sm:$0xf] }
 0x10e   : > { %6670 = vmatprep.mubr.msk.bf16.mxu0 %vm377_vm1, %v8154_v35  ;;  %v3371_v43 = vsel %vm7737_vm4, %v3366_v7, %v3370_v27  ;;  %v3399_v35 = vor.u32 %v3398_v46, %v3394_v6  ;;  %v3395_v51 = vsel %vm7737_vm4, %v3390_v34, %v3394_v6  ;;  %v3825_v22 = vrot.slane %v7316_v62, 5  ;;  %v6032_v7 = vld [vmem:[%s7586_s11 + $0x18] sm:$0xe]  ;;  %v7321_v6 = vld [vmem:[%s7586_s11 + $0x14] sm:$0x1] }
 0x10f   : > { %v3409_v25 = vrot.slane %v3407_v33, 4  ;;  %v6012_v30 = vcombine.low %v3371_v43, %v3381_v49  ;;  %v3423_v4 = vor.u32 %v3422_v58, %v3418_v16  ;;  %v3828_v11 = vrot.slane %v7317_v42, 5  ;;  %v3724_v33 = vld [vmem:[%s7586_s11 + $0x18] sm:$0xe]  ;;  %v6033_v49 = vld [vmem:[%s7586_s11 + $0x24] sm:$0xe] }
 0x110   : > { %v3400_v61 = vrot.slane %v3399_v35, 4  ;;  %v6113_v12 = vrot.slane %v6031_v0, 9  ;;  %v4282_v57 = vrot.slane %v7319_v29, 5  ;;  %v3826_v53 = vsel %vm8368_vm7, %v6064_v55, %v3825_v22  ;;  %v6034_v55 = vld [vmem:[%s7586_s11 + $0x30] sm:$0xe] }
 0x111   : > { %v3413_v60 = vor.u32 %v3412_v54, %v3409_v25  ;;  %6735 = vmatmul.mubr.msk.bf16.gmra.mrb[24].mxu1 %vm377_vm1, %v6012_v30  ;;  %v3424_v19 = vrot.slane %v3423_v4, 4  ;;  %v3827_v13 = vrot.slane %v3825_v22, 4  ;;  %v6065_v17 = vrot.slane %v3723_v44, 9  ;;  %v7322_v25 = vld [vmem:[%s7586_s11 + $0x1c] sm:$0xf] }
 0x112   : > { %v3405_v1 = vsel %vm7737_vm4, %v3400_v61, %v3404_v47  ;;  %v3832_v3 = vrot.slane %v7320_v40, 5  ;;  %v3835_v46 = vrot.slane %v7321_v6, 5  ;;  %v4486_v39 = vsel %vm426_vm0, %v8193_v5, 0  ;;  %v7323_v5 = vld [vmem:[%s7586_s11 + $0x20] sm:$0x1] }
 0x113   : > { %v6013_v20 = vcombine.low %v3395_v51, %v3405_v1  ;;  %v3414_v2 = vrot.slane %v3413_v60, 4  ;;  %v3429_v31 = vsel %vm7737_vm4, %v3424_v19, %v3428_v59  ;;  %v3829_v36 = vsel %vm8368_vm7, %v3827_v13, %v3828_v11  ;;  %v3725_v61 = vld [vmem:[%s7586_s11 + $0x24] sm:$0xe]  ;;  %v7325_v60 = vld [vmem:[%s7586_s11 + $0x20] sm:$0x1] }
 0x114   : > { %v6080_v45 = vcombine.low %v3826_v53, %v3829_v36  ;;  %v3833_v10 = vsel %vm8368_vm7, %v6065_v17, %v3832_v3  ;;  %v3834_v35 = vrot.slane %v3832_v3, 4  ;;  %v6114_v47 = vrot.slane %v6032_v7, 9  ;;  %v7327_v62 = vld [vmem:[%s7586_s11 + $0x2c] sm:$0x1]  ;;  %v7330_v17 = vld [vmem:[%s7586_s11 + $0x34] sm:$0xf] }
 0x115   : > { %6671 = vmatmul.mubr.msk.bf16.gmra.mrb[28].mxu0 %vm377_vm1, %v8171_v23  ;;  %v7318_v23 = vld [vmem:[%s7586_s11 + $0x10] sm:$0xf]  ;;  %6738 = vmatprep.mubr.msk.bf16.mxu1 %vm377_vm1, %v6013_v20  ;;  %v3419_v37 = vsel %vm7737_vm4, %v3414_v2, %v3418_v16  ;;  %v4286_v15 = vrot.slane %v7322_v25, 5  ;;  %v4289_v34 = vrot.slane %v7323_v5, 5  ;;  %v5138_v54 = vsel %vm426_vm0, %v8212_v14, 0 }
 0x116   : > { %v4279_v27 = vrot.slane %v7318_v23, 5  ;;  %v6014_v43 = vcombine.low %v3419_v37, %v3429_v31  ;;  %6744 = vmatprep.mubr.msk.bf16.mxu0 %vm377_vm1, %v6080_v45  ;;  %v6066_v24 = vrot.slane %v3724_v33, 9  ;;  %v3839_v30 = vrot.slane %v7324_v56, 5  ;;  %v7326_v2 = vld [vmem:[%s7586_s11 + $0x28] sm:$0xf] }
 0x117   : > { %v3836_v16 = vsel %vm8368_vm7, %v3834_v35, %v3835_v46  ;;  %v4287_v50 = vsel %vm8368_vm7, %v6114_v47, %v4286_v15  ;;  %v4288_v51 = vrot.slane %v4286_v15, 4  ;;  %v3842_v58 = vrot.slane %v7325_v60, 5  ;;  %v7331_v3 = vld [vmem:[%s7586_s11 + $0x38] sm:$0x1]  ;;  %v6035_v31 = vld [vmem:[%s7586_s11 + $0x3c] sm:$0xe] }
 0x118   : > { %v4280_v18 = vsel %vm8368_vm7, %v6113_v12, %v4279_v27  ;;  %v4281_v52 = vrot.slane %v4279_v27, 4  ;;  %v6081_v14 = vcombine.low %v3833_v10, %v3836_v16  ;;  %v3840_v0 = vsel %vm8368_vm7, %v6066_v24, %v3839_v30  ;;  %v7328_v12 = vld [vmem:[%s7586_s11 + $0x28] sm:$0xf]  ;;  %v7329_v27 = vld [vmem:[%s7586_s11 + $0x2c] sm:$0x1] }
 0x119   : > { %6739 = vmatmul.mubr.msk.bf16.gmra.mrb[28].mxu1 %vm377_vm1, %v6014_v43  ;;  %v3841_v1 = vrot.slane %v3839_v30, 4  ;;  %v6115_v59 = vrot.slane %v6033_v49, 9  ;;  %v4290_v20 = vsel %vm8368_vm7, %v4288_v51, %v4289_v34  ;;  %v4293_v4 = vrot.slane %v7326_v2, 5  ;;  %v7332_v46 = vld [vmem:[%s7586_s11 + $0x34] sm:$0xf] }
 0x11a   : > { %v4283_v48 = vsel %vm8368_vm7, %v4281_v52, %v4282_v57  ;;  %v4296_v22 = vrot.slane %v7327_v62, 5  ;;  %v6067_v44 = vrot.slane %v3725_v61, 9  ;;  %v8424_v42 = vcombine.low %v4287_v50, %v4290_v20  ;;  %v3726_v57 = vld [vmem:[%s7586_s11 + $0x30] sm:$0xe]  ;;  %v7333_v33 = vld [vmem:[%s7586_s11 + $0x38] sm:$0x1] }
 0x11b   : > { %v8398_v9 = vcombine.low %v4280_v18, %v4283_v48  ;;  %v3843_v11 = vsel %vm8368_vm7, %v3841_v1, %v3842_v58  ;;  %v3846_v23 = vrot.slane %v7328_v12, 5  ;;  %v3849_v29 = vrot.slane %v7329_v27, 5  ;;  %v3727_v45 = vld [vmem:[%s7586_s11 + $0x3c] sm:$0xe]  ;;  %v6036_v34 = vld [vmem:[%s7586_s11 + $0x48] sm:$0xe] }
 0x11c   : > { %v6082_v37 = vcombine.low %v3840_v0, %v3843_v11  ;;  %v4294_v19 = vsel %vm8368_vm7, %v6115_v59, %v4293_v4  ;;  %v4295_v53 = vrot.slane %v4293_v4, 4  ;;  %v6116_v13 = vrot.slane %v6034_v55, 9  ;;  %v7334_v56 = vld [vmem:[%s7586_s11 + $0x40] sm:$0xf]  ;;  %v7335_v61 = vld [vmem:[%s7586_s11 + $0x44] sm:$0x1] }
 0x11d   : > { %6812 = vmatprep.mubr.msk.bf16.mxu1 %vm377_vm1, %v8398_v9  ;;  %6745 = vmatmul.mubr.msk.bf16.vlgmr.msra.gmra.mrb[0].mxu0 %vm377_vm1, %v6081_v14  ;;  %v3847_v18 = vsel %vm8368_vm7, %v6067_v44, %v3846_v23  ;;  %v3848_v52 = vrot.slane %v3846_v23, 4  ;;  %v4300_v40 = vrot.slane %v7330_v17, 5  ;;  %v4303_v7 = vrot.slane %v7331_v3, 5  ;;  %v7336_v60 = vld [vmem:[%s7586_s11 + $0x40] sm:$0xf] }
 0x11e   : > { %6777 = vmatpush3.bf16.msra.mxu0 %v4486_v39  ;;  %6748 = vmatprep.mubr.msk.bf16.mxu0 %vm377_vm1, %v6082_v37  ;;  %v4297_v36 = vsel %vm8368_vm7, %v4295_v53, %v4296_v22  ;;  %v6068_v6 = vrot.slane %v3726_v57, 9  ;;  %v3853_v39 = vrot.slane %v7332_v46, 5  ;;  %v3856_v43 = vrot.slane %v7333_v33, 5  ;;  %v7337_v14 = vld [vmem:[%s7586_s11 + $0x44] sm:$0x1] }
 0x11f   : > { %v8446_v48 = vcombine.low %v4294_v19, %v4297_v36  ;;  %v3850_v10 = vsel %vm8368_vm7, %v3848_v52, %v3849_v29  ;;  %v4301_v35 = vsel %vm8368_vm7, %v6116_v13, %v4300_v40  ;;  %v4302_v47 = vrot.slane %v4300_v40, 4  ;;  %v3728_v1 = vld [vmem:[%s7586_s11 + $0x48] sm:$0xe]  ;;  %v7338_v22 = vld [vmem:[%s7586_s11 + $0x4c] sm:$0xf] }
 0x120   : > { %v6083_v25 = vcombine.low %v3847_v18, %v3850_v10  ;;  %v3854_v15 = vsel %vm8368_vm7, %v6068_v6, %v3853_v39  ;;  %v3855_v49 = vrot.slane %v3853_v39, 4  ;;  %v6117_v5 = vrot.slane %v6035_v31, 9  ;;  %v7339_v11 = vld [vmem:[%s7586_s11 + $0x50] sm:$0x1]  ;;  %v6037_v23 = vld [vmem:[%s7586_s11 + $0x54] sm:$0xe] }
 0x121   : > { %6813 = vmatmul.mubr.msk.bf16.vlgmr.msra.gmra.mrb[0].mxu1 %vm377_vm1, %v8424_v42  ;;  %v4304_v24 = vsel %vm8368_vm7, %v4302_v47, %v4303_v7  ;;  %v4307_v30 = vrot.slane %v7334_v56, 5  ;;  %v4310_v16 = vrot.slane %v7335_v61, 5  ;;  %v3860_v58 = vrot.slane %v7336_v60, 5  ;;  %v7340_v57 = vld [vmem:[%s7586_s11 + $0x4c] sm:$0xf] }
 0x122   : > { %6845 = vmatpush3.bf16.msra.mxu1 %v5138_v54  ;;  %6816 = vmatprep.mubr.msk.bf16.mxu1 %vm377_vm1, %v8446_v48  ;;  %v6069_v54 = vrot.slane %v3727_v45, 9  ;;  %v8461_v50 = vcombine.low %v4301_v35, %v4304_v24  ;;  %v3857_v51 = vsel %vm8368_vm7, %v3855_v49, %v3856_v43  ;;  %v3863_v0 = vrot.slane %v7337_v14, 5  ;;  %v7341_v19 = vld [vmem:[%s7586_s11 + $0x50] sm:$0x1]  ;;  %v3729_v13 = vld [vmem:[%s7586_s11 + $0x54] sm:$0xe] }
 0x123   : > { %v6084_v59 = vcombine.low %v3854_v15, %v3857_v51  ;;  %v4308_v55 = vsel %vm8368_vm7, %v6117_v5, %v4307_v30  ;;  %v4309_v20 = vrot.slane %v4307_v30, 4  ;;  %v6118_v2 = vrot.slane %v6036_v34, 9  ;;  %v6038_v6 = vld [vmem:[%s7586_s11 + $0x60] sm:$0xe]  ;;  %v7342_v39 = vld [vmem:[%s7586_s11 + $0x58] sm:$0xf] }
 0x124   : > { %v3861_v4 = vsel %vm8368_vm7, %v6069_v54, %v3860_v58  ;;  %v3862_v62 = vrot.slane %v3860_v58, 4  ;;  %v4314_v44 = vrot.slane %v7338_v22, 5  ;;  %v4317_v12 = vrot.slane %v7339_v11, 5  ;;  %v7343_v43 = vld [vmem:[%s7586_s11 + $0x5c] sm:$0x1] }
 0x125   : > { %6749 = vmatmul.mubr.msk.bf16.gmra.mrb[4].mxu0 %vm377_vm1, %v6083_v25  ;;  %v4311_v27 = vsel %vm8368_vm7, %v4309_v20, %v4310_v16  ;;  %v6070_v29 = vrot.slane %v3728_v1, 9  ;;  %v3867_v37 = vrot.slane %v7340_v57, 5  ;;  %v3870_v53 = vrot.slane %v7341_v19, 5  ;;  %v7344_v25 = vld [vmem:[%s7586_s11 + $0x58] sm:$0xf] }
 0x126   : > { %6752 = vmatprep.mubr.msk.bf16.mxu0 %vm377_vm1, %v6084_v59  ;;  %v8482_v18 = vcombine.low %v4308_v55, %v4311_v27  ;;  %v3864_v52 = vsel %vm8368_vm7, %v3862_v62, %v3863_v0  ;;  %v4315_v17 = vsel %vm8368_vm7, %v6118_v2, %v4314_v44  ;;  %v4316_v40 = vrot.slane %v4314_v44, 4  ;;  %v7345_v49 = vld [vmem:[%s7586_s11 + $0x5c] sm:$0x1]  ;;  %v3730_v34 = vld [vmem:[%s7586_s11 + $0x60] sm:$0xe] }
 0x127   : > { %v6085_v3 = vcombine.low %v3861_v4, %v3864_v52  ;;  %v3868_v7 = vsel %vm8368_vm7, %v6070_v29, %v3867_v37  ;;  %v3869_v31 = vrot.slane %v3867_v37, 4  ;;  %v6119_v36 = vrot.slane %v6037_v23, 9  ;;  %v7346_v51 = vld [vmem:[%s7586_s11 + $0x64] sm:$0xf]  ;;  %v7347_v58 = vld [vmem:[%s7586_s11 + $0x68] sm:$0x1] }
 0x128   : > { %v4318_v46 = vsel %vm8368_vm7, %v4316_v40, %v4317_v12  ;;  %v4321_v33 = vrot.slane %v7342_v39, 5  ;;  %v4324_v45 = vrot.slane %v7343_v43, 5  ;;  %v6071_v10 = vrot.slane %v3729_v13, 9  ;;  %v6039_v0 = vld [vmem:[%s7586_s11 + $0x6c] sm:$0xe] }
 0x129   : > { %6817 = vmatmul.mubr.msk.bf16.gmra.mrb[4].mxu1 %vm377_vm1, %v8461_v50  ;;  %v8499_v35 = vcombine.low %v4315_v17, %v4318_v46  ;;  %v3871_v47 = vsel %vm8368_vm7, %v3869_v31, %v3870_v53  ;;  %v3874_v15 = vrot.slane %v7344_v25, 5  ;;  %v3877_v5 = vrot.slane %v7345_v49, 5  ;;  %v7348_v55 = vld [vmem:[%s7586_s11 + $0x64] sm:$0xf]  ;;  %v7349_v2 = vld [vmem:[%s7586_s11 + $0x68] sm:$0x1] }
 0x12a   : > { %6820 = vmatprep.mubr.msk.bf16.mxu1 %vm377_vm1, %v8482_v18  ;;  %v6086_v24 = vcombine.low %v3868_v7, %v3871_v47  ;;  %v4322_v56 = vsel %vm8368_vm7, %v6119_v36, %v4321_v33  ;;  %v4323_v30 = vrot.slane %v4321_v33, 4  ;;  %v6120_v61 = vrot.slane %v6038_v6, 9  ;;  %v3731_v62 = vld [vmem:[%s7586_s11 + $0x6c] sm:$0xe]  ;;  %v6040_v37 = vld [vmem:[%s7586_s11 + $0x78] sm:$0xe] }
 0x12b   : > { %v3875_v16 = vsel %vm8368_vm7, %v6071_v10, %v3874_v15  ;;  %v3876_v54 = vrot.slane %v3874_v15, 4  ;;  %v4328_v60 = vrot.slane %v7346_v51, 5  ;;  %v4331_v14 = vrot.slane %v7347_v58, 5  ;;  %v7350_v53 = vld [vmem:[%s7586_s11 + $0x70] sm:$0xf] }
 0x12c   : > { %v4325_v1 = vsel %vm8368_vm7, %v4323_v30, %v4324_v45  ;;  %v6072_v59 = vrot.slane %v3730_v34, 9  ;;  %v3881_v20 = vrot.slane %v7348_v55, 5  ;;  %v3884_v4 = vrot.slane %v7349_v2, 5  ;;  %v7351_v52 = vld [vmem:[%s7586_s11 + $0x74] sm:$0x1] }
 0x12d   : > { %6753 = vmatmul.mubr.msk.bf16.gmra.mrb[8].mxu0 %vm377_vm1, %v6085_v3  ;;  %v8520_v22 = vcombine.low %v4322_v56, %v4325_v1  ;;  %v3878_v44 = vsel %vm8368_vm7, %v3876_v54, %v3877_v5  ;;  %v4329_v11 = vsel %vm8368_vm7, %v6120_v61, %v4328_v60  ;;  %v4330_v12 = vrot.slane %v4328_v60, 4  ;;  %v7352_v31 = vld [vmem:[%s7586_s11 + $0x70] sm:$0xf]  ;;  %v7353_v6 = vld [vmem:[%s7586_s11 + $0x74] sm:$0x1] }
 0x12e   : > { %6756 = vmatprep.mubr.msk.bf16.mxu0 %vm377_vm1, %v6086_v24  ;;  %v6087_v23 = vcombine.low %v3875_v16, %v3878_v44  ;;  %v3882_v27 = vsel %vm8368_vm7, %v6072_v59, %v3881_v20  ;;  %v3883_v29 = vrot.slane %v3881_v20, 4  ;;  %v6121_v57 = vrot.slane %v6039_v0, 9  ;;  %v3732_v39 = vld [vmem:[%s7586_s11 + $0x78] sm:$0xe]  ;;  %v7354_v15 = vld [vmem:[%s7586_s11 + $0x7c] sm:$0xf] }
 0x12f   : > { %v4332_v19 = vsel %vm8368_vm7, %v4330_v12, %v4331_v14  ;;  %v4335_v13 = vrot.slane %v7350_v53, 5  ;;  %v4338_v17 = vrot.slane %v7351_v52, 5  ;;  %v6073_v40 = vrot.slane %v3731_v62, 9  ;;  %v7355_v5 = vld [vmem:[%s7586_s11 + $0x80] sm:$0x1] }
 0x130   : > { %v8537_v3 = vcombine.low %v4329_v11, %v4332_v19  ;;  %v3885_v7 = vsel %vm8368_vm7, %v3883_v29, %v3884_v4  ;;  %v3888_v36 = vrot.slane %v7352_v31, 5  ;;  %v3891_v46 = vrot.slane %v7353_v6, 5  ;;  %v6041_v24 = vld [vmem:[%s7586_s11 + $0x84] sm:$0xe]  ;;  %v7356_v61 = vld [vmem:[%s7586_s11 + $0x7c] sm:$0xf] }
 0x131   : > { %6821 = vmatmul.mubr.msk.bf16.gmra.mrb[8].mxu1 %vm377_vm1, %v8499_v35  ;;  %v6088_v33 = vcombine.low %v3882_v27, %v3885_v7  ;;  %v4336_v43 = vsel %vm8368_vm7, %v6121_v57, %v4335_v13  ;;  %v4337_v45 = vrot.slane %v4335_v13, 4  ;;  %v6122_v10 = vrot.slane %v6040_v37, 9  ;;  %v7357_v54 = vld [vmem:[%s7586_s11 + $0x80] sm:$0x1]  ;;  %v3733_v0 = vld [vmem:[%s7586_s11 + $0x84] sm:$0xe] }
 0x132   : > { %6824 = vmatprep.mubr.msk.bf16.mxu1 %vm377_vm1, %v8520_v22  ;;  %v3889_v47 = vsel %vm8368_vm7, %v6073_v40, %v3888_v36  ;;  %v3890_v25 = vrot.slane %v3888_v36, 4  ;;  %v4342_v49 = vrot.slane %v7354_v15, 5  ;;  %v4345_v34 = vrot.slane %v7355_v5, 5  ;;  %v7358_v62 = vld [vmem:[%s7586_s11 + $0x88] sm:$0xf] }
 0x133   : > { %v4339_v56 = vsel %vm8368_vm7, %v4337_v45, %v4338_v17  ;;  %v6074_v30 = vrot.slane %v3732_v39, 9  ;;  %v3895_v16 = vrot.slane %v7356_v61, 5  ;;  %v3898_v51 = vrot.slane %v7357_v54, 5  ;;  %v7359_v11 = vld [vmem:[%s7586_s11 + $0x8c] sm:$0x1] }
 0x134   : > { %v8557_v60 = vcombine.low %v4336_v43, %v4339_v56  ;;  %v3892_v58 = vsel %vm8368_vm7, %v3890_v25, %v3891_v46  ;;  %v4344_v14 = vrot.slane %v4342_v49, 4  ;;  %v4343_v1 = vsel %vm8368_vm7, %v6122_v10, %v4342_v49  ;;  %v7360_v57 = vld [vmem:[%s7586_s11 + $0x88] sm:$0xf]  ;;  %v7361_v19 = vld [vmem:[%s7586_s11 + $0x8c] sm:$0x1] }
 0x135   : > { %6757 = vmatmul.mubr.msk.bf16.gmra.mrb[12].mxu0 %vm377_vm1, %v6087_v23  ;;  %v3896_v59 = vsel %vm8368_vm7, %v6074_v30, %v3895_v16  ;;  %v3897_v55 = vrot.slane %v3895_v16, 4  ;;  %v6123_v20 = vrot.slane %v6041_v24, 9  ;;  %v6089_v2 = vcombine.low %v3889_v47, %v3892_v58  ;;  %v6042_v23 = vld [vmem:[%s7586_s11 + $0x90] sm:$0xe]  ;;  %v7362_v6 = vld [vmem:[%s7586_s11 + $0x94] sm:$0xf] }
 0x136   : > { %6760 = vmatprep.mubr.msk.bf16.mxu0 %vm377_vm1, %v6088_v33  ;;  %v4346_v4 = vsel %vm8368_vm7, %v4344_v14, %v4345_v34  ;;  %v4349_v44 = vrot.slane %v7358_v62, 5  ;;  %v4352_v12 = vrot.slane %v7359_v11, 5  ;;  %v6075_v29 = vrot.slane %v3733_v0, 9  ;;  %v3734_v13 = vld [vmem:[%s7586_s11 + $0x90] sm:$0xe] }
 0x137   : > { %v3899_v27 = vsel %vm8368_vm7, %v3897_v55, %v3898_v51  ;;  %v3902_v37 = vrot.slane %v7360_v57, 5  ;;  %v3905_v53 = vrot.slane %v7361_v19, 5  ;;  %v8580_v52 = vcombine.low %v4343_v1, %v4346_v4  ;;  %v6043_v39 = vld [vmem:[%s7586_s11 + $0x9c] sm:$0xe]  ;;  %v7363_v45 = vld [vmem:[%s7586_s11 + $0x94] sm:$0xf] }
 0x138   : > { %v6090_v17 = vcombine.low %v3896_v59, %v3899_v27  ;;  %v4351_v40 = vrot.slane %v4349_v44, 4  ;;  %v4350_v7 = vsel %vm8368_vm7, %v6123_v20, %v4349_v44  ;;  %v6124_v36 = vrot.slane %v6042_v23, 9  ;;  %v7364_v47 = vld [vmem:[%s7586_s11 + $0x98] sm:$0x1]  ;;  %v3735_v16 = vld [vmem:[%s7586_s11 + $0x9c] sm:$0xe] }
 0x139   : > { %6825 = vmatmul.mubr.msk.bf16.gmra.mrb[12].mxu1 %vm377_vm1, %v8537_v3  ;;  %v3904_v31 = vrot.slane %v3902_v37, 4  ;;  %v4356_v46 = vrot.slane %v7362_v6, 5  ;;  %v6076_v43 = vrot.slane %v3734_v13, 9  ;;  %v3909_v10 = vrot.slane %v7363_v45, 5  ;;  %v7365_v34 = vld [vmem:[%s7586_s11 + $0x98] sm:$0x1] }
 0x13a   : > { %6828 = vmatprep.mubr.msk.bf16.mxu1 %vm377_vm1, %v8557_v60  ;;  %v4353_v33 = vsel %vm8368_vm7, %v4351_v40, %v4352_v12  ;;  %v3912_v25 = vrot.slane %v7364_v47, 5  ;;  %v3903_v15 = vsel %vm8368_vm7, %v6075_v29, %v3902_v37  ;;  %v4359_v24 = vrot.slane %v7365_v34, 5  ;;  %v7366_v51 = vld [vmem:[%s7586_s11 + $0xa0] sm:$0xf]  ;;  %v7367_v14 = vld [vmem:[%s7586_s11 + $0xa4] sm:$0x1] }
 0x13b   : > { %v3906_v49 = vsel %vm8368_vm7, %v3904_v31, %v3905_v53  ;;  %v4358_v5 = vrot.slane %v4356_v46, 4  ;;  %v8597_v56 = vcombine.low %v4350_v7, %v4353_v33  ;;  %v3911_v30 = vrot.slane %v3909_v10, 4  ;;  %v7368_v20 = vld [vmem:[%s7586_s11 + $0xa0] sm:$0xf]  ;;  %v3736_v4 = vld [vmem:[%s7586_s11 + $0xa8] sm:$0xe] }
 0x13c   : > { %v6125_v61 = vrot.slane %v6043_v39, 9  ;;  %v3910_v54 = vsel %vm8368_vm7, %v6076_v43, %v3909_v10  ;;  %v4363_v58 = vrot.slane %v7366_v51, 5  ;;  %v4366_v0 = vrot.slane %v7367_v14, 5  ;;  %v7369_v12 = vld [vmem:[%s7586_s11 + $0xa4] sm:$0x1] }
 0x13d   : > { %6761 = vmatmul.mubr.msk.bf16.gmra.mrb[16].mxu0 %vm377_vm1, %v6089_v2  ;;  %v6091_v1 = vcombine.low %v3903_v15, %v3906_v49  ;;  %v4357_v59 = vsel %vm8368_vm7, %v6124_v36, %v4356_v46  ;;  %v3913_v55 = vsel %vm8368_vm7, %v3911_v30, %v3912_v25  ;;  %v3916_v2 = vrot.slane %v7368_v20, 5  ;;  %v6044_v27 = vld [vmem:[%s7586_s11 + $0xa8] sm:$0xe]  ;;  %v7370_v19 = vld [vmem:[%s7586_s11 + $0xac] sm:$0xf] }
 0x13e   : > { %6764 = vmatprep.mubr.msk.bf16.mxu0 %vm377_vm1, %v6090_v17  ;;  %v4360_v62 = vsel %vm8368_vm7, %v4358_v5, %v4359_v24  ;;  %v4365_v44 = vrot.slane %v4363_v58, 4  ;;  %v6077_v11 = vrot.slane %v3735_v16, 9  ;;  %v3919_v23 = vrot.slane %v7369_v12, 5  ;;  %v7371_v40 = vld [vmem:[%s7586_s11 + $0xac] sm:$0xf] }
 0x13f   : > { %v6092_v29 = vcombine.low %v3910_v54, %v3913_v55  ;;  %v4364_v57 = vsel %vm8368_vm7, %v6125_v61, %v4363_v58  ;;  %v3918_v37 = vrot.slane %v3916_v2, 4  ;;  %v4370_v53 = vrot.slane %v7370_v19, 5  ;;  %v7372_v31 = vld [vmem:[%s7586_s11 + $0xb0] sm:$0x1]  ;;  %v6045_v39 = vld [vmem:[%s7586_s11 + $0xb4] sm:$0xe] }
 0x140   : > { %v4367_v13 = vsel %vm8368_vm7, %v4365_v44, %v4366_v0  ;;  %v6078_v17 = vrot.slane %v3736_v4, 9  ;;  %v3923_v7 = vrot.slane %v7371_v40, 5  ;;  %v3926_v36 = vrot.slane %v7372_v31, 5  ;;  %v7373_v45 = vld [vmem:[%s7586_s11 + $0xb0] sm:$0x1] }
 0x141   : > { %6829 = vmatmul.mubr.msk.bf16.gmra.mrb[16].mxu1 %vm377_vm1, %v8580_v52  ;;  %v8625_v6 = vcombine.low %v4357_v59, %v4360_v62  ;;  %v6126_v46 = vrot.slane %v6044_v27, 9  ;;  %v3917_v33 = vsel %vm8368_vm7, %v6077_v11, %v3916_v2  ;;  %v4372_v43 = vrot.slane %v4370_v53, 4  ;;  %v7374_v5 = vld [vmem:[%s7586_s11 + $0xb8] sm:$0xf]  ;;  %v3737_v24 = vld [vmem:[%s7586_s11 + $0xb4] sm:$0xe] }
 0x142   : > { %6832 = vmatprep.mubr.msk.bf16.mxu1 %vm377_vm1, %v8597_v56  ;;  %v4373_v10 = vrot.slane %v7373_v45, 5  ;;  %v3925_v47 = vrot.slane %v3923_v7, 4  ;;  %v8633_v25 = vcombine.low %v4364_v57, %v4367_v13  ;;  %v3920_v15 = vsel %vm8368_vm7, %v3918_v37, %v3919_v23  ;;  %v7375_v16 = vld [vmem:[%s7586_s11 + $0xbc] sm:$0x1]  ;;  %v7376_v51 = vld [vmem:[%s7586_s11 + $0xb8] sm:$0xf] }
 0x143   : > { %v3924_v49 = vsel %vm8368_vm7, %v6078_v17, %v3923_v7  ;;  %v4377_v34 = vrot.slane %v7374_v5, 5  ;;  %v6127_v61 = vrot.slane %v6045_v39, 9  ;;  %v4380_v54 = vrot.slane %v7375_v16, 5  ;;  %v7377_v4 = vld [vmem:[%s7586_s11 + $0xbc] sm:$0x1] }
 0x144   : > { %v3927_v30 = vsel %vm8368_vm7, %v3925_v47, %v3926_v36  ;;  %v3930_v58 = vrot.slane %v7376_v51, 5  ;;  %v6093_v0 = vcombine.low %v3917_v33, %v3920_v15  ;;  %v4374_v59 = vsel %vm8368_vm7, %v4372_v43, %v4373_v10  ;;  %v6046_v44 = vld [vmem:[%s7586_s11 + $0xc0] sm:$0xe]  ;;  %v7378_v11 = vld [vmem:[%s7586_s11 + $0xc4] sm:$0xf] }
 0x145   : > { %6765 = vmatmul.mubr.msk.bf16.gmra.mrb[20].mxu0 %vm377_vm1, %v6091_v1  ;;  %v4379_v14 = vrot.slane %v4377_v34, 4  ;;  %v4371_v1 = vsel %vm8368_vm7, %v6126_v46, %v4370_v53  ;;  %v6079_v55 = vrot.slane %v3737_v24, 9  ;;  %v6094_v20 = vcombine.low %v3924_v49, %v3927_v30  ;;  %v6047_v37 = vld [vmem:[%s7586_s11 + $0x18] sm:$0xe]  ;;  %v7380_v31 = vld [vmem:[%s7586_s11 + $0xc8] sm:$0x1] }
 0x146   : > { %6768 = vmatprep.mubr.msk.bf16.mxu0 %vm377_vm1, %v6092_v29  ;;  %v3932_v2 = vrot.slane %v3930_v58, 4  ;;  %v3933_v62 = vrot.slane %v7377_v4, 5  ;;  %v4384_v12 = vrot.slane %v7378_v11, 5  ;;  %v4378_v23 = vsel %vm8368_vm7, %v6127_v61, %v4377_v34  ;;  %v7379_v29 = vld [vmem:[%s7586_s11 + $0x1c] sm:$0xf] }
 0x147   : > { %v4381_v27 = vsel %vm8368_vm7, %v4379_v14, %v4380_v54  ;;  %v4931_v57 = vrot.slane %v7379_v29, 5  ;;  %v8663_v19 = vcombine.low %v4371_v1, %v4374_v59  ;;  %v3931_v53 = vsel %vm8368_vm7, %v6079_v55, %v3930_v58  ;;  %v7381_v33 = vld [vmem:[%s7586_s11 + $0x20] sm:$0x1]  ;;  %v7382_v15 = vld [vmem:[%s7586_s11 + $0x28] sm:$0xf] }
 0x148   : > { %v6128_v13 = vrot.slane %v6046_v44, 9  ;;  %v8668_v17 = vcombine.low %v4378_v23, %v4381_v27  ;;  %v3934_v40 = vsel %vm8368_vm7, %v3932_v2, %v3933_v62  ;;  %v4386_v7 = vrot.slane %v4384_v12, 4  ;;  %v6048_v24 = vld [vmem:[%s7586_s11 + $0x24] sm:$0xe]  ;;  %v7383_v30 = vld [vmem:[%s7586_s11 + $0x34] sm:$0xf] }
 0x149   : > { %6833 = vmatmul.mubr.msk.bf16.gmra.mrb[20].mxu1 %vm377_vm1, %v8625_v6  ;;  %v4387_v36 = vrot.slane %v7380_v31, 5  ;;  %v6179_v46 = vrot.slane %v6047_v37, 9  ;;  %v4933_v39 = vrot.slane %v4931_v57, 4  ;;  %v4934_v43 = vrot.slane %v7381_v33, 5  ;;  %v6049_v16 = vld [vmem:[%s7586_s11 + $0x30] sm:$0xe] }
 0x14a   : > { %6836 = vmatprep.mubr.msk.bf16.mxu1 %vm377_vm1, %v8633_v25  ;;  %v6095_v45 = vcombine.low %v3931_v53, %v3934_v40  ;;  %v4385_v10 = vsel %vm8368_vm7, %v6128_v13, %v4384_v12  ;;  %v4938_v49 = vrot.slane %v7382_v15, 5  ;;  %v4945_v61 = vrot.slane %v7383_v30, 5  ;;  %v7386_v62 = vld [vmem:[%s7586_s11 + $0x40] sm:$0xf]  ;;  %v6050_v23 = vld [vmem:[%s7586_s11 + $0x3c] sm:$0xe] }
 0x14b   : > { %v4388_v47 = vsel %vm8368_vm7, %v4386_v7, %v4387_v36  ;;  %v4932_v5 = vsel %vm8368_vm7, %v6179_v46, %v4931_v57  ;;  %v4935_v34 = vsel %vm8368_vm7, %v4933_v39, %v4934_v43  ;;  %v6180_v58 = vrot.slane %v6048_v24, 9  ;;  %v7387_v27 = vld [vmem:[%s7586_s11 + $0x4c] sm:$0xf]  ;;  %v6051_v57 = vld [vmem:[%s7586_s11 + $0x48] sm:$0xe] }
 0x14c   : > { %v8691_v54 = vcombine.low %v4385_v10, %v4388_v47  ;;  %v6195_v51 = vcombine.low %v4932_v5, %v4935_v34  ;;  %v4940_v14 = vrot.slane %v4938_v49, 4  ;;  %v6181_v59 = vrot.slane %v6049_v16, 9  ;;  %v7388_v7 = vld [vmem:[%s7586_s11 + $0x44] sm:$0x1]  ;;  %v7389_v39 = vld [vmem:[%s7586_s11 + $0x50] sm:$0x1] }
 0x14d   : > { %6769 = vmatmul.mubr.msk.bf16.gmra.mrb[24].mxu0 %vm377_vm1, %v6093_v0  ;;  %v7384_v0 = vld [vmem:[%s7586_s11 + $0x2c] sm:$0x1]  ;;  %v4947_v55 = vrot.slane %v4945_v61, 4  ;;  %v4952_v44 = vrot.slane %v7386_v62, 5  ;;  %v4959_v29 = vrot.slane %v7387_v27, 5  ;;  %v6182_v13 = vrot.slane %v6050_v23, 9 }
 0x14e   : > { %6772 = vmatprep.mubr.msk.bf16.mxu0 %vm377_vm1, %v6094_v20  ;;  %v4941_v1 = vrot.slane %v7384_v0, 5  ;;  %v7385_v20 = vld [vmem:[%s7586_s11 + $0x38] sm:$0x1]  ;;  %v4946_v11 = vsel %vm8368_vm7, %v6181_v59, %v4945_v61  ;;  %v4955_v31 = vrot.slane %v7388_v7, 5  ;;  %v6183_v36 = vrot.slane %v6051_v57, 9 }
 0x14f   : > { %v4948_v2 = vrot.slane %v7385_v20, 5  ;;  %v4954_v40 = vrot.slane %v4952_v44, 4  ;;  %v4961_v46 = vrot.slane %v4959_v29, 4  ;;  %v4962_v33 = vrot.slane %v7389_v39, 5  ;;  %v7390_v43 = vld [vmem:[%s7586_s11 + $0x58] sm:$0xf] }
 0x150   : > { %v4942_v4 = vsel %vm8368_vm7, %v4940_v14, %v4941_v1  ;;  %v4960_v10 = vsel %vm8368_vm7, %v6183_v36, %v4959_v29  ;;  %v6052_v15 = vld [vmem:[%s7586_s11 + $0x54] sm:$0xe]  ;;  %v6053_v34 = vld [vmem:[%s7586_s11 + $0x60] sm:$0xe]  ;;  %v7393_v1 = vld [vmem:[%s7586_s11 + $0x68] sm:$0x1] }
 0x151   : > { %6837 = vmatmul.mubr.msk.bf16.gmra.mrb[24].mxu1 %vm377_vm1, %v8663_v19  ;;  %v4949_v12 = vsel %vm8368_vm7, %v4947_v55, %v4948_v2  ;;  %v4963_v47 = vsel %vm8368_vm7, %v4961_v46, %v4962_v33  ;;  %v6184_v61 = vrot.slane %v6052_v15, 9  ;;  %v6185_v14 = vrot.slane %v6053_v34, 9  ;;  %v7394_v55 = vld [vmem:[%s7586_s11 + $0x70] sm:$0xf]  ;;  %v7395_v62 = vld [vmem:[%s7586_s11 + $0x7c] sm:$0xf] }
 0x152   : > { %6840 = vmatprep.mubr.msk.bf16.mxu1 %vm377_vm1, %v8668_v17  ;;  %v6197_v53 = vcombine.low %v4946_v11, %v4949_v12  ;;  %v6199_v30 = vcombine.low %v4960_v10, %v4963_v47  ;;  %v4976_v59 = vrot.slane %v7393_v1, 5  ;;  %v4980_v20 = vrot.slane %v7394_v55, 5  ;;  %v6055_v11 = vld [vmem:[%s7586_s11 + $0x78] sm:$0xe]  ;;  %v7396_v57 = vld [vmem:[%s7586_s11 + $0x74] sm:$0x1] }
 0x153   : > { %v6056_v33 = vld [vmem:[%s7586_s11 + $0x84] sm:$0xe]  ;;  %v5015_v1 = vrot.slane %v8296_v38, 5 }
 0x154   : > { %v4982_v29 = vrot.slane %v4980_v20, 4  ;;  %v6188_v47 = vrot.slane %v6056_v33, 9 }
 0x155   : > { %6773 = vmatmul.mubr.msk.bf16.gmra.mrb[28].mxu0 %vm377_vm1, %v6095_v45  ;;  %v4966_v45 = vrot.slane %v7390_v43, 5  ;;  %v6057_v43 = vld [vmem:[%s7586_s11 + $0x90] sm:$0xe] }
 0x156   : > { %6778 = vmatprep.mubr.msk.bf16.mxu0 %vm377_vm1, %v8398_v9  ;;  %v4939_v9 = vsel %vm8368_vm7, %v6180_v58, %v4938_v49  ;;  %v7391_v49 = vld [vmem:[%s7586_s11 + $0x64] sm:$0xf]  ;;  %v6189_v34 = vrot.slane %v6057_v43, 9 }
 0x157   : > { %v6196_v37 = vcombine.low %v4939_v9, %v4942_v4  ;;  %v4973_v5 = vrot.slane %v7391_v49, 5  ;;  %v4968_v16 = vrot.slane %v4966_v45, 4  ;;  %v6054_v4 = vld [vmem:[%s7586_s11 + $0x6c] sm:$0xe]  ;;  %v7400_v49 = vld [vmem:[%s7586_s11 + $0x8c] sm:$0x1] }
 0x158   : > { %v6186_v27 = vrot.slane %v6054_v4, 9 }
 0x159   : > { %6841 = vmatmul.mubr.msk.bf16.gmra.mrb[28].mxu1 %vm377_vm1, %v8691_v54  ;;  %v4975_v0 = vrot.slane %v4973_v5, 4  ;;  %v4974_v2 = vsel %vm8368_vm7, %v6185_v14, %v4973_v5  ;;  %v4997_v5 = vrot.slane %v7400_v49, 5 }
 0x15a   : > { %6846 = vmatprep.mubr.msk.bf16.mxu1 %vm377_vm1, %v6195_v51  ;;  %v7392_v51 = vld [vmem:[%s7586_s11 + $0x5c] sm:$0x1] }
 0x15b   : > { %v4969_v58 = vrot.slane %v7392_v51, 5  ;;  %v4977_v9 = vsel %vm8368_vm7, %v4975_v0, %v4976_v59  ;;  %v6058_v0 = vld [vmem:[%s7586_s11 + $0x9c] sm:$0xe]  ;;  %v6059_v59 = vld [vmem:[%s7586_s11 + $0xa8] sm:$0xe] }
 0x15c   : > { %v6201_v23 = vcombine.low %v4974_v2, %v4977_v9  ;;  %v6190_v55 = vrot.slane %v6058_v0, 9  ;;  %v7403_v2 = vld [vmem:[%s7586_s11 + $0xa4] sm:$0x1]  ;;  %v6191_v4 = vrot.slane %v6059_v59, 9 }
 0x15d   : > { %6779 = vmatmul.mubr.msk.bf16.vlgmr.msra.gmra.mrb[0].mxu0 %vm377_vm1, %v8424_v42  ;;  %v4953_v42 = vsel %vm8368_vm7, %v6182_v13, %v4952_v44  ;;  %v4987_v44 = vrot.slane %v7395_v62, 5  ;;  %v5011_v9 = vrot.slane %v7403_v2, 5  ;;  %v5017_v62 = vrot.slane %v5015_v1, 4 }
 0x15e   : > { %6782 = vmatprep.mubr.msk.bf16.mxu0 %vm377_vm1, %v8446_v48  ;;  %v4956_v48 = vsel %vm8368_vm7, %v4954_v40, %v4955_v31  ;;  %v7397_v40 = vld [vmem:[%s7586_s11 + $0x80] sm:$0x1]  ;;  %v7398_v31 = vld [vmem:[%s7586_s11 + $0x88] sm:$0xf] }
 0x15f   : > { %v6198_v24 = vcombine.low %v4953_v42, %v4956_v48  ;;  %v4989_v13 = vrot.slane %v4987_v44, 4  ;;  %v4990_v7 = vrot.slane %v7397_v40, 5  ;;  %v4994_v36 = vrot.slane %v7398_v31, 5  ;;  %v7399_v42 = vld [vmem:[%s7586_s11 + $0x94] sm:$0xf] }
 0x160   : > { %v5001_v48 = vrot.slane %v7399_v42, 5  ;;  %v5025_v40 = vrot.slane %v8317_v63, 5 }
 0x161   : > { %6847 = vmatmul.mubr.msk.bf16.vlgmr.msra.gmra.mrb[0].mxu1 %vm377_vm1, %v6196_v37  ;;  %v4983_v37 = vrot.slane %v7396_v57, 5  ;;  %v4991_v39 = vsel %vm8368_vm7, %v4989_v13, %v4990_v7  ;;  %v4996_v15 = vrot.slane %v4994_v36, 4  ;;  %v6061_v57 = vld [vmem:[%s7586_s11 + $0xc0] sm:$0xe] }
 0x162   : > { %6850 = vmatprep.mubr.msk.bf16.mxu1 %vm377_vm1, %v6197_v53  ;;  %v6187_v53 = vrot.slane %v6055_v11, 9  ;;  %v6193_v7 = vrot.slane %v6061_v57, 9 }
 0x164   : > { %v4988_v46 = vsel %vm8368_vm7, %v6187_v53, %v4987_v44  ;;  %v7404_v44 = vld [vmem:[%s7586_s11 + $0xb0] sm:$0x1] }
 0x165   : > { %6783 = vmatmul.mubr.msk.bf16.gmra.mrb[4].mxu0 %vm377_vm1, %v8461_v50  ;;  %v4967_v50 = vsel %vm8368_vm7, %v6184_v61, %v4966_v45  ;;  %v6203_v10 = vcombine.low %v4988_v46, %v4991_v39  ;;  %v5018_v11 = vrot.slane %v7404_v44, 5 }
 0x166   : > { %6786 = vmatprep.mubr.msk.bf16.mxu0 %vm377_vm1, %v8482_v18  ;;  %v4970_v18 = vsel %vm8368_vm7, %v4968_v16, %v4969_v58  ;;  %v7402_v16 = vld [vmem:[%s7586_s11 + $0xa0] sm:$0xf]  ;;  %v5002_v58 = vsel %vm8368_vm7, %v6189_v34, %v5001_v48 }
 0x167   : > { %v6200_v12 = vcombine.low %v4967_v50, %v4970_v18  ;;  %v5008_v51 = vrot.slane %v7402_v16, 5 }
 0x169   : > { %6851 = vmatmul.mubr.msk.bf16.gmra.mrb[4].mxu1 %vm377_vm1, %v6198_v24  ;;  %v5003_v24 = vrot.slane %v5001_v48, 4  ;;  %v5009_v38 = vsel %vm8368_vm7, %v6190_v55, %v5008_v51 }
 0x16a   : > { %6854 = vmatprep.mubr.msk.bf16.mxu1 %vm377_vm1, %v6199_v30  ;;  %v7401_v30 = vld [vmem:[%s7586_s11 + $0x98] sm:$0x1] }
 0x16b   : > { %v5004_v61 = vrot.slane %v7401_v30, 5 }
 0x16d   : > { %6787 = vmatmul.mubr.msk.bf16.gmra.mrb[8].mxu0 %vm377_vm1, %v8499_v35  ;;  %v4981_v35 = vsel %vm8368_vm7, %v6186_v27, %v4980_v20  ;;  %v5005_v14 = vsel %vm8368_vm7, %v5003_v24, %v5004_v61  ;;  %v5010_v20 = vrot.slane %v5008_v51, 4  ;;  %v6060_v27 = vld [vmem:[%s7586_s11 + $0xb4] sm:$0xe] }
 0x16e   : > { %6790 = vmatprep.mubr.msk.bf16.mxu0 %vm377_vm1, %v8520_v22  ;;  %v4984_v22 = vsel %vm8368_vm7, %v4982_v29, %v4983_v37  ;;  %v6205_v18 = vcombine.low %v5002_v58, %v5005_v14  ;;  %v5029_v29 = vrot.slane %v8327_v41, 5 }
 0x16f   : > { %v6202_v45 = vcombine.low %v4981_v35, %v4984_v22  ;;  %v5032_v22 = vrot.slane %v8332_v8, 5  ;;  %v6062_v8 = vld [vmem:[%s7586_s11 + $0xcc] sm:$0xe]  ;;  %s175_s11 = sand.u32 1, %s7467_s13  }
 0x170   : > { %v5031_v35 = vrot.slane %v5029_v29, 4  ;;  %v5030_v31 = vsel %vm8368_vm7, %v6193_v7, %v5029_v29  ;;  %v6194_v39 = vrot.slane %v6062_v8, 9  ;;  %s5638_s21 = sshll.u32 %s175_s11, 9  ;;  %s9057_s30 = scalar_lea.sflag [#allocation3], %s175_s11 }
 0x171   : > { %6855 = vmatmul.mubr.msk.bf16.gmra.mrb[8].mxu1 %vm377_vm1, %v6200_v12  ;;  %v5016_v12 = vsel %vm8368_vm7, %v6191_v4, %v5015_v1  ;;  %s8856_s23 = scalar_lea.vmem [#allocation2], %s5638_s21 }
 0x172   : > { %6858 = vmatprep.mubr.msk.bf16.mxu1 %vm377_vm1, %v6201_v23  ;;  %v5019_v23 = vsel %vm8368_vm7, %v5017_v62, %v5018_v11  ;;  %v5033_v63 = vsel %vm8368_vm7, %v5031_v35, %v5032_v22  ;;  %s5550_s27 = sshll.u32 %s8856_s23, 4  ;;  %s9047_s27 = int_to_ptr.vmem [resolvable:$true] %s5550_s27 }
 0x173   : > { %v6207_v53 = vcombine.low %v5016_v12, %v5019_v23  ;;  %v6209_v46 = vcombine.low %v5030_v31, %v5033_v63  ;;  %s7405_s4 = scalar_lea.vmem %s9047_s27, 8192  ;;  %p7412_p1 = scmp.lt.s32.totalorder %s9047_s27, %s7410_s6 }
 0x174   : > { %p7406_p12 = scmp.ne.s32.totalorder %s9047_s27, %s7405_s4  ;;  %p7413_p2 = scmp.lt.s32.totalorder %s7411_s7, %s7405_s4 }
 0x175   : > { %6791 = vmatmul.mubr.msk.bf16.gmra.mrb[12].mxu0 %vm377_vm1, %v8537_v3  ;;  %v4995_v3 = vsel %vm8368_vm7, %v6188_v47, %v4994_v36 }
 0x176   : > { %6794 = vmatprep.mubr.msk.bf16.mxu0 %vm377_vm1, %v8557_v60  ;;  %v4998_v60 = vsel %vm8368_vm7, %v4996_v15, %v4997_v5  ;;  %p7407_p13 = pnand %p7406_p12, %p7548_p4  ;;  %p7414_p3 = por %p7413_p2, %p7412_p1 }
 0x177   : > { %v6204_v50 = vcombine.low %v4995_v3, %v4998_v60 }
 0x178   : > { %p7408_p0 = pneg %p7407_p13 }
 0x179   : > { %6859 = vmatmul.mubr.msk.bf16.gmra.mrb[12].mxu1 %vm377_vm1, %v6202_v45 }
 0x17a   : > { %6862 = vmatprep.mubr.msk.bf16.mxu1 %vm377_vm1, %v6203_v10  ;;  %p7415_p5 = pnand %p7414_p3, %p7408_p0 }
 0x17d   : > { %6795 = vmatmul.mubr.msk.bf16.gmra.mrb[16].mxu0 %vm377_vm1, %v8580_v52  ;;  %v5012_v52 = vsel %vm8368_vm7, %v5010_v20, %v5011_v9 }
 0x17e   : > { %6798 = vmatprep.mubr.msk.bf16.mxu0 %vm377_vm1, %v8597_v56  ;;  %v5022_v56 = vrot.slane %v8312_v26, 5  ;;  %v6206_v37 = vcombine.low %v5009_v38, %v5012_v52  ;;  %v6192_v26 = vrot.slane %v6060_v27, 9 }
 0x180   : > { %v5024_v13 = vrot.slane %v5022_v56, 4  ;;  %v5023_v41 = vsel %vm8368_vm7, %v6192_v26, %v5022_v56 }
 0x181   : > { %6863 = vmatmul.mubr.msk.bf16.gmra.mrb[16].mxu1 %vm377_vm1, %v6204_v50 }
 0x182   : > { %6866 = vmatprep.mubr.msk.bf16.mxu1 %vm377_vm1, %v6205_v18 }
 0x185   : > { %6799 = vmatmul.mubr.msk.bf16.gmra.mrb[20].mxu0 %vm377_vm1, %v8625_v6  ;;  %v5026_v6 = vsel %vm8368_vm7, %v5024_v13, %v5025_v40 }
 0x186   : > { %6802 = vmatprep.mubr.msk.bf16.mxu0 %vm377_vm1, %v8633_v25  ;;  %v5036_v25 = vrot.slane %v8345_v32, 5  ;;  %v6208_v36 = vcombine.low %v5023_v41, %v5026_v6  ;;  %v5039_v32 = vrot.slane %v8352_v28, 5  ;;  %v8848_v28 = vld [vmem:[%s9105_s2] ss:$0 sm:$0xff] }
 0x188   : > { %v5038_v33 = vrot.slane %v5036_v25, 4  ;;  %v5037_v42 = vsel %vm8368_vm7, %v6194_v39, %v5036_v25 }
 0x189   : > { %6867 = vmatmul.mubr.msk.bf16.gmra.mrb[20].mxu1 %vm377_vm1, %v6206_v37 }
 0x18a   : > { %6870 = vmatprep.mubr.msk.bf16.mxu1 %vm377_vm1, %v6207_v53 }
 0x18d   : > { %6803 = vmatmul.mubr.msk.bf16.gmra.mrb[24].mxu0 %vm377_vm1, %v8663_v19  ;;  %v5040_v19 = vsel %vm8368_vm7, %v5038_v33, %v5039_v32 }
 0x18e   : > { %6806 = vmatprep.mubr.msk.bf16.mxu0 %vm377_vm1, %v8668_v17  ;;  %v6210_v48 = vcombine.low %v5037_v42, %v5040_v19 }
 0x191   : > { %6871 = vmatmul.mubr.msk.bf16.gmra.mrb[24].mxu1 %vm377_vm1, %v6208_v36 }
 0x192   : > { %6874 = vmatprep.mubr.msk.bf16.mxu1 %vm377_vm1, %v6209_v46 }
 0x195   : > { %6807 = vmatmul.mubr.msk.bf16.gmra.mrb[28].mxu0 %vm377_vm1, %v8691_v54 }
 0x199   : > { %6875 = vmatmul.mubr.msk.bf16.gmra.mrb[28].mxu1 %vm377_vm1, %v6210_v48 }
 0x230   : > { %v6780_v17 = vpop.f32.mrb[0].mxu0 }
 0x231   : > { %v5341_v43 = vadd.f32 %v6780_v17, %v8848_v28  ;;  %v4522_v45 = vpop.f32.mrb[1].mxu0 }
 0x232   : > { %v5339_v21 = vadd.f32 %v8848_v28, %v4522_v45  ;;  %v6781_v10 = vpop.f32.mrb[2].mxu0 }
 0x233   : > { %v5373_v54 = vmax.f32 %v5341_v43, 0.0  ;;  %v5342_v47 = vadd.f32 %v6781_v10, %v8848_v28  ;;  %v4525_v15 = vpop.f32.mrb[3].mxu0 }
 0x234   : > { %v6848_v49 = vpop.f32.mrb[0].mxu1  ;;  %v5371_v5 = vmax.f32 %v5339_v21, 0.0  ;;  %v5340_v34 = vadd.f32 %v8848_v28, %v4525_v15 }
 0x235   : > { %5406 = vst.msk [vmem:[%s8856_s23 + $0x20] sm:$0xff] %vm5403_vm8, %v5373_v54  ;;  %v5438_v24 = vadd.f32 %v6848_v49, %v8848_v28  ;;  %v5174_v30 = vpop.f32.mrb[1].mxu1  ;;  %v5374_v61 = vmax.f32 %v5342_v47, 0.0 }
 0x236   : > { %5404 = vst.msk [vmem:[%s8856_s23] sm:$0xff] %vm5403_vm8, %v5371_v5  ;;  %v5436_v3 = vadd.f32 %v8848_v28, %v5174_v30  ;;  %v6849_v60 = vpop.f32.mrb[2].mxu1  ;;  %v5372_v16 = vmax.f32 %v5340_v34, 0.0 }
 0x237   : > { %v5470_v51 = vmax.f32 %v5438_v24, 0.0  ;;  %5407 = vst.msk [vmem:[%s8856_s23 + $0x28] sm:$0xff] %vm5403_vm8, %v5374_v61  ;;  %v5439_v58 = vadd.f32 %v6849_v60, %v8848_v28  ;;  %v5177_v14 = vpop.f32.mrb[3].mxu1 }
 0x238   : > { %v5468_v0 = vmax.f32 %v5436_v3, 0.0  ;;  %5405 = vst.msk [vmem:[%s8856_s23 + $0x8] sm:$0xff] %vm5403_vm8, %v5372_v16  ;;  %v5437_v1 = vadd.f32 %v8848_v28, %v5177_v14  ;;  %v6784_v59 = vpop.f32.mrb[4].mxu0 }
 0x239   : > { %6230 = vst.msk [vmem:[%s8856_s23 + $0x30] sm:$0xff] %vm5403_vm8, %v5470_v51  ;;  %v5471_v50 = vmax.f32 %v5439_v58, 0.0  ;;  %v5345_v18 = vadd.f32 %v6784_v59, %v8848_v28  ;;  %v4538_v55 = vpop.f32.mrb[5].mxu0 }
 0x23a   : > { %6228 = vst.msk [vmem:[%s8856_s23 + $0x10] sm:$0xff] %vm5403_vm8, %v5468_v0  ;;  %v5469_v20 = vmax.f32 %v5437_v1, 0.0  ;;  %v5343_v2 = vadd.f32 %v8848_v28, %v4538_v55  ;;  %v6785_v9 = vpop.f32.mrb[6].mxu0 }
 0x23b   : > { %6231 = vst.msk [vmem:[%s8856_s23 + $0x38] sm:$0xff] %vm5403_vm8, %v5471_v50  ;;  %v5377_v4 = vmax.f32 %v5345_v18, 0.0  ;;  %v5346_v62 = vadd.f32 %v6785_v9, %v8848_v28  ;;  %v4541_v44 = vpop.f32.mrb[7].mxu0 }
 0x23c   : > { %6229 = vst.msk [vmem:[%s8856_s23 + $0x18] sm:$0xff] %vm5403_vm8, %v5469_v20  ;;  %v6852_v11 = vpop.f32.mrb[4].mxu1  ;;  %v5375_v38 = vmax.f32 %v5343_v2, 0.0  ;;  %v5344_v52 = vadd.f32 %v8848_v28, %v4541_v44 }
 0x23d   : > { %5410 = vst.msk [vmem:[%s8856_s23 + $0x60] sm:$0xff] %vm5403_vm8, %v5377_v4  ;;  %v5442_v56 = vadd.f32 %v6852_v11, %v8848_v28  ;;  %v5190_v12 = vpop.f32.mrb[5].mxu1  ;;  %v5378_v23 = vmax.f32 %v5346_v62, 0.0 }
 0x23e   : > { %5408 = vst.msk [vmem:[%s8856_s23 + $0x40] sm:$0xff] %vm5403_vm8, %v5375_v38  ;;  %v5440_v27 = vadd.f32 %v8848_v28, %v5190_v12  ;;  %v6853_v29 = vpop.f32.mrb[6].mxu1  ;;  %v5376_v57 = vmax.f32 %v5344_v52, 0.0 }
 0x23f   : > { %v5474_v37 = vmax.f32 %v5442_v56, 0.0  ;;  %5411 = vst.msk [vmem:[%s8856_s23 + $0x68] sm:$0xff] %vm5403_vm8, %v5378_v23  ;;  %v5443_v53 = vadd.f32 %v6853_v29, %v8848_v28  ;;  %v5193_v26 = vpop.f32.mrb[7].mxu1 }
 0x240   : > { %v5472_v13 = vmax.f32 %v5440_v27, 0.0  ;;  %5409 = vst.msk [vmem:[%s8856_s23 + $0x48] sm:$0xff] %vm5403_vm8, %v5376_v57  ;;  %v5441_v40 = vadd.f32 %v8848_v28, %v5193_v26  ;;  %v6788_v7 = vpop.f32.mrb[8].mxu0 }
 0x241   : > { %6234 = vst.msk [vmem:[%s8856_s23 + $0x70] sm:$0xff] %vm5403_vm8, %v5474_v37  ;;  %v5475_v35 = vmax.f32 %v5443_v53, 0.0  ;;  %v5349_v22 = vadd.f32 %v6788_v7, %v8848_v28  ;;  %v4554_v41 = vpop.f32.mrb[9].mxu0 }
 0x242   : > { %6232 = vst.msk [vmem:[%s8856_s23 + $0x50] sm:$0xff] %vm5403_vm8, %v5472_v13  ;;  %v5473_v6 = vmax.f32 %v5441_v40, 0.0  ;;  %v5347_v25 = vadd.f32 %v8848_v28, %v4554_v41  ;;  %v6789_v31 = vpop.f32.mrb[10].mxu0 }
 0x243   : > { %6235 = vst.msk [vmem:[%s8856_s23 + $0x78] sm:$0xff] %vm5403_vm8, %v5475_v35  ;;  %v5381_v63 = vmax.f32 %v5349_v22, 0.0  ;;  %v5350_v8 = vadd.f32 %v6789_v31, %v8848_v28  ;;  %v4557_v36 = vpop.f32.mrb[11].mxu0 }
 0x244   : > { %6233 = vst.msk [vmem:[%s8856_s23 + $0x58] sm:$0xff] %vm5403_vm8, %v5473_v6  ;;  %v6856_v46 = vpop.f32.mrb[8].mxu1  ;;  %v5379_v39 = vmax.f32 %v5347_v25, 0.0  ;;  %v5348_v33 = vadd.f32 %v8848_v28, %v4557_v36 }
 0x245   : > { %5414 = vst.msk [vmem:[%s8856_s23 + $0xa0] sm:$0xff] %vm5403_vm8, %v5381_v63  ;;  %v5446_v32 = vadd.f32 %v6856_v46, %v8848_v28  ;;  %v5206_v42 = vpop.f32.mrb[9].mxu1  ;;  %v5382_v19 = vmax.f32 %v5350_v8, 0.0 }
 0x246   : > { %5412 = vst.msk [vmem:[%s8856_s23 + $0x80] sm:$0xff] %vm5403_vm8, %v5379_v39  ;;  %v5444_v48 = vadd.f32 %v8848_v28, %v5206_v42  ;;  %v6857_v17 = vpop.f32.mrb[10].mxu1  ;;  %v5380_v43 = vmax.f32 %v5348_v33, 0.0 }
 0x247   : > { %v5478_v45 = vmax.f32 %v5446_v32, 0.0  ;;  %5415 = vst.msk [vmem:[%s8856_s23 + $0xa8] sm:$0xff] %vm5403_vm8, %v5382_v19  ;;  %v5447_v21 = vadd.f32 %v6857_v17, %v8848_v28  ;;  %v5209_v10 = vpop.f32.mrb[11].mxu1 }
 0x248   : > { %v5476_v54 = vmax.f32 %v5444_v48, 0.0  ;;  %5413 = vst.msk [vmem:[%s8856_s23 + $0x88] sm:$0xff] %vm5403_vm8, %v5380_v43  ;;  %v5445_v47 = vadd.f32 %v8848_v28, %v5209_v10  ;;  %v6792_v15 = vpop.f32.mrb[12].mxu0 }
 0x249   : > { %6238 = vst.msk [vmem:[%s8856_s23 + $0xb0] sm:$0xff] %vm5403_vm8, %v5478_v45  ;;  %v5479_v49 = vmax.f32 %v5447_v21, 0.0  ;;  %v5353_v5 = vadd.f32 %v6792_v15, %v8848_v28  ;;  %v4570_v34 = vpop.f32.mrb[13].mxu0 }
 0x24a   : > { %6236 = vst.msk [vmem:[%s8856_s23 + $0x90] sm:$0xff] %vm5403_vm8, %v5476_v54  ;;  %v5477_v24 = vmax.f32 %v5445_v47, 0.0  ;;  %v5351_v30 = vadd.f32 %v8848_v28, %v4570_v34  ;;  %v6793_v61 = vpop.f32.mrb[14].mxu0 }
 0x24b   : > { %6239 = vst.msk [vmem:[%s8856_s23 + $0xb8] sm:$0xff] %vm5403_vm8, %v5479_v49  ;;  %v5385_v3 = vmax.f32 %v5353_v5, 0.0  ;;  %v5354_v60 = vadd.f32 %v6793_v61, %v8848_v28  ;;  %v4573_v16 = vpop.f32.mrb[15].mxu0 }
 0x24c   : > { %6237 = vst.msk [vmem:[%s8856_s23 + $0x98] sm:$0xff] %vm5403_vm8, %v5477_v24  ;;  %v6860_v51 = vpop.f32.mrb[12].mxu1  ;;  %v5383_v58 = vmax.f32 %v5351_v30, 0.0  ;;  %v5352_v14 = vadd.f32 %v8848_v28, %v4573_v16 }
 0x24d   : > { %5418 = vst.msk [vmem:[%s8856_s23 + $0xe0] sm:$0xff] %vm5403_vm8, %v5385_v3  ;;  %v5450_v0 = vadd.f32 %v6860_v51, %v8848_v28  ;;  %v5222_v1 = vpop.f32.mrb[13].mxu1  ;;  %v5386_v59 = vmax.f32 %v5354_v60, 0.0 }
 0x24e   : > { %5416 = vst.msk [vmem:[%s8856_s23 + $0xc0] sm:$0xff] %vm5403_vm8, %v5383_v58  ;;  %v5448_v50 = vadd.f32 %v8848_v28, %v5222_v1  ;;  %v6861_v18 = vpop.f32.mrb[14].mxu1  ;;  %v5384_v55 = vmax.f32 %v5352_v14, 0.0 }
 0x24f   : > { %v5482_v20 = vmax.f32 %v5450_v0, 0.0  ;;  %5419 = vst.msk [vmem:[%s8856_s23 + $0xe8] sm:$0xff] %vm5403_vm8, %v5386_v59  ;;  %v5451_v2 = vadd.f32 %v6861_v18, %v8848_v28  ;;  %v5225_v9 = vpop.f32.mrb[15].mxu1 }
 0x250   : > { %v5480_v4 = vmax.f32 %v5448_v50, 0.0  ;;  %5417 = vst.msk [vmem:[%s8856_s23 + $0xc8] sm:$0xff] %vm5403_vm8, %v5384_v55  ;;  %v5449_v62 = vadd.f32 %v8848_v28, %v5225_v9  ;;  %v6796_v44 = vpop.f32.mrb[16].mxu0 }
 0x251   : > { %6242 = vst.msk [vmem:[%s8856_s23 + $0xf0] sm:$0xff] %vm5403_vm8, %v5482_v20  ;;  %v5483_v11 = vmax.f32 %v5451_v2, 0.0  ;;  %v5357_v38 = vadd.f32 %v6796_v44, %v8848_v28  ;;  %v4586_v52 = vpop.f32.mrb[17].mxu0 }
 0x252   : > { %6240 = vst.msk [vmem:[%s8856_s23 + $0xd0] sm:$0xff] %vm5403_vm8, %v5480_v4  ;;  %v5481_v56 = vmax.f32 %v5449_v62, 0.0  ;;  %v5355_v12 = vadd.f32 %v8848_v28, %v4586_v52  ;;  %v6797_v23 = vpop.f32.mrb[18].mxu0 }
 0x253   : > { %6243 = vst.msk [vmem:[%s8856_s23 + $0xf8] sm:$0xff] %vm5403_vm8, %v5483_v11  ;;  %v5389_v27 = vmax.f32 %v5357_v38, 0.0  ;;  %v5358_v29 = vadd.f32 %v6797_v23, %v8848_v28  ;;  %v4589_v57 = vpop.f32.mrb[19].mxu0 }
 0x254   : > { %6241 = vst.msk [vmem:[%s8856_s23 + $0xd8] sm:$0xff] %vm5403_vm8, %v5481_v56  ;;  %v6864_v37 = vpop.f32.mrb[16].mxu1  ;;  %v5387_v53 = vmax.f32 %v5355_v12, 0.0  ;;  %v5356_v26 = vadd.f32 %v8848_v28, %v4589_v57 }
 0x255   : > { %5422 = vst.msk [vmem:[%s8856_s23 + $0x120] sm:$0xff] %vm5403_vm8, %v5389_v27  ;;  %v5454_v13 = vadd.f32 %v6864_v37, %v8848_v28  ;;  %v5238_v40 = vpop.f32.mrb[17].mxu1  ;;  %v5390_v7 = vmax.f32 %v5358_v29, 0.0 }
 0x256   : > { %5420 = vst.msk [vmem:[%s8856_s23 + $0x100] sm:$0xff] %vm5403_vm8, %v5387_v53  ;;  %v5452_v35 = vadd.f32 %v8848_v28, %v5238_v40  ;;  %v6865_v22 = vpop.f32.mrb[18].mxu1  ;;  %v5388_v41 = vmax.f32 %v5356_v26, 0.0 }
 0x257   : > { %v5486_v6 = vmax.f32 %v5454_v13, 0.0  ;;  %5423 = vst.msk [vmem:[%s8856_s23 + $0x128] sm:$0xff] %vm5403_vm8, %v5390_v7  ;;  %v5455_v25 = vadd.f32 %v6865_v22, %v8848_v28  ;;  %v5241_v31 = vpop.f32.mrb[19].mxu1 }
 0x258   : > { %v5484_v63 = vmax.f32 %v5452_v35, 0.0  ;;  %5421 = vst.msk [vmem:[%s8856_s23 + $0x108] sm:$0xff] %vm5403_vm8, %v5388_v41  ;;  %v5453_v8 = vadd.f32 %v8848_v28, %v5241_v31  ;;  %v6800_v36 = vpop.f32.mrb[20].mxu0 }
 0x259   : > { %6246 = vst.msk [vmem:[%s8856_s23 + $0x130] sm:$0xff] %vm5403_vm8, %v5486_v6  ;;  %v5487_v46 = vmax.f32 %v5455_v25, 0.0  ;;  %v5361_v39 = vadd.f32 %v6800_v36, %v8848_v28  ;;  %v4602_v33 = vpop.f32.mrb[21].mxu0 }
 0x25a   : > { %6244 = vst.msk [vmem:[%s8856_s23 + $0x110] sm:$0xff] %vm5403_vm8, %v5484_v63  ;;  %v5485_v32 = vmax.f32 %v5453_v8, 0.0  ;;  %v5359_v42 = vadd.f32 %v8848_v28, %v4602_v33  ;;  %v6801_v19 = vpop.f32.mrb[22].mxu0 }
 0x25b   : > { %6247 = vst.msk [vmem:[%s8856_s23 + $0x138] sm:$0xff] %vm5403_vm8, %v5487_v46  ;;  %v5393_v48 = vmax.f32 %v5361_v39, 0.0  ;;  %v5362_v17 = vadd.f32 %v6801_v19, %v8848_v28  ;;  %v4605_v43 = vpop.f32.mrb[23].mxu0 }
 0x25c   : > { %6245 = vst.msk [vmem:[%s8856_s23 + $0x118] sm:$0xff] %vm5403_vm8, %v5485_v32  ;;  %v6868_v45 = vpop.f32.mrb[20].mxu1  ;;  %v5391_v21 = vmax.f32 %v5359_v42, 0.0  ;;  %v5360_v10 = vadd.f32 %v8848_v28, %v4605_v43 }
 0x25d   : > { %5426 = vst.msk [vmem:[%s8856_s23 + $0x160] sm:$0xff] %vm5403_vm8, %v5393_v48  ;;  %v5458_v54 = vadd.f32 %v6868_v45, %v8848_v28  ;;  %v5254_v47 = vpop.f32.mrb[21].mxu1  ;;  %v5394_v15 = vmax.f32 %v5362_v17, 0.0 }
 0x25e   : > { %5424 = vst.msk [vmem:[%s8856_s23 + $0x140] sm:$0xff] %vm5403_vm8, %v5391_v21  ;;  %v5456_v49 = vadd.f32 %v8848_v28, %v5254_v47  ;;  %v6869_v5 = vpop.f32.mrb[22].mxu1  ;;  %v5392_v34 = vmax.f32 %v5360_v10, 0.0 }
 0x25f   : > { %v5490_v24 = vmax.f32 %v5458_v54, 0.0  ;;  %5427 = vst.msk [vmem:[%s8856_s23 + $0x168] sm:$0xff] %vm5403_vm8, %v5394_v15  ;;  %v5459_v30 = vadd.f32 %v6869_v5, %v8848_v28  ;;  %v5257_v61 = vpop.f32.mrb[23].mxu1 }
 0x260   : > { %v5488_v3 = vmax.f32 %v5456_v49, 0.0  ;;  %5425 = vst.msk [vmem:[%s8856_s23 + $0x148] sm:$0xff] %vm5403_vm8, %v5392_v34  ;;  %v5457_v60 = vadd.f32 %v8848_v28, %v5257_v61  ;;  %v6804_v16 = vpop.f32.mrb[24].mxu0 }
 0x261   : > { %6250 = vst.msk [vmem:[%s8856_s23 + $0x170] sm:$0xff] %vm5403_vm8, %v5490_v24  ;;  %v5491_v51 = vmax.f32 %v5459_v30, 0.0  ;;  %v5365_v58 = vadd.f32 %v6804_v16, %v8848_v28  ;;  %v4618_v14 = vpop.f32.mrb[25].mxu0 }
 0x262   : > { %6248 = vst.msk [vmem:[%s8856_s23 + $0x150] sm:$0xff] %vm5403_vm8, %v5488_v3  ;;  %v5489_v0 = vmax.f32 %v5457_v60, 0.0  ;;  %v5363_v1 = vadd.f32 %v8848_v28, %v4618_v14  ;;  %v6805_v59 = vpop.f32.mrb[26].mxu0 }
 0x263   : > { %6251 = vst.msk [vmem:[%s8856_s23 + $0x178] sm:$0xff] %vm5403_vm8, %v5491_v51  ;;  %v5397_v50 = vmax.f32 %v5365_v58, 0.0  ;;  %v5366_v18 = vadd.f32 %v6805_v59, %v8848_v28  ;;  %v4621_v55 = vpop.f32.mrb[27].mxu0 }
 0x264   : > { %6249 = vst.msk [vmem:[%s8856_s23 + $0x158] sm:$0xff] %vm5403_vm8, %v5489_v0  ;;  %v6872_v20 = vpop.f32.mrb[24].mxu1  ;;  %v5395_v2 = vmax.f32 %v5363_v1, 0.0  ;;  %v5364_v9 = vadd.f32 %v8848_v28, %v4621_v55 }
 0x265   : > { %5430 = vst.msk [vmem:[%s8856_s23 + $0x1a0] sm:$0xff] %vm5403_vm8, %v5397_v50  ;;  %v5462_v4 = vadd.f32 %v6872_v20, %v8848_v28  ;;  %v5270_v62 = vpop.f32.mrb[25].mxu1  ;;  %v5398_v44 = vmax.f32 %v5366_v18, 0.0 }
 0x266   : > { %5428 = vst.msk [vmem:[%s8856_s23 + $0x180] sm:$0xff] %vm5403_vm8, %v5395_v2  ;;  %v5460_v11 = vadd.f32 %v8848_v28, %v5270_v62  ;;  %v6873_v38 = vpop.f32.mrb[26].mxu1  ;;  %v5396_v52 = vmax.f32 %v5364_v9, 0.0 }
 0x267   : > { %v5494_v56 = vmax.f32 %v5462_v4, 0.0  ;;  %5431 = vst.msk [vmem:[%s8856_s23 + $0x1a8] sm:$0xff] %vm5403_vm8, %v5398_v44  ;;  %v5463_v12 = vadd.f32 %v6873_v38, %v8848_v28  ;;  %v5273_v23 = vpop.f32.mrb[27].mxu1 }
 0x268   : > { %v5492_v27 = vmax.f32 %v5460_v11, 0.0  ;;  %5429 = vst.msk [vmem:[%s8856_s23 + $0x188] sm:$0xff] %vm5403_vm8, %v5396_v52  ;;  %v5461_v29 = vadd.f32 %v8848_v28, %v5273_v23  ;;  %v6808_v57 = vpop.f32.mrb[28].mxu0 }
 0x269   : > { %6254 = vst.msk [vmem:[%s8856_s23 + $0x1b0] sm:$0xff] %vm5403_vm8, %v5494_v56  ;;  %v5495_v37 = vmax.f32 %v5463_v12, 0.0  ;;  %v5369_v53 = vadd.f32 %v6808_v57, %v8848_v28  ;;  %v4634_v26 = vpop.f32.mrb[29].mxu0 }
 0x26a   : > { %6252 = vst.msk [vmem:[%s8856_s23 + $0x190] sm:$0xff] %vm5403_vm8, %v5492_v27  ;;  %v5493_v13 = vmax.f32 %v5461_v29, 0.0  ;;  %v5367_v40 = vadd.f32 %v8848_v28, %v4634_v26  ;;  %v6809_v7 = vpop.f32.mrb[30].mxu0 }
 0x26b   : > { %6255 = vst.msk [vmem:[%s8856_s23 + $0x1b8] sm:$0xff] %vm5403_vm8, %v5495_v37  ;;  %v5401_v35 = vmax.f32 %v5369_v53, 0.0  ;;  %v5370_v22 = vadd.f32 %v6809_v7, %v8848_v28  ;;  %v4637_v41 = vpop.f32.mrb[31].mxu0 }
 0x26c   : > { %6253 = vst.msk [vmem:[%s8856_s23 + $0x198] sm:$0xff] %vm5403_vm8, %v5493_v13  ;;  %v6876_v6 = vpop.f32.mrb[28].mxu1  ;;  %v5399_v25 = vmax.f32 %v5367_v40, 0.0  ;;  %v5368_v31 = vadd.f32 %v8848_v28, %v4637_v41 }
 0x26d   : > { %5434 = vst.msk [vmem:[%s8856_s23 + $0x1e0] sm:$0xff] %vm5403_vm8, %v5401_v35  ;;  %v5466_v63 = vadd.f32 %v6876_v6, %v8848_v28  ;;  %v5286_v8 = vpop.f32.mrb[29].mxu1  ;;  %v5402_v36 = vmax.f32 %v5370_v22, 0.0 }
 0x26e   : > { %5432 = vst.msk [vmem:[%s8856_s23 + $0x1c0] sm:$0xff] %vm5403_vm8, %v5399_v25  ;;  %v5464_v46 = vadd.f32 %v8848_v28, %v5286_v8  ;;  %v6877_v39 = vpop.f32.mrb[30].mxu1  ;;  %v5400_v33 = vmax.f32 %v5368_v31, 0.0 }
 0x26f   : > { %v5498_v32 = vmax.f32 %v5466_v63, 0.0  ;;  %5435 = vst.msk [vmem:[%s8856_s23 + $0x1e8] sm:$0xff] %vm5403_vm8, %v5402_v36  ;;  %v5467_v42 = vadd.f32 %v6877_v39, %v8848_v28  ;;  %v5289_v19 = vpop.f32.mrb[31].mxu1 }
 0x270   : > { %v5496_v48 = vmax.f32 %v5464_v46, 0.0  ;;  %5433 = vst.msk [vmem:[%s8856_s23 + $0x1c8] sm:$0xff] %vm5403_vm8, %v5400_v33  ;;  %v5465_v17 = vadd.f32 %v8848_v28, %v5289_v19 }
 0x271   : > { %6258 = vst.msk [vmem:[%s8856_s23 + $0x1f0] sm:$0xff] %vm5403_vm8, %v5498_v32  ;;  %v5499_v43 = vmax.f32 %v5467_v42, 0.0 }
 0x272   : > { %6256 = vst.msk [vmem:[%s8856_s23 + $0x1d0] sm:$0xff] %vm5403_vm8, %v5496_v48  ;;  %v5497_v45 = vmax.f32 %v5465_v17, 0.0 }
 0x273   : > { %6259 = vst.msk [vmem:[%s8856_s23 + $0x1f8] sm:$0xff] %vm5403_vm8, %v5499_v43 }
 0x274   : > { %6257 = vst.msk [vmem:[%s8856_s23 + $0x1d8] sm:$0xff] %vm5403_vm8, %v5497_v45 }
 0x275   : > { %7418 = shalt.err (!%p7415_p5)
}
 0x276   : > { %s7419_s8 = scalar_lea.hbm %s9045_s29, 8192  ;;  %s7423_s11 = scalar_lea.hbm %s9106_s3, 16384 }
 0x277   : > { %p7420_p6 = scmp.ne.s32.totalorder %s9045_s29, %s7419_s8  ;;  %p7424_p10 = scmp.lt.u32.totalorder %s9045_s29, %s9106_s3 }
 0x278   : > { %p7425_p11 = scmp.lt.u32.totalorder %s7423_s11, %s7419_s8  ;;  %p7427_p13 = scmp.lt.u32.totalorder %s7419_s8, %s9045_s29 }
 0x279   : > { %p7421_p7 = pnand %p7420_p6, %p7548_p4 }
 0x27a   : > { %p7426_p12 = por %p7425_p11, %p7424_p10 }
 0x27b   : > { %p7422_p9 = pneg %p7421_p7 }
 0x27c   : > { %p7428_p0 = por %p7427_p13, %p7426_p12 }
 0x27e   : > { %p7429_p1 = pnand %p7428_p0, %p7422_p9 }
 0x280   : > { %7432 = shalt.err (!%p7429_p1)
}
 0x281   : > { %s7486_s21 = smov 128   ;;  %s7487_s23 = smov 8  }
 0x282   : > { %7211 = dma.vmem_to_hbm [thread:$0]  (%p7548_p4), %s9047_s27, 8192, %s9045_s29, %s9057_s30, %s7486_s21, %s7486_s21, %s7487_s23  }
 0x283 PF: > { %p7217_p2 = scmp.ge.s32.totalorder %s7483_s17, 2  ;;  %s5565_s26 = sand.u32 1, %s7463_s12  }
 0x284   : > { %s5566_s28 = scalar_lea.sflag [#allocation3], %s5565_s26 }
 0x285   : > { %p7214_p3 = pnand %p7217_p2, %p7555_p8 }
 0x287   : > { %7458 = dma.done.wait (!%p7214_p3), %s5566_s28, 8192  }
 0x288   : > { %7460 = vsyncadd (!%p7214_p3), %s5566_s28, 4294959104  ;;  %s16_s17 = sadd.s32 1, %s7483_s17   ;;  %s9113_s12 = smov %s7467_s13 }
 0x289   : > { %p13_p5 = scmp.ge.s32.totalorder %s16_s17, 4   ;;  %s9114_s13 = smov %s7471_s14 }
 0x28a   : > { %s9115_s14 = smov %s7561_s25  ;;  %s9116_s15 = smov %s7479_s16 }
 0x28b   : > { %s9117_s16 = smov %s9119_s20  ;;  %15 = sbr.rel (!%p13_p5) target bundleno = 4 (0x4), region = 82 }
 0x292   :  { %5571 = vsyncpa [#allocation3], 1 }
 0x293   :  { %5573 = vsyncpa [#allocation3 + $0x1], 1 }

</bundles_post_ra>
